<compile_context>
chip_gen: v5e
topology: v5e:2x2
jax: 0.10.0
libtpu: 0.0.40
codegen_flags: <defaults>
</compile_context>

<pallas_src>
import jax
import jax.numpy as jnp
from jax.experimental import pallas as pl
from jax.experimental.pallas import tpu as pltpu

FEATURES = 64        # hidden channels
NUM_MID = 15         # conv+BN+ReLU middle layers
BN_EPS = 1e-5
COUT_PAD = 128       # final conv output padded to a full 128-lane store


# -----------------------------------------------------------------------------
# Fused Pallas kernel: whole 17-layer network for one image per grid step
# -----------------------------------------------------------------------------
def net16_fused_kernel(x_ref, wk_ref, shift_ref, wlast_ref, o_ref, act_ref, xc_ref):
    # x_ref:     (1, H, W, C)       f32  input image (channel 0 real, rest zero)
    # wk_ref:    (16, 3, 3C, C)     bf16 conv weights, BN scale folded, kw-merged per kh
    # shift_ref: (16, 1, C)         f32  BN shift (beta - mean*scale); zeros for layer 0
    # wlast_ref: (3, 3C, COUT_PAD)  bf16 final conv weights, Cout padded to 128 lanes
    # o_ref:     (1, H*W, COUT_PAD) f32  lane-dense output slab (channel 0 is real)
    # act_ref:   (H+2, W+2, C)      f32  VMEM-resident zero-padded activation
    # xc_ref:    (H+2, W, 3C)       bf16 kw-merged patches
    H = x_ref.shape[1]
    W = x_ref.shape[2]
    C = x_ref.shape[3]
    HW = H * W
    K3 = 3 * C
    n_layers = wk_ref.shape[0]

    # init: zero halo once per image, interior = input
    act_ref[...] = jnp.zeros_like(act_ref)
    act_ref[1:H + 1, 1:W + 1, :] = x_ref[0]

    def build_patches():
        # xc[r, w, kw*C:(kw+1)*C] = act[r, w+kw, :]  -> merges kw taps into K=3C
        for kw in range(3):
            xc_ref[:, :, kw * C:(kw + 1) * C] = (
                act_ref[:, kw:kw + W, :].astype(xc_ref.dtype))

    def conv_from_patches(weight_for_kh, cout):
        # 3 MXU dots (one per kh), bf16 operands, f32 accumulation
        acc = jnp.zeros((HW, cout), jnp.float32)
        for kh in range(3):
            lhs = xc_ref[kh:kh + H].reshape(HW, K3)
            acc = acc + jnp.dot(lhs, weight_for_kh(kh),
                                preferred_element_type=jnp.float32)
        return acc

    # 16 fused conv (+ folded BN) + ReLU layers; activations stay in VMEM
    def layer_body(l, carry):
        build_patches()
        acc = conv_from_patches(lambda kh: wk_ref[l, kh], C)
        out = jnp.maximum(acc + shift_ref[l], 0.0)
        act_ref[1:H + 1, 1:W + 1, :] = out.reshape(H, W, C)
        return carry

    jax.lax.fori_loop(0, n_layers, layer_body, 0)

    # final conv 64 -> 1 (lane-padded to 128), no BN, no ReLU
    build_patches()
    o_ref[0] = conv_from_patches(lambda kh: wlast_ref[kh], o_ref.shape[2])


# -----------------------------------------------------------------------------
# Wrapper: one pallas_call for the whole network
# -----------------------------------------------------------------------------
def net16_forward(x_nchw, packed):
    wk, shift, wlast = packed
    N, _, H, W = x_nchw.shape
    C = FEATURES

    # NCHW -> NHWC; one-time zero-pad of the single input channel up to C lanes
    x = jnp.transpose(x_nchw, (0, 2, 3, 1)).astype(jnp.float32)
    x = jnp.pad(x, ((0, 0), (0, 0), (0, 0), (0, C - x.shape[-1])))

    out = pl.pallas_call(
        net16_fused_kernel,
        out_shape=jax.ShapeDtypeStruct((N, H * W, COUT_PAD), jnp.float32),
        grid_spec=pltpu.PrefetchScalarGridSpec(
            num_scalar_prefetch=0,
            grid=(N,),  # one image per grid step; parallel -> both v7x TCs used
            in_specs=[
                pl.BlockSpec((1, H, W, C), lambda n: (n, 0, 0, 0)),
                pl.BlockSpec(wk.shape, lambda n: (0, 0, 0, 0)),     # loaded once
                pl.BlockSpec(shift.shape, lambda n: (0, 0, 0)),
                pl.BlockSpec(wlast.shape, lambda n: (0, 0, 0)),
            ],
            out_specs=pl.BlockSpec((1, H * W, COUT_PAD), lambda n: (n, 0, 0)),
            scratch_shapes=[
                pltpu.VMEM((H + 2, W + 2, C), jnp.float32),       # padded activation
                pltpu.VMEM((H + 2, W, 3 * C), jnp.bfloat16),      # kw-merged patches
            ],
        ),
        compiler_params=pltpu.CompilerParams(
            dimension_semantics=("parallel",)),
    )(x, wk, shift, wlast)

    # channel 0 of the lane-dense slab is the real output; back to NCHW
    y = out[:, :, 0].reshape(N, H, W)
    return y[:, None, :, :]


# -----------------------------------------------------------------------------
# Deterministic synthetic parameters (mirrors Net_16.__init__ shapes, BN eval mode)
# -----------------------------------------------------------------------------
def _conv_weight(key, cin, cout):
    fan_in = cin * 3 * 3
    return (jax.random.normal(key, (3, 3, cin, cout), jnp.float32)
            / jnp.sqrt(jnp.float32(fan_in)))


def init_params(key):
    """PyTorch-like params: (w_first, [(w, gamma, beta, mean, var)]*15, w_last)."""
    keys = jax.random.split(key, 2 + NUM_MID * 5)
    ki = 0
    w_first = _conv_weight(keys[ki], 1, FEATURES); ki += 1
    mids = []
    for _ in range(NUM_MID):
        w = _conv_weight(keys[ki], FEATURES, FEATURES); ki += 1
        gamma = 1.0 + 0.1 * jax.random.normal(keys[ki], (FEATURES,), jnp.float32); ki += 1
        beta = 0.1 * jax.random.normal(keys[ki], (FEATURES,), jnp.float32); ki += 1
        mean = 0.1 * jax.random.normal(keys[ki], (FEATURES,), jnp.float32); ki += 1
        var = 1.0 + 0.1 * jax.random.uniform(keys[ki], (FEATURES,), jnp.float32); ki += 1
        mids.append((w, gamma, beta, mean, var))
    w_last = _conv_weight(keys[ki], FEATURES, 1); ki += 1
    return w_first, mids, w_last


def pack_params(params):
    """Fold BN scale into weights, merge kw taps (K=3C), cast matmul operands to bf16."""
    w_first, mids, w_last = params
    C = FEATURES

    # layer 0: conv 1->64 (+ReLU), no BN; pad Cin 1 -> C with zero weights
    w0p = jnp.zeros((3, 3, C, C), jnp.float32).at[:, :, 0, :].set(w_first[:, :, 0, :])
    wk_list = [w0p.reshape(3, 3 * C, C)]                 # rows ordered (kw, cin)
    shift_list = [jnp.zeros((C,), jnp.float32)]

    # 15 middle layers: fold gamma/sqrt(var+eps) into the conv weights
    for (w, gamma, beta, mean, var) in mids:
        scale = gamma / jnp.sqrt(var + BN_EPS)
        wk_list.append((w * scale).reshape(3, 3 * C, C))
        shift_list.append(beta - mean * scale)

    wk = jnp.stack(wk_list).astype(jnp.bfloat16)         # (16, 3, 3C, C)
    shift = jnp.stack(shift_list)[:, None, :]            # (16, 1, C) f32

    # last layer: conv 64->1, pad Cout 1 -> COUT_PAD for a lane-dense store
    wl = jnp.zeros((3, 3, C, COUT_PAD), jnp.float32).at[:, :, :, 0].set(w_last[:, :, :, 0])
    wlast = wl.reshape(3, 3 * C, COUT_PAD).astype(jnp.bfloat16)
    return wk, shift, wlast


# -----------------------------------------------------------------------------
# Pure-JAX f32 reference (matches Net_16.forward with BatchNorm in eval mode)
# -----------------------------------------------------------------------------
def net16_reference(x_nchw, params):
    w_first, mids, w_last = params
    x = jnp.transpose(x_nchw, (0, 2, 3, 1)).astype(jnp.float32)

    def conv(x, w):
        return jax.lax.conv_general_dilated(
            x, w, window_strides=(1, 1), padding="SAME",
            dimension_numbers=("NHWC", "HWIO", "NHWC"),
            precision=jax.lax.Precision.HIGHEST)

    x = jnp.maximum(conv(x, w_first), 0.0)
    for (w, gamma, beta, mean, var) in mids:
        y = conv(x, w)
        y = (y - mean) / jnp.sqrt(var + BN_EPS) * gamma + beta
        x = jnp.maximum(y, 0.0)
    x = conv(x, w_last)
    return jnp.transpose(x, (0, 3, 1, 2))


if __name__ == "__main__":
    key = jax.random.PRNGKey(0)
    k_param, k_x = jax.random.split(key)

    params = init_params(k_param)
    packed = pack_params(params)
    x = jax.random.normal(k_x, (2, 1, 16, 16), jnp.float32)   # NCHW like PyTorch

    out = jax.jit(net16_forward)(x, packed)
    out = jax.block_until_ready(out)
    assert out.shape == (2, 1, 16, 16), out.shape

    ref = jax.block_until_ready(jax.jit(net16_reference)(x, params))
    max_err = float(jnp.max(jnp.abs(out - ref)))
    # bf16 matmul operands (f32 accumulate) across 17 layers -> small deviation vs f32.
    assert max_err < 5e-2, f"mismatch vs reference: max abs err {max_err}"

    print("KERNEL_OK")
</pallas_src>

<mosaic_0001>
module attributes {stable_mosaic.version = 11 : i64} {
  func.func @net16_fused_kernel(%arg0: i32, %arg1: memref<1x16x16x64xf32, #tpu.memory_space<vmem>>, %arg2: memref<16x3x192x64xbf16, #tpu.memory_space<vmem>>, %arg3: memref<16x1x64xf32, #tpu.memory_space<vmem>>, %arg4: memref<3x192x128xbf16, #tpu.memory_space<vmem>>, %arg5: memref<1x256x128xf32, #tpu.memory_space<vmem>>, %arg6: memref<18x18x64xf32, #tpu.memory_space<vmem>>, %arg7: memref<18x16x192xbf16, #tpu.memory_space<vmem>>) attributes {dimension_semantics = [#tpu.dimension_semantics<parallel>], iteration_bounds = array<i64: 2>, scalar_prefetch = 0 : i64, scratch_operands = 2 : i64, tpu.core_type = #tpu.core_type<tc>, window_params = [{transform_indices = @transform_0, window_bounds = array<i64: 1, 16, 16, 64>}, {pipeline_mode = #tpu.pipeline_mode<synchronous>, transform_indices = @transform_1, window_bounds = array<i64: 16, 3, 192, 64>}, {pipeline_mode = #tpu.pipeline_mode<synchronous>, transform_indices = @transform_2, window_bounds = array<i64: 16, 1, 64>}, {pipeline_mode = #tpu.pipeline_mode<synchronous>, transform_indices = @transform_3, window_bounds = array<i64: 3, 192, 128>}, {transform_indices = @transform_4, window_bounds = array<i64: 1, 256, 128>}]} {
    %cst = arith.constant 0.000000e+00 : f32
    %0 = vector.broadcast %cst : f32 to vector<18x18x64xf32>
    %c0 = arith.constant 0 : index
    %c0_0 = arith.constant 0 : index
    %c0_1 = arith.constant 0 : index
    %1 = vector.load %arg6[%c0, %c0_0, %c0_1] : memref<18x18x64xf32, #tpu.memory_space<vmem>>, vector<18x18x64xf32>
    tpu.vector_store %arg6[%c0, %c0_0, %c0_1], %0 {strides = array<i32>} : memref<18x18x64xf32, #tpu.memory_space<vmem>>, vector<18x18x64xf32>,
    %c0_2 = arith.constant 0 : index
    %c0_3 = arith.constant 0 : index
    %c0_4 = arith.constant 0 : index
    %c0_5 = arith.constant 0 : index
    %2 = vector.load %arg1[%c0_2, %c0_3, %c0_4, %c0_5] : memref<1x16x16x64xf32, #tpu.memory_space<vmem>>, vector<1x16x16x64xf32>
    %3 = vector.shape_cast %2 : vector<1x16x16x64xf32> to vector<16x16x64xf32>
    %c1 = arith.constant 1 : index
    %c1_6 = arith.constant 1 : index
    %c0_7 = arith.constant 0 : index
    %4 = vector.load %arg6[%c1, %c1_6, %c0_7] : memref<18x18x64xf32, #tpu.memory_space<vmem>>, vector<16x16x64xf32>
    tpu.vector_store %arg6[%c1, %c1_6, %c0_7], %3 {strides = array<i32>} : memref<18x18x64xf32, #tpu.memory_space<vmem>>, vector<16x16x64xf32>,
    %c0_i32 = arith.constant 0 : i32
    %c16_i32 = arith.constant 16 : i32
    %5 = arith.addi %c0_i32, %c16_i32 : i32
    %c1_i32 = arith.constant 1 : i32
    scf.for %arg8 = %c0_i32 to %5 step %c1_i32  : i32 {
      %c0_49 = arith.constant 0 : index
      %c0_50 = arith.constant 0 : index
      %c0_51 = arith.constant 0 : index
      %37 = vector.load %arg6[%c0_49, %c0_50, %c0_51] : memref<18x18x64xf32, #tpu.memory_space<vmem>>, vector<18x16x64xf32>
      %38 = arith.truncf %37 : vector<18x16x64xf32> to vector<18x16x64xbf16>
      %c0_52 = arith.constant 0 : index
      %c0_53 = arith.constant 0 : index
      %c0_54 = arith.constant 0 : index
      %39 = vector.load %arg7[%c0_52, %c0_53, %c0_54] : memref<18x16x192xbf16, #tpu.memory_space<vmem>>, vector<18x16x64xbf16>
      tpu.vector_store %arg7[%c0_52, %c0_53, %c0_54], %38 {strides = array<i32>} : memref<18x16x192xbf16, #tpu.memory_space<vmem>>, vector<18x16x64xbf16>,
      %c0_55 = arith.constant 0 : index
      %c1_56 = arith.constant 1 : index
      %c0_57 = arith.constant 0 : index
      %40 = vector.load %arg6[%c0_55, %c1_56, %c0_57] : memref<18x18x64xf32, #tpu.memory_space<vmem>>, vector<18x16x64xf32>
      %41 = arith.truncf %40 : vector<18x16x64xf32> to vector<18x16x64xbf16>
      %c0_58 = arith.constant 0 : index
      %c0_59 = arith.constant 0 : index
      %c64_60 = arith.constant 64 : index
      %42 = vector.load %arg7[%c0_58, %c0_59, %c64_60] : memref<18x16x192xbf16, #tpu.memory_space<vmem>>, vector<18x16x64xbf16>
      tpu.vector_store %arg7[%c0_58, %c0_59, %c64_60], %41 {strides = array<i32>} : memref<18x16x192xbf16, #tpu.memory_space<vmem>>, vector<18x16x64xbf16>,
      %c0_61 = arith.constant 0 : index
      %c2_62 = arith.constant 2 : index
      %c0_63 = arith.constant 0 : index
      %43 = vector.load %arg6[%c0_61, %c2_62, %c0_63] : memref<18x18x64xf32, #tpu.memory_space<vmem>>, vector<18x16x64xf32>
      %44 = arith.truncf %43 : vector<18x16x64xf32> to vector<18x16x64xbf16>
      %c0_64 = arith.constant 0 : index
      %c0_65 = arith.constant 0 : index
      %c128_66 = arith.constant 128 : index
      %45 = vector.load %arg7[%c0_64, %c0_65, %c128_66] : memref<18x16x192xbf16, #tpu.memory_space<vmem>>, vector<18x16x64xbf16>
      tpu.vector_store %arg7[%c0_64, %c0_65, %c128_66], %44 {strides = array<i32>} : memref<18x16x192xbf16, #tpu.memory_space<vmem>>, vector<18x16x64xbf16>,
      %cst_67 = arith.constant 0.000000e+00 : f32
      %46 = vector.broadcast %cst_67 : f32 to vector<256x64xf32>
      %c0_68 = arith.constant 0 : index
      %c0_69 = arith.constant 0 : index
      %c0_70 = arith.constant 0 : index
      %47 = vector.load %arg7[%c0_68, %c0_69, %c0_70] : memref<18x16x192xbf16, #tpu.memory_space<vmem>>, vector<16x16x192xbf16>
      %48 = vector.shape_cast %47 : vector<16x16x192xbf16> to vector<256x192xbf16>
      %49 = arith.index_cast %arg8 : i32 to index
      %c0_71 = arith.constant 0 : index
      %c0_72 = arith.constant 0 : index
      %c0_73 = arith.constant 0 : index
      %50 = vector.load %arg2[%49, %c0_71, %c0_72, %c0_73] : memref<16x3x192x64xbf16, #tpu.memory_space<vmem>>, vector<1x1x192x64xbf16>
      %51 = vector.shape_cast %50 : vector<1x1x192x64xbf16> to vector<192x64xbf16>
      %cst_74 = arith.constant dense<0.000000e+00> : vector<256x64xf32>
      %52 = tpu.matmul %48, %51, %cst_74 {dimension_numbers = #tpu.dot_dimension_numbers<[1], [0], [0], [1], [0, 0, 1, 1], [], []>} : vector<256x192xbf16>, vector<192x64xbf16>, vector<256x64xf32> -> vector<256x64xf32>
      %53 = arith.addf %46, %52 : vector<256x64xf32>
      %c1_75 = arith.constant 1 : index
      %c0_76 = arith.constant 0 : index
      %c0_77 = arith.constant 0 : index
      %54 = vector.load %arg7[%c1_75, %c0_76, %c0_77] : memref<18x16x192xbf16, #tpu.memory_space<vmem>>, vector<16x16x192xbf16>
      %55 = vector.shape_cast %54 : vector<16x16x192xbf16> to vector<256x192xbf16>
      %56 = arith.index_cast %arg8 : i32 to index
      %c1_78 = arith.constant 1 : index
      %c0_79 = arith.constant 0 : index
      %c0_80 = arith.constant 0 : index
      %57 = vector.load %arg2[%56, %c1_78, %c0_79, %c0_80] : memref<16x3x192x64xbf16, #tpu.memory_space<vmem>>, vector<1x1x192x64xbf16>
      %58 = vector.shape_cast %57 : vector<1x1x192x64xbf16> to vector<192x64xbf16>
      %cst_81 = arith.constant dense<0.000000e+00> : vector<256x64xf32>
      %59 = tpu.matmul %55, %58, %cst_81 {dimension_numbers = #tpu.dot_dimension_numbers<[1], [0], [0], [1], [0, 0, 1, 1], [], []>} : vector<256x192xbf16>, vector<192x64xbf16>, vector<256x64xf32> -> vector<256x64xf32>
      %60 = arith.addf %53, %59 : vector<256x64xf32>
      %c2_82 = arith.constant 2 : index
      %c0_83 = arith.constant 0 : index
      %c0_84 = arith.constant 0 : index
      %61 = vector.load %arg7[%c2_82, %c0_83, %c0_84] : memref<18x16x192xbf16, #tpu.memory_space<vmem>>, vector<16x16x192xbf16>
      %62 = vector.shape_cast %61 : vector<16x16x192xbf16> to vector<256x192xbf16>
      %63 = arith.index_cast %arg8 : i32 to index
      %c2_85 = arith.constant 2 : index
      %c0_86 = arith.constant 0 : index
      %c0_87 = arith.constant 0 : index
      %64 = vector.load %arg2[%63, %c2_85, %c0_86, %c0_87] : memref<16x3x192x64xbf16, #tpu.memory_space<vmem>>, vector<1x1x192x64xbf16>
      %65 = vector.shape_cast %64 : vector<1x1x192x64xbf16> to vector<192x64xbf16>
      %cst_88 = arith.constant dense<0.000000e+00> : vector<256x64xf32>
      %66 = tpu.matmul %62, %65, %cst_88 {dimension_numbers = #tpu.dot_dimension_numbers<[1], [0], [0], [1], [0, 0, 1, 1], [], []>} : vector<256x192xbf16>, vector<192x64xbf16>, vector<256x64xf32> -> vector<256x64xf32>
      %67 = arith.addf %60, %66 : vector<256x64xf32>
      %68 = arith.index_cast %arg8 : i32 to index
      %c0_89 = arith.constant 0 : index
      %c0_90 = arith.constant 0 : index
      %69 = vector.load %arg3[%68, %c0_89, %c0_90] : memref<16x1x64xf32, #tpu.memory_space<vmem>>, vector<1x1x64xf32>
      %70 = vector.shape_cast %69 : vector<1x1x64xf32> to vector<1x64xf32>
      %71 = vector.broadcast %70 : vector<1x64xf32> to vector<256x64xf32>
      %72 = arith.addf %67, %71 : vector<256x64xf32>
      %cst_91 = arith.constant 0.000000e+00 : f32
      %73 = vector.broadcast %cst_91 : f32 to vector<256x64xf32>
      %74 = arith.maximumf %72, %73 : vector<256x64xf32>
      %75 = vector.shape_cast %74 : vector<256x64xf32> to vector<16x16x64xf32>
      %c1_92 = arith.constant 1 : index
      %c1_93 = arith.constant 1 : index
      %c0_94 = arith.constant 0 : index
      %76 = vector.load %arg6[%c1_92, %c1_93, %c0_94] : memref<18x18x64xf32, #tpu.memory_space<vmem>>, vector<16x16x64xf32>
      tpu.vector_store %arg6[%c1_92, %c1_93, %c0_94], %75 {strides = array<i32>} : memref<18x18x64xf32, #tpu.memory_space<vmem>>, vector<16x16x64xf32>,
    }
    %c16_i32_8 = arith.constant 16 : i32
    %c0_9 = arith.constant 0 : index
    %c0_10 = arith.constant 0 : index
    %c0_11 = arith.constant 0 : index
    %6 = vector.load %arg6[%c0_9, %c0_10, %c0_11] : memref<18x18x64xf32, #tpu.memory_space<vmem>>, vector<18x16x64xf32>
    %7 = arith.truncf %6 : vector<18x16x64xf32> to vector<18x16x64xbf16>
    %c0_12 = arith.constant 0 : index
    %c0_13 = arith.constant 0 : index
    %c0_14 = arith.constant 0 : index
    %8 = vector.load %arg7[%c0_12, %c0_13, %c0_14] : memref<18x16x192xbf16, #tpu.memory_space<vmem>>, vector<18x16x64xbf16>
    tpu.vector_store %arg7[%c0_12, %c0_13, %c0_14], %7 {strides = array<i32>} : memref<18x16x192xbf16, #tpu.memory_space<vmem>>, vector<18x16x64xbf16>,
    %c0_15 = arith.constant 0 : index
    %c1_16 = arith.constant 1 : index
    %c0_17 = arith.constant 0 : index
    %9 = vector.load %arg6[%c0_15, %c1_16, %c0_17] : memref<18x18x64xf32, #tpu.memory_space<vmem>>, vector<18x16x64xf32>
    %10 = arith.truncf %9 : vector<18x16x64xf32> to vector<18x16x64xbf16>
    %c0_18 = arith.constant 0 : index
    %c0_19 = arith.constant 0 : index
    %c64 = arith.constant 64 : index
    %11 = vector.load %arg7[%c0_18, %c0_19, %c64] : memref<18x16x192xbf16, #tpu.memory_space<vmem>>, vector<18x16x64xbf16>
    tpu.vector_store %arg7[%c0_18, %c0_19, %c64], %10 {strides = array<i32>} : memref<18x16x192xbf16, #tpu.memory_space<vmem>>, vector<18x16x64xbf16>,
    %c0_20 = arith.constant 0 : index
    %c2 = arith.constant 2 : index
    %c0_21 = arith.constant 0 : index
    %12 = vector.load %arg6[%c0_20, %c2, %c0_21] : memref<18x18x64xf32, #tpu.memory_space<vmem>>, vector<18x16x64xf32>
    %13 = arith.truncf %12 : vector<18x16x64xf32> to vector<18x16x64xbf16>
    %c0_22 = arith.constant 0 : index
    %c0_23 = arith.constant 0 : index
    %c128 = arith.constant 128 : index
    %14 = vector.load %arg7[%c0_22, %c0_23, %c128] : memref<18x16x192xbf16, #tpu.memory_space<vmem>>, vector<18x16x64xbf16>
    tpu.vector_store %arg7[%c0_22, %c0_23, %c128], %13 {strides = array<i32>} : memref<18x16x192xbf16, #tpu.memory_space<vmem>>, vector<18x16x64xbf16>,
    %cst_24 = arith.constant 0.000000e+00 : f32
    %15 = vector.broadcast %cst_24 : f32 to vector<256x128xf32>
    %c0_25 = arith.constant 0 : index
    %c0_26 = arith.constant 0 : index
    %c0_27 = arith.constant 0 : index
    %16 = vector.load %arg7[%c0_25, %c0_26, %c0_27] : memref<18x16x192xbf16, #tpu.memory_space<vmem>>, vector<16x16x192xbf16>
    %17 = vector.shape_cast %16 : vector<16x16x192xbf16> to vector<256x192xbf16>
    %c0_28 = arith.constant 0 : index
    %c0_29 = arith.constant 0 : index
    %c0_30 = arith.constant 0 : index
    %18 = vector.load %arg4[%c0_28, %c0_29, %c0_30] : memref<3x192x128xbf16, #tpu.memory_space<vmem>>, vector<1x192x128xbf16>
    %19 = vector.shape_cast %18 : vector<1x192x128xbf16> to vector<192x128xbf16>
    %cst_31 = arith.constant dense<0.000000e+00> : vector<256x128xf32>
    %20 = tpu.matmul %17, %19, %cst_31 {dimension_numbers = #tpu.dot_dimension_numbers<[1], [0], [0], [1], [0, 0, 1, 1], [], []>} : vector<256x192xbf16>, vector<192x128xbf16>, vector<256x128xf32> -> vector<256x128xf32>
    %21 = arith.addf %15, %20 : vector<256x128xf32>
    %c1_32 = arith.constant 1 : index
    %c0_33 = arith.constant 0 : index
    %c0_34 = arith.constant 0 : index
    %22 = vector.load %arg7[%c1_32, %c0_33, %c0_34] : memref<18x16x192xbf16, #tpu.memory_space<vmem>>, vector<16x16x192xbf16>
    %23 = vector.shape_cast %22 : vector<16x16x192xbf16> to vector<256x192xbf16>
    %c1_35 = arith.constant 1 : index
    %c0_36 = arith.constant 0 : index
    %c0_37 = arith.constant 0 : index
    %24 = vector.load %arg4[%c1_35, %c0_36, %c0_37] : memref<3x192x128xbf16, #tpu.memory_space<vmem>>, vector<1x192x128xbf16>
    %25 = vector.shape_cast %24 : vector<1x192x128xbf16> to vector<192x128xbf16>
    %cst_38 = arith.constant dense<0.000000e+00> : vector<256x128xf32>
    %26 = tpu.matmul %23, %25, %cst_38 {dimension_numbers = #tpu.dot_dimension_numbers<[1], [0], [0], [1], [0, 0, 1, 1], [], []>} : vector<256x192xbf16>, vector<192x128xbf16>, vector<256x128xf32> -> vector<256x128xf32>
    %27 = arith.addf %21, %26 : vector<256x128xf32>
    %c2_39 = arith.constant 2 : index
    %c0_40 = arith.constant 0 : index
    %c0_41 = arith.constant 0 : index
    %28 = vector.load %arg7[%c2_39, %c0_40, %c0_41] : memref<18x16x192xbf16, #tpu.memory_space<vmem>>, vector<16x16x192xbf16>
    %29 = vector.shape_cast %28 : vector<16x16x192xbf16> to vector<256x192xbf16>
    %c2_42 = arith.constant 2 : index
    %c0_43 = arith.constant 0 : index
    %c0_44 = arith.constant 0 : index
    %30 = vector.load %arg4[%c2_42, %c0_43, %c0_44] : memref<3x192x128xbf16, #tpu.memory_space<vmem>>, vector<1x192x128xbf16>
    %31 = vector.shape_cast %30 : vector<1x192x128xbf16> to vector<192x128xbf16>
    %cst_45 = arith.constant dense<0.000000e+00> : vector<256x128xf32>
    %32 = tpu.matmul %29, %31, %cst_45 {dimension_numbers = #tpu.dot_dimension_numbers<[1], [0], [0], [1], [0, 0, 1, 1], [], []>} : vector<256x192xbf16>, vector<192x128xbf16>, vector<256x128xf32> -> vector<256x128xf32>
    %33 = arith.addf %27, %32 : vector<256x128xf32>
    %c0_46 = arith.constant 0 : index
    %c0_47 = arith.constant 0 : index
    %c0_48 = arith.constant 0 : index
    %34 = vector.load %arg5[%c0_46, %c0_47, %c0_48] : memref<1x256x128xf32, #tpu.memory_space<vmem>>, vector<1x256x128xf32>
    %35 = vector.shape_cast %34 : vector<1x256x128xf32> to vector<256x128xf32>
    %36 = vector.shape_cast %33 : vector<256x128xf32> to vector<1x256x128xf32>
    tpu.vector_store %arg5[%c0_46, %c0_47, %c0_48], %36 {strides = array<i32>} : memref<1x256x128xf32, #tpu.memory_space<vmem>>, vector<1x256x128xf32>,
    return
  }
  func.func @transform_0(%arg0: i32) -> (i32, i32, i32, i32) {
    %c0_i32 = arith.constant 0 : i32
    %c0_i32_0 = arith.constant 0 : i32
    %c0_i32_1 = arith.constant 0 : i32
    %c0_i32_2 = arith.constant 0 : i32
    return %arg0, %c0_i32, %c0_i32_0, %c0_i32_1 : i32, i32, i32, i32
  }
  func.func @transform_1(%arg0: i32) -> (i32, i32, i32, i32) {
    %c0_i32 = arith.constant 0 : i32
    %c0_i32_0 = arith.constant 0 : i32
    %c0_i32_1 = arith.constant 0 : i32
    %c0_i32_2 = arith.constant 0 : i32
    %c0_i32_3 = arith.constant 0 : i32
    return %c0_i32, %c0_i32_0, %c0_i32_1, %c0_i32_2 : i32, i32, i32, i32
  }
  func.func @transform_2(%arg0: i32) -> (i32, i32, i32) {
    %c0_i32 = arith.constant 0 : i32
    %c0_i32_0 = arith.constant 0 : i32
    %c0_i32_1 = arith.constant 0 : i32
    %c0_i32_2 = arith.constant 0 : i32
    return %c0_i32, %c0_i32_0, %c0_i32_1 : i32, i32, i32
  }
  func.func @transform_3(%arg0: i32) -> (i32, i32, i32) {
    %c0_i32 = arith.constant 0 : i32
    %c0_i32_0 = arith.constant 0 : i32
    %c0_i32_1 = arith.constant 0 : i32
    %c0_i32_2 = arith.constant 0 : i32
    return %c0_i32, %c0_i32_0, %c0_i32_1 : i32, i32, i32
  }
  func.func @transform_4(%arg0: i32) -> (i32, i32, i32) {
    %c0_i32 = arith.constant 0 : i32
    %c0_i32_0 = arith.constant 0 : i32
    %c0_i32_1 = arith.constant 0 : i32
    return %arg0, %c0_i32, %c0_i32_0 : i32, i32, i32
  }
}

</mosaic_0001>

<bundles_post_ra>
// kernel: squeeze.1
= control target key start
LH: loop header
LB: loop body
LE: loop exit
PB: predicated region body
PF: predicated region fallthrough
CT: control target
= control target key end

     0   :  { %s144_s0 = inlined_call_operand.vmem [shape: f32[2,256], index: 0, kind: input, shape index: {}]   ;;  %s145_s1 = inlined_call_operand.hbm [shape: f32[2,1,16,16], index: 1, kind: output, shape index: {}]  }
   0x1   :  { %v73_v0 = vld [vmem:[%s144_s0 + $0x2] sm:$0x3]  ;;  %v9_v1 = vld [vmem:[%s144_s0] sm:$0x3] }
   0x2   :  { %8 = vst [vmem:[#allocation2 + $0x8] sm:$0x3] %v73_v0 }
   0x3   :  { %10 = vst [vmem:[#allocation2] sm:$0x3] %v9_v1 }
   0x4   :  { %2 = vsyncpa [#allocation1], 0  ;;  %s108_s0 = smov 112   ;;  %s109_s10 = smov 80   ;;  %vm12_vm0 = vcmask 130048  }
   0x5   :  { %s110_s11 = smov 48   ;;  %s111_s12 = smov 96  }
   0x6   :  { %s112_s13 = smov 64   ;;  %s113_s14 = smov 32  }
   0x7   :  { %s114_s15 = smov 16   ;;  %s115_s16 = smov [#allocation0]  }
   0x8   :  { %s64_s17 = sshll.u32 %s115_s16, 4  ;;  %s66_s1 = sshll.u32 %s145_s1, 4  ;;  %s65_s17 = int_to_ptr.vmem [resolvable:$true] %s64_s17  ;;  %s67_s1 = int_to_ptr.hbm [resolvable:$true] %s66_s1 }
   0x9   :  { %v15_v5 = vld [vmem:[#allocation2 + $0x8] sm:$0x3]  }
   0xa   :  { %v19_v2 = vld.sshfl [vmem:[#allocation2] sm:$0xff pattern:$0x99999180]   ;;  %18 = vst.msk [vmem:[#allocation0 + $0x8] ss:$16 sm:$0x3] %vm12_vm0, %v15_v5  }
   0xb   :  { %20 = vrot.lane.b32.xlu0 %v19_v2, %s108_s0  ;;  %32 = vrot.lane.b32.xlu1 %v19_v2, %s109_s10  ;;  %v11_v4 = vld [vmem:[#allocation2] sm:$0x3]  }
   0xc   :  { %44 = vrot.lane.b32.xlu2 %v19_v2, %s110_s11  ;;  %13 = vst.msk [vmem:[#allocation0] ss:$16 sm:$0x3] %vm12_vm0, %v11_v4  }
  0x13   :  { %26 = vrot.lane.b32.xlu0 %v19_v2, %s111_s12  ;;  %38 = vrot.lane.b32.xlu1 %v19_v2, %s112_s13 }
  0x14   :  { %50 = vrot.lane.b32.xlu2 %v19_v2, %s113_s14 }
  0x1b   :  { %56 = vrot.lane.b32.xlu0 %v19_v2, %s114_s15 }
  0x66   :  { %v45_v3 = vpop.permute.xlu2 %44  }
  0x67   :  { %48 = vst.msk [vmem:[#allocation0 + $0x5] ss:$8 sm:$0xf] %vm12_vm0, %v45_v3  }
  0x6e   :  { %v51_v6 = vpop.permute.xlu2 %50  }
  0x6f   :  { %54 = vst.msk [vmem:[#allocation0 + $0x6] ss:$8 sm:$0xf] %vm12_vm0, %v51_v6  }
  0x7d   :  { %v21_v7 = vpop.permute.xlu0 %20   ;;  %v33_v8 = vpop.permute.xlu1 %32  }
  0x7e   :  { %24 = vst.msk [vmem:[#allocation0 + $0x1] ss:$8 sm:$0xf] %vm12_vm0, %v21_v7  }
  0x7f   :  { %36 = vst.msk [vmem:[#allocation0 + $0x3] ss:$8 sm:$0xf] %vm12_vm0, %v33_v8  }
  0x85   :  { %v27_v9 = vpop.permute.xlu0 %26   ;;  %v39_v10 = vpop.permute.xlu1 %38  }
  0x86   :  { %30 = vst.msk [vmem:[#allocation0 + $0x2] ss:$8 sm:$0xf] %vm12_vm0, %v27_v9  }
  0x87   :  { %42 = vst.msk [vmem:[#allocation0 + $0x4] ss:$8 sm:$0xf] %vm12_vm0, %v39_v10  }
  0x8d   :  { %v57_v11 = vpop.permute.xlu0 %56  }
  0x8e   :  { %60 = vst.msk [vmem:[#allocation0 + $0x7] ss:$8 sm:$0xf] %vm12_vm0, %v57_v11  }
  0x8f   :  { %69 = dma.vmem_to_hbm [thread:$0]  %s65_s17, 512, %s67_s1, [#allocation1]  }
  0x90   :  { %106 = dma.done.wait [#allocation1], 512  }
  0x91   :  { %107 = vsyncadd [#allocation1], 4294966784 }
  0x92   :  { %72 = vsyncpa [#allocation1], 1 }

// kernel: net16_forward.1
= control target key start
LH: loop header
LB: loop body
LE: loop exit
PB: predicated region body
PF: predicated region fallthrough
CT: control target
= control target key end

     0   :  { %s6146_s15 = smov 0   ;;  %s7473_s0 = inlined_call_operand.vmem [shape: f32[2,16,16,64], index: 0, kind: input, shape index: {}]   ;;  %s7474_s1 = inlined_call_operand.vmem [shape: bf16[16,3,192,64], index: 1, kind: input, shape index: {}]   ;;  %s7475_s2 = inlined_call_operand.vmem [shape: f32[16,1,64], index: 2, kind: input, shape index: {}]   ;;  %s7476_s3 = inlined_call_operand.vmem [shape: bf16[3,192,128], index: 3, kind: input, shape index: {}]   ;;  %s7477_s4 = inlined_call_operand.vmem [shape: f32[2,256,128], index: 4, kind: output, shape index: {}]  }
   0x1 LB: > { %s4537_s16 = sadd.s32 4294967295, %s6112_s15   ;;  %p4541_p0 = scmp.ge.s32.totalorder %s6112_s15, 1  ;;  %s6112_s15 = sphi %s6146_s15, %s14_s15  }
   0x2   : > { %p162_p1 = scmp.lt.s32.totalorder %s6112_s15, 3 }
   0x4   : > { %p163_p2 = pnand %p4541_p0, %p162_p1 }
   0x6   : > { %166 = sbr.rel (%p163_p2) target bundleno = 1364 (0x554), region = 36 }
   0xb   : > { %vm199_vm0 = vcmask 523264   ;;  %p188_p3 = scmp.lt.s32.totalorder %s4537_s16, 1  ;;  %v6118_v0 = vmov 0.0   ;;  %vm202_vm1 = vcmask 517120   ;;  %s6289_s24 = smov 0  }
   0xc   : > { %204 = vst.msk [vmem:[#allocation2 + $0x18] sm:$0xff] %vm199_vm0, %v6118_v0 }
   0xd   : > { %200 = vst.msk [vmem:[#allocation2] sm:$0xff] %vm199_vm0, %v6118_v0  ;;  %s7639_s16 = smov (!%p188_p3, %s4537_s16), 1 }
   0xe   : > { %201 = vst.msk [vmem:[#allocation2 + $0x8] sm:$0xff] %vm199_vm0, %v6118_v0  ;;  %s5799_s17 = sshll.u32 %s7639_s16, 8 }
   0xf   : > { %205 = vst.msk [vmem:[#allocation2 + $0x20] sm:$0xff] %vm199_vm0, %v6118_v0  ;;  %s6167_s20 = scalar_lea.vmem %s7477_s4, %s5799_s17  ;;  %s6218_s23 = scalar_lea.vmem %s7473_s0, %s5799_s17 }
  0x10   : > { %207 = vst.msk [vmem:[#allocation2 + $0x30] sm:$0xff] %vm199_vm0, %v6118_v0  ;;  %v255_v1 = vld [vmem:[%s6218_s23] sm:$0xff]  ;;  %v256_v2 = vld [vmem:[%s6218_s23 + $0x8] sm:$0xff]  ;;  %v257_v3 = vld [vmem:[%s6218_s23 + $0x10] sm:$0xff] }
  0x11   : > { %208 = vst.msk [vmem:[#allocation2 + $0x38] sm:$0xff] %vm199_vm0, %v6118_v0  ;;  %v258_v4 = vld [vmem:[%s6218_s23 + $0x18] sm:$0xff]  ;;  %v259_v5 = vld [vmem:[%s6218_s23 + $0x20] sm:$0xff]  ;;  %v260_v6 = vld [vmem:[%s6218_s23 + $0x28] sm:$0xff] }
  0x12   : > { %210 = vst.msk [vmem:[#allocation2 + $0x48] sm:$0xff] %vm199_vm0, %v6118_v0  ;;  %v261_v7 = vld [vmem:[%s6218_s23 + $0x30] sm:$0xff]  ;;  %v262_v8 = vld [vmem:[%s6218_s23 + $0x38] sm:$0xff]  ;;  %v263_v9 = vld [vmem:[%s6218_s23 + $0x40] sm:$0xff] }
  0x13   : > { %211 = vst.msk [vmem:[#allocation2 + $0x50] sm:$0xff] %vm199_vm0, %v6118_v0  ;;  %v264_v10 = vld [vmem:[%s6218_s23 + $0x48] sm:$0xff]  ;;  %v265_v11 = vld [vmem:[%s6218_s23 + $0x50] sm:$0xff]  ;;  %v266_v12 = vld [vmem:[%s6218_s23 + $0x58] sm:$0xff] }
  0x14   : > { %213 = vst.msk [vmem:[#allocation2 + $0x60] sm:$0xff] %vm199_vm0, %v6118_v0  ;;  %v267_v13 = vld [vmem:[%s6218_s23 + $0x60] sm:$0xff]  ;;  %v268_v14 = vld [vmem:[%s6218_s23 + $0x68] sm:$0xff]  ;;  %v269_v15 = vld [vmem:[%s6218_s23 + $0x70] sm:$0xff] }
  0x15   : > { %214 = vst.msk [vmem:[#allocation2 + $0x68] sm:$0xff] %vm199_vm0, %v6118_v0  ;;  %v270_v16 = vld [vmem:[%s6218_s23 + $0x78] sm:$0xff]  ;;  %v271_v17 = vld [vmem:[%s6218_s23 + $0x80] sm:$0xff]  ;;  %v272_v18 = vld [vmem:[%s6218_s23 + $0x88] sm:$0xff] }
  0x16   : > { %216 = vst.msk [vmem:[#allocation2 + $0x78] sm:$0xff] %vm199_vm0, %v6118_v0  ;;  %v273_v19 = vld [vmem:[%s6218_s23 + $0x90] sm:$0xff]  ;;  %v274_v20 = vld [vmem:[%s6218_s23 + $0x98] sm:$0xff]  ;;  %v275_v21 = vld [vmem:[%s6218_s23 + $0xa0] sm:$0xff] }
  0x17   : > { %217 = vst.msk [vmem:[#allocation2 + $0x80] sm:$0xff] %vm199_vm0, %v6118_v0  ;;  %v276_v22 = vld [vmem:[%s6218_s23 + $0xa8] sm:$0xff]  ;;  %v277_v23 = vld [vmem:[%s6218_s23 + $0xb0] sm:$0xff]  ;;  %v278_v24 = vld [vmem:[%s6218_s23 + $0xb8] sm:$0xff] }
  0x18   : > { %219 = vst.msk [vmem:[#allocation2 + $0x90] sm:$0xff] %vm199_vm0, %v6118_v0  ;;  %v279_v25 = vld [vmem:[%s6218_s23 + $0xc0] sm:$0xff]  ;;  %v280_v26 = vld [vmem:[%s6218_s23 + $0xc8] sm:$0xff]  ;;  %v281_v27 = vld [vmem:[%s6218_s23 + $0xd0] sm:$0xff] }
  0x19   : > { %220 = vst.msk [vmem:[#allocation2 + $0x98] sm:$0xff] %vm199_vm0, %v6118_v0  ;;  %v282_v28 = vld [vmem:[%s6218_s23 + $0xd8] sm:$0xff]  ;;  %v283_v29 = vld [vmem:[%s6218_s23 + $0xe0] sm:$0xff]  ;;  %v284_v30 = vld [vmem:[%s6218_s23 + $0xe8] sm:$0xff] }
  0x1a   : > { %222 = vst.msk [vmem:[#allocation2 + $0xa8] sm:$0xff] %vm199_vm0, %v6118_v0  ;;  %v285_v31 = vld [vmem:[%s6218_s23 + $0xf0] sm:$0xff]  ;;  %v286_v32 = vld [vmem:[%s6218_s23 + $0xf8] sm:$0xff] }
  0x1b   : > { %223 = vst.msk [vmem:[#allocation2 + $0xb0] sm:$0xff] %vm199_vm0, %v6118_v0 }
  0x1c   : > { %225 = vst.msk [vmem:[#allocation2 + $0xc0] sm:$0xff] %vm199_vm0, %v6118_v0 }
  0x1d   : > { %226 = vst.msk [vmem:[#allocation2 + $0xc8] sm:$0xff] %vm199_vm0, %v6118_v0 }
  0x1e   : > { %228 = vst.msk [vmem:[#allocation2 + $0xd8] sm:$0xff] %vm199_vm0, %v6118_v0 }
  0x1f   : > { %229 = vst.msk [vmem:[#allocation2 + $0xe0] sm:$0xff] %vm199_vm0, %v6118_v0 }
  0x20   : > { %231 = vst.msk [vmem:[#allocation2 + $0xf0] sm:$0xff] %vm199_vm0, %v6118_v0 }
  0x21   : > { %232 = vst.msk [vmem:[#allocation2 + $0xf8] sm:$0xff] %vm199_vm0, %v6118_v0 }
  0x22   : > { %234 = vst.msk [vmem:[#allocation2 + $0x108] sm:$0xff] %vm199_vm0, %v6118_v0 }
  0x23   : > { %235 = vst.msk [vmem:[#allocation2 + $0x110] sm:$0xff] %vm199_vm0, %v6118_v0 }
  0x24   : > { %237 = vst.msk [vmem:[#allocation2 + $0x120] sm:$0xff] %vm199_vm0, %v6118_v0 }
  0x25   : > { %238 = vst.msk [vmem:[#allocation2 + $0x128] sm:$0xff] %vm199_vm0, %v6118_v0 }
  0x26   : > { %240 = vst.msk [vmem:[#allocation2 + $0x138] sm:$0xff] %vm199_vm0, %v6118_v0 }
  0x27   : > { %241 = vst.msk [vmem:[#allocation2 + $0x140] sm:$0xff] %vm199_vm0, %v6118_v0 }
  0x28   : > { %243 = vst.msk [vmem:[#allocation2 + $0x150] sm:$0xff] %vm199_vm0, %v6118_v0 }
  0x29   : > { %244 = vst.msk [vmem:[#allocation2 + $0x158] sm:$0xff] %vm199_vm0, %v6118_v0 }
  0x2a   : > { %246 = vst.msk [vmem:[#allocation2 + $0x168] sm:$0xff] %vm199_vm0, %v6118_v0 }
  0x2b   : > { %247 = vst.msk [vmem:[#allocation2 + $0x170] sm:$0xff] %vm199_vm0, %v6118_v0 }
  0x2c   : > { %249 = vst.msk [vmem:[#allocation2 + $0x180] sm:$0xff] %vm199_vm0, %v6118_v0 }
  0x2d   : > { %250 = vst.msk [vmem:[#allocation2 + $0x188] sm:$0xff] %vm199_vm0, %v6118_v0 }
  0x2e   : > { %252 = vst.msk [vmem:[#allocation2 + $0x198] sm:$0xff] %vm199_vm0, %v6118_v0 }
  0x2f   : > { %253 = vst.msk [vmem:[#allocation2 + $0x1a0] sm:$0xff] %vm199_vm0, %v6118_v0 }
  0x30   : > { %206 = vst.msk [vmem:[#allocation2 + $0x28] sm:$0x3] %vm202_vm1, %v6118_v0 }
  0x31   : > { %203 = vst.msk [vmem:[#allocation2 + $0x10] sm:$0x3] %vm202_vm1, %v6118_v0 }
  0x32   : > { %209 = vst.msk [vmem:[#allocation2 + $0x40] sm:$0x3] %vm202_vm1, %v6118_v0 }
  0x33   : > { %212 = vst.msk [vmem:[#allocation2 + $0x58] sm:$0x3] %vm202_vm1, %v6118_v0 }
  0x34   : > { %215 = vst.msk [vmem:[#allocation2 + $0x70] sm:$0x3] %vm202_vm1, %v6118_v0 }
  0x35   : > { %218 = vst.msk [vmem:[#allocation2 + $0x88] sm:$0x3] %vm202_vm1, %v6118_v0 }
  0x36   : > { %221 = vst.msk [vmem:[#allocation2 + $0xa0] sm:$0x3] %vm202_vm1, %v6118_v0 }
  0x37   : > { %224 = vst.msk [vmem:[#allocation2 + $0xb8] sm:$0x3] %vm202_vm1, %v6118_v0 }
  0x38   : > { %227 = vst.msk [vmem:[#allocation2 + $0xd0] sm:$0x3] %vm202_vm1, %v6118_v0 }
  0x39   : > { %230 = vst.msk [vmem:[#allocation2 + $0xe8] sm:$0x3] %vm202_vm1, %v6118_v0 }
  0x3a   : > { %233 = vst.msk [vmem:[#allocation2 + $0x100] sm:$0x3] %vm202_vm1, %v6118_v0 }
  0x3b   : > { %236 = vst.msk [vmem:[#allocation2 + $0x118] sm:$0x3] %vm202_vm1, %v6118_v0 }
  0x3c   : > { %239 = vst.msk [vmem:[#allocation2 + $0x130] sm:$0x3] %vm202_vm1, %v6118_v0 }
  0x3d   : > { %242 = vst.msk [vmem:[#allocation2 + $0x148] sm:$0x3] %vm202_vm1, %v6118_v0 }
  0x3e   : > { %245 = vst.msk [vmem:[#allocation2 + $0x160] sm:$0x3] %vm202_vm1, %v6118_v0 }
  0x3f   : > { %248 = vst.msk [vmem:[#allocation2 + $0x178] sm:$0x3] %vm202_vm1, %v6118_v0 }
  0x40   : > { %251 = vst.msk [vmem:[#allocation2 + $0x190] sm:$0x3] %vm202_vm1, %v6118_v0 }
  0x41   : > { %254 = vst.msk [vmem:[#allocation2 + $0x1a8] sm:$0x3] %vm202_vm1, %v6118_v0 }
  0x42   : > { %288 = vst.msk [vmem:[#allocation2 + $0x19] sm:$0xff] %vm199_vm0, %v255_v1 }
  0x43   : > { %289 = vst.msk [vmem:[#allocation2 + $0x21] sm:$0xff] %vm199_vm0, %v256_v2 }
  0x44   : > { %290 = vst.msk [vmem:[#allocation2 + $0x31] sm:$0xff] %vm199_vm0, %v257_v3 }
  0x45   : > { %291 = vst.msk [vmem:[#allocation2 + $0x39] sm:$0xff] %vm199_vm0, %v258_v4 }
  0x46   : > { %292 = vst.msk [vmem:[#allocation2 + $0x49] sm:$0xff] %vm199_vm0, %v259_v5 }
  0x47   : > { %293 = vst.msk [vmem:[#allocation2 + $0x51] sm:$0xff] %vm199_vm0, %v260_v6 }
  0x48   : > { %294 = vst.msk [vmem:[#allocation2 + $0x61] sm:$0xff] %vm199_vm0, %v261_v7 }
  0x49   : > { %295 = vst.msk [vmem:[#allocation2 + $0x69] sm:$0xff] %vm199_vm0, %v262_v8 }
  0x4a   : > { %296 = vst.msk [vmem:[#allocation2 + $0x79] sm:$0xff] %vm199_vm0, %v263_v9 }
  0x4b   : > { %297 = vst.msk [vmem:[#allocation2 + $0x81] sm:$0xff] %vm199_vm0, %v264_v10 }
  0x4c   : > { %298 = vst.msk [vmem:[#allocation2 + $0x91] sm:$0xff] %vm199_vm0, %v265_v11 }
  0x4d   : > { %299 = vst.msk [vmem:[#allocation2 + $0x99] sm:$0xff] %vm199_vm0, %v266_v12 }
  0x4e   : > { %300 = vst.msk [vmem:[#allocation2 + $0xa9] sm:$0xff] %vm199_vm0, %v267_v13 }
  0x4f   : > { %301 = vst.msk [vmem:[#allocation2 + $0xb1] sm:$0xff] %vm199_vm0, %v268_v14 }
  0x50   : > { %302 = vst.msk [vmem:[#allocation2 + $0xc1] sm:$0xff] %vm199_vm0, %v269_v15 }
  0x51   : > { %303 = vst.msk [vmem:[#allocation2 + $0xc9] sm:$0xff] %vm199_vm0, %v270_v16 }
  0x52   : > { %304 = vst.msk [vmem:[#allocation2 + $0xd9] sm:$0xff] %vm199_vm0, %v271_v17 }
  0x53   : > { %305 = vst.msk [vmem:[#allocation2 + $0xe1] sm:$0xff] %vm199_vm0, %v272_v18 }
  0x54   : > { %306 = vst.msk [vmem:[#allocation2 + $0xf1] sm:$0xff] %vm199_vm0, %v273_v19 }
  0x55   : > { %307 = vst.msk [vmem:[#allocation2 + $0xf9] sm:$0xff] %vm199_vm0, %v274_v20 }
  0x56   : > { %308 = vst.msk [vmem:[#allocation2 + $0x109] sm:$0xff] %vm199_vm0, %v275_v21 }
  0x57   : > { %309 = vst.msk [vmem:[#allocation2 + $0x111] sm:$0xff] %vm199_vm0, %v276_v22 }
  0x58   : > { %310 = vst.msk [vmem:[#allocation2 + $0x121] sm:$0xff] %vm199_vm0, %v277_v23 }
  0x59   : > { %311 = vst.msk [vmem:[#allocation2 + $0x129] sm:$0xff] %vm199_vm0, %v278_v24 }
  0x5a   : > { %312 = vst.msk [vmem:[#allocation2 + $0x139] sm:$0xff] %vm199_vm0, %v279_v25 }
  0x5b   : > { %313 = vst.msk [vmem:[#allocation2 + $0x141] sm:$0xff] %vm199_vm0, %v280_v26 }
  0x5c   : > { %314 = vst.msk [vmem:[#allocation2 + $0x151] sm:$0xff] %vm199_vm0, %v281_v27 }
  0x5d   : > { %315 = vst.msk [vmem:[#allocation2 + $0x159] sm:$0xff] %vm199_vm0, %v282_v28 }
  0x5e   : > { %316 = vst.msk [vmem:[#allocation2 + $0x169] sm:$0xff] %vm199_vm0, %v283_v29 }
  0x5f   : > { %317 = vst.msk [vmem:[#allocation2 + $0x171] sm:$0xff] %vm199_vm0, %v284_v30 }
  0x60   : > { %318 = vst.msk [vmem:[#allocation2 + $0x181] sm:$0xff] %vm199_vm0, %v285_v31 }
  0x61   : > { %319 = vst.msk [vmem:[#allocation2 + $0x189] sm:$0xff] %vm199_vm0, %v286_v32 }
  0x62 LB: >> { %v437_v33 = vld [vmem:[#allocation2 + $0x19] sm:$0xff]  ;;  %v435_v34 = vld [vmem:[#allocation2 + $0x1] sm:$0xff]  ;;  %vm398_vm2 = vcmask 519168   ;;  %v705_v38 = vld [vmem:[#allocation2 + $0xca] sm:$0xff]  ;;  %s5833_s25 = smul.u32 288, %s6116_s24  ;;  %s6119_s26 = smov 64   ;;  %s6116_s24 = sphi %s6289_s24, %s325_s24  }
  0x63   : >> { %v473_v35 = vpack.c.bf16 %v437_v33, %v437_v33  ;;  %v471_v36 = vpack.c.bf16 %v435_v34, %v435_v34  ;;  %v704_v37 = vld [vmem:[#allocation2 + $0xc2] sm:$0xff]  ;;  %v741_v40 = vpack.c.bf16 %v705_v38, %v705_v38  ;;  %v702_v41 = vld [vmem:[#allocation2 + $0xaa] sm:$0xff]  ;;  %v703_v42 = vld [vmem:[#allocation2 + $0xb2] sm:$0xff]  ;;  %vm651_vm3 = vcmask 1043968   ;;  %s2333_s6 = scalar_lea.vmem %s7475_s2, %s6116_s24  ;;  %s325_s24 = sadd.s32 1, %s6116_s24  }
  0x64   : >> { %v740_v39 = vpack.c.bf16 %v704_v37, %v704_v37  ;;  %v439_v43 = vld [vmem:[#allocation2 + $0x31] sm:$0xff]  ;;  %v738_v44 = vpack.c.bf16 %v702_v41, %v702_v41  ;;  %v739_v45 = vpack.c.bf16 %v703_v42, %v703_v42  ;;  %v706_v47 = vld [vmem:[#allocation2 + $0xda] sm:$0xff]  ;;  %v707_v48 = vld [vmem:[#allocation2 + $0xe2] sm:$0xff]  ;;  %s6300_s29 = scalar_lea.vmem %s7474_s1, %s5833_s25  ;;  %p322_p4 = scmp.ge.s32.totalorder %s325_s24, 16  }
  0x65   : >> { %547 = vrot.lane.b32.xlu1 %v473_v35, %s6119_s26  ;;  %543 = vrot.lane.b32.xlu0 %v471_v36, %s6119_s26  ;;  %v475_v46 = vpack.c.bf16 %v439_v43, %v439_v43  ;;  %v438_v49 = vld [vmem:[#allocation2 + $0x21] sm:$0xff]  ;;  %v436_v50 = vld [vmem:[#allocation2 + $0x9] sm:$0xff]  ;;  %v742_v51 = vpack.c.bf16 %v706_v47, %v706_v47  ;;  %v6304_v52 = vld [vmem:[%s6300_s29 + $0xb8] sm:$0xff]  ;;  %777 = vst.msk [vmem:[#allocation3 + $0x8c] sm:$0xf] %vm398_vm2, %v741_v40  ;;  %s6120_s18 = smov (%p322_p4), 64  }
  0x66   : >> { %776 = vst.msk [vmem:[#allocation3 + $0x84] sm:$0xf] %vm398_vm2, %v740_v39  ;;  %v6307_v53 = vld [vmem:[%s6300_s29 + $0x58] sm:$0xff]  ;;  %v743_v54 = vpack.c.bf16 %v707_v48, %v707_v48  ;;  %6066 = vmatpush.bf16.msra.mxu1 %v6304_v52  ;;  %v474_v55 = vpack.c.bf16 %v438_v49, %v438_v49  ;;  %v472_v56 = vpack.c.bf16 %v436_v50, %v436_v50  ;;  %v6315_v57 = vld [vmem:[%s6300_s29 + $0xb0] sm:$0xff]  ;;  %v6326_v1 = vld [vmem:[%s6300_s29 + $0xa8] sm:$0xff] }
  0x67   : >> { %551 = vrot.lane.b32.xlu2 %v475_v46, %s6119_s26  ;;  %774 = vst.msk [vmem:[#allocation3 + $0x74] sm:$0xf] %vm398_vm2, %v738_v44  ;;  %6070 = vmatpush.bf16.msra.mxu3 %v6307_v53  ;;  %v6319_v58 = vld [vmem:[%s6300_s29 + $0x50] sm:$0xff]  ;;  %v440_v59 = vld [vmem:[#allocation2 + $0x39] sm:$0xff]  ;;  %v6332_v2 = vld [vmem:[%s6300_s29 + $0x48] sm:$0xff] }
  0x68   : >> { %775 = vst.msk [vmem:[#allocation3 + $0x7c] sm:$0xf] %vm398_vm2, %v739_v45  ;;  %v708_v60 = vld [vmem:[#allocation2 + $0xf2] sm:$0xff]  ;;  %v476_v61 = vpack.c.bf16 %v440_v59, %v440_v59  ;;  %v709_v62 = vld [vmem:[#allocation2 + $0xfa] sm:$0xff]  ;;  %v441_v4 = vld [vmem:[#allocation2 + $0x49] sm:$0xff] }
  0x69   : >> { %778 = vst.msk [vmem:[#allocation3 + $0x94] sm:$0xf] %vm398_vm2, %v742_v51  ;;  %v744_v63 = vpack.c.bf16 %v708_v60, %v708_v60  ;;  %v745_v0 = vpack.c.bf16 %v709_v62, %v709_v62  ;;  %v442_v3 = vld [vmem:[#allocation2 + $0x51] sm:$0xff]  ;;  %v6337_v5 = vld [vmem:[%s6300_s29 + $0xa0] sm:$0xff]  ;;  %v477_v9 = vpack.c.bf16 %v441_v4, %v441_v4  ;;  %v444_v15 = vld [vmem:[#allocation2 + $0x69] sm:$0xff] }
  0x6a   : >> { %779 = vst.msk [vmem:[#allocation3 + $0x9c] sm:$0xf] %vm398_vm2, %v743_v54  ;;  %6067 = vmatpush.bf16.msra.mxu1 %v6315_v57  ;;  %v6340_v6 = vld [vmem:[%s6300_s29 + $0x40] sm:$0xff]  ;;  %v478_v8 = vpack.c.bf16 %v442_v3, %v442_v3  ;;  %v710_v16 = vld [vmem:[#allocation2 + $0x10a] sm:$0xff]  ;;  %v711_v17 = vld [vmem:[#allocation2 + $0x112] sm:$0xff]  ;;  %v480_v18 = vpack.c.bf16 %v444_v15, %v444_v15 }
  0x6b   : >> { %780 = vst.msk [vmem:[#allocation3 + $0xa4] sm:$0xf] %vm398_vm2, %v744_v63  ;;  %6071 = vmatpush.bf16.msra.mxu3 %v6319_v58  ;;  %v746_v19 = vpack.c.bf16 %v710_v16, %v710_v16  ;;  %v747_v20 = vpack.c.bf16 %v711_v17, %v711_v17  ;;  %v445_v27 = vld [vmem:[#allocation2 + $0x79] sm:$0xff]  ;;  %v443_v28 = vld [vmem:[#allocation2 + $0x61] sm:$0xff]  ;;  %v713_v32 = vld [vmem:[#allocation2 + $0x12a] sm:$0xff] }
  0x6c   : >> { %781 = vst.msk [vmem:[#allocation3 + $0xac] sm:$0xf] %vm398_vm2, %v745_v0  ;;  %v4632_v10 = vld [vmem:[#allocation3 + $0x88] sm:$0xf0]  ;;  %v712_v29 = vld [vmem:[#allocation2 + $0x122] sm:$0xff]  ;;  %v481_v30 = vpack.c.bf16 %v445_v27, %v445_v27  ;;  %v479_v31 = vpack.c.bf16 %v443_v28, %v443_v28  ;;  %v749_v34 = vpack.c.bf16 %v713_v32, %v713_v32  ;;  %v447_v42 = vld [vmem:[#allocation2 + $0x91] sm:$0xff] }
  0x6d   : >> { %549 = vrot.lane.b32.xlu1 %v474_v55, %s6119_s26  ;;  %545 = vrot.lane.b32.xlu0 %v472_v56, %s6119_s26  ;;  %v5860_v7 = vld [vmem:[#allocation3 + $0x84] sm:$0xf]  ;;  %782 = vst.msk [vmem:[#allocation3 + $0xb4] sm:$0xf] %vm398_vm2, %v746_v19  ;;  %v4832_v24 = vld [vmem:[#allocation3 + $0x88] sm:$0xf0]  ;;  %v748_v33 = vpack.c.bf16 %v712_v29, %v712_v29  ;;  %v483_v45 = vpack.c.bf16 %v447_v42, %v447_v42 }
  0x6e   : >> { %6068 = vmatpush.bf16.msra.mxu1 %v6326_v1  ;;  %v5815_v11 = vld [vmem:[#allocation3 + $0x74] sm:$0xf]  ;;  %v4635_v13 = vor.u32 %v5860_v7, %v4632_v10  ;;  %783 = vst.msk [vmem:[#allocation3 + $0xbc] sm:$0xf] %vm398_vm2, %v747_v20  ;;  %v5817_v21 = vld [vmem:[#allocation3 + $0x84] sm:$0xf] }
  0x6f   : >> { %553 = vrot.lane.b32.xlu2 %v476_v61, %s6119_s26  ;;  %6072 = vmatpush.bf16.msra.mxu3 %v6332_v2  ;;  %v4824_v12 = vld [vmem:[#allocation3 + $0x78] sm:$0xf0]  ;;  %v4835_v26 = vor.u32 %v5817_v21, %v4832_v24  ;;  %784 = vst.msk [vmem:[#allocation3 + $0xc4] sm:$0xf] %vm398_vm2, %v748_v33  ;;  %v448_v41 = vld [vmem:[#allocation2 + $0x99] sm:$0xff]  ;;  %v446_v43 = vld [vmem:[#allocation2 + $0x81] sm:$0xff] }
  0x70   : >> { %v4827_v14 = vor.u32 %v5815_v11, %v4824_v12  ;;  %v5862_v22 = vld [vmem:[#allocation3 + $0x94] sm:$0xf]  ;;  %785 = vst.msk [vmem:[#allocation3 + $0xcc] sm:$0xf] %vm398_vm2, %v749_v34  ;;  %v484_v44 = vpack.c.bf16 %v448_v41, %v448_v41  ;;  %v482_v46 = vpack.c.bf16 %v446_v43, %v446_v43  ;;  %v714_v47 = vld [vmem:[#allocation2 + $0x13a] sm:$0xff]  ;;  %v450_v0 = vld [vmem:[#allocation2 + $0xb1] sm:$0xff] }
  0x71   : >> { %v4640_v23 = vld [vmem:[#allocation3 + $0x98] sm:$0xf0]  ;;  %v5819_v37 = vld [vmem:[#allocation3 + $0x94] sm:$0xf]  ;;  %v750_v49 = vpack.c.bf16 %v714_v47, %v714_v47  ;;  %v5933_v61 = vld [vmem:[%s6300_s29 + $0x118] sm:$0xff]  ;;  %v486_v3 = vpack.c.bf16 %v450_v0, %v450_v0 }
  0x72   : >> { %6069 = vmatpush.bf16.msra.mxu1 %v6337_v5  ;;  %v4643_v25 = vor.u32 %v5862_v22, %v4640_v23  ;;  %v5864_v35 = vld [vmem:[#allocation3 + $0xa4] sm:$0xf]  ;;  %v4840_v38 = vld [vmem:[#allocation3 + $0x98] sm:$0xf0]  ;;  %v715_v48 = vld [vmem:[#allocation2 + $0x142] sm:$0xff] }
  0x73   : >> { %6073 = vmatpush.bf16.msra.mxu3 %v6340_v6  ;;  %v4648_v36 = vld [vmem:[#allocation3 + $0xa8] sm:$0xf0]  ;;  %v4843_v40 = vor.u32 %v5819_v37, %v4840_v38  ;;  %v751_v50 = vpack.c.bf16 %v715_v48, %v715_v48  ;;  %786 = vst.msk [vmem:[#allocation3 + $0xd4] sm:$0xf] %vm398_vm2, %v750_v49  ;;  %v5821_v55 = vld [vmem:[#allocation3 + $0xa4] sm:$0xf] }
  0x74   : >> { %v4651_v39 = vor.u32 %v5864_v35, %v4648_v36  ;;  %v5866_v51 = vld [vmem:[#allocation3 + $0xb4] sm:$0xf]  ;;  %v4848_v56 = vld [vmem:[#allocation3 + $0xa8] sm:$0xf0]  ;;  %v5884_v4 = vld [vmem:[%s6300_s29 + $0x90] sm:$0xff] }
  0x75   : >> { %557 = vrot.lane.b32.xlu1 %v478_v8, %s6119_s26  ;;  %555 = vrot.lane.b32.xlu0 %v477_v9, %s6119_s26  ;;  %787 = vst.msk [vmem:[#allocation3 + $0xdc] sm:$0xf] %vm398_vm2, %v751_v50  ;;  %v4656_v54 = vld [vmem:[#allocation3 + $0xb8] sm:$0xf0]  ;;  %v4851_v60 = vor.u32 %v5821_v55, %v4848_v56  ;;  %v5885_v62 = vld [vmem:[%s6300_s29 + $0x98] sm:$0xff]  ;;  %v5840_v8 = vld [vmem:[%s6300_s29 + $0x30] sm:$0xff] }
  0x76   : >> { %4755 = vmatmul.msk.bf16.vlgmr.msra.gmra.mxu1 %vm199_vm0, %v4635_v13  ;;  %4947 = vmatmul.msk.bf16.vlgmr.msra.gmra.mxu3 %vm199_vm0, %v4827_v14  ;;  %v4659_v59 = vor.u32 %v5866_v51, %v4656_v54  ;;  %v5841_v63 = vld [vmem:[%s6300_s29 + $0x38] sm:$0xff]  ;;  %v5883_v13 = vld [vmem:[%s6300_s29 + $0x88] sm:$0xff]  ;;  %v5868_v15 = vld [vmem:[#allocation3 + $0xc4] sm:$0xf] }
  0x77   : >> { %559 = vrot.lane.b32.xlu2 %v479_v31, %s6119_s26  ;;  %2216 = vmatpush.bf16.msrb.mxu3 %v5933_v61  ;;  %v5929_v7 = vld [vmem:[%s6300_s29 + $0xf8] sm:$0xff]  ;;  %v5839_v14 = vld [vmem:[%s6300_s29 + $0x28] sm:$0xff]  ;;  %v5823_v17 = vld [vmem:[#allocation3 + $0xb4] sm:$0xf] }
  0x78   : >> { %1179 = vmatpush.bf16.msra.mxu0 %v5885_v62  ;;  %1621 = vmatpush.bf16.msra.mxu2 %v5841_v63  ;;  %v716_v9 = vld [vmem:[#allocation2 + $0x152] sm:$0xff]  ;;  %v717_v10 = vld [vmem:[#allocation2 + $0x15a] sm:$0xff]  ;;  %v718_v31 = vld [vmem:[#allocation2 + $0x16a] sm:$0xff] }
  0x79   : >> { %2123 = vmatpush.bf16.msrb.mxu1 %v5929_v7  ;;  %v752_v11 = vpack.c.bf16 %v716_v9, %v716_v9  ;;  %v753_v12 = vpack.c.bf16 %v717_v10, %v717_v10  ;;  %v4664_v16 = vld [vmem:[#allocation3 + $0xc8] sm:$0xf0]  ;;  %v326_v21 = vld [vmem:[#allocation2] sm:$0xff]  ;;  %v719_v32 = vld [vmem:[#allocation2 + $0x172] sm:$0xff]  ;;  %v754_v35 = vpack.c.bf16 %v718_v31, %v718_v31 }
  0x7a   : >> { %v4667_v19 = vor.u32 %v5868_v15, %v4664_v16  ;;  %v362_v22 = vpack.c.bf16 %v326_v21, %v326_v21  ;;  %v5882_v23 = vld [vmem:[%s6300_s29 + $0x80] sm:$0xff]  ;;  %v5881_v27 = vld [vmem:[%s6300_s29 + $0x78] sm:$0xff]  ;;  %v327_v34 = vld [vmem:[#allocation2 + $0x8] sm:$0xff] }
  0x7b   : >> { %788 = vst.msk [vmem:[#allocation3 + $0xe4] sm:$0xf] %vm398_vm2, %v752_v11  ;;  %v5838_v24 = vld [vmem:[%s6300_s29 + $0x20] sm:$0xff]  ;;  %v5837_v28 = vld [vmem:[%s6300_s29 + $0x18] sm:$0xff]  ;;  %v363_v37 = vpack.c.bf16 %v327_v34, %v327_v34  ;;  %v5880_v38 = vld [vmem:[%s6300_s29 + $0x70] sm:$0xff] }
  0x7c   : >> { %1180 = vmatpush.bf16.msra.mxu0 %v5884_v4  ;;  %1622 = vmatpush.bf16.msra.mxu2 %v5840_v8  ;;  %789 = vst.msk [vmem:[#allocation3 + $0xec] sm:$0xf] %vm398_vm2, %v753_v12  ;;  %v451_v29 = vld [vmem:[#allocation2 + $0xc1] sm:$0xff]  ;;  %v4672_v42 = vld [vmem:[#allocation3 + $0xd8] sm:$0xf0]  ;;  %v331_v55 = vld [vmem:[#allocation2 + $0x38] sm:$0xff] }
  0x7d   : >> { %561 = vrot.lane.b32.xlu0 %v480_v18, %s6119_s26  ;;  %563 = vrot.lane.b32.xlu1 %v481_v30, %s6119_s26  ;;  %v4856_v18 = vld [vmem:[#allocation3 + $0xb8] sm:$0xf0]  ;;  %399 = vst.msk [vmem:[#allocation3] sm:$0xf] %vm398_vm2, %v362_v22  ;;  %v487_v30 = vpack.c.bf16 %v451_v29, %v451_v29  ;;  %v329_v33 = vld [vmem:[#allocation2 + $0x20] sm:$0xff]  ;;  %v5932_v4 = vld [vmem:[%s6300_s29 + $0x110] sm:$0xff] }
  0x7e   : >> { %v4859_v20 = vor.u32 %v5823_v17, %v4856_v18  ;;  %v365_v36 = vpack.c.bf16 %v329_v33, %v329_v33  ;;  %790 = vst.msk [vmem:[#allocation3 + $0xf4] sm:$0xf] %vm398_vm2, %v754_v35  ;;  %v5870_v41 = vld [vmem:[#allocation3 + $0xd4] sm:$0xf]  ;;  %v5825_v43 = vld [vmem:[#allocation3 + $0xc4] sm:$0xf]  ;;  %2217 = vmatpush.bf16.msrb.mxu3 %v5932_v4 }
  0x7f   : >> { %565 = vrot.lane.b32.xlu2 %v482_v46, %s6119_s26  ;;  %400 = vst.msk [vmem:[#allocation3 + $0x8] sm:$0xf] %vm398_vm2, %v363_v37  ;;  %v5928_v46 = vld [vmem:[%s6300_s29 + $0xf0] sm:$0xff]  ;;  %v5879_v47 = vld [vmem:[%s6300_s29 + $0x68] sm:$0xff]  ;;  %v4864_v48 = vld [vmem:[#allocation3 + $0xc8] sm:$0xf0]  ;;  %v4675_v61 = vor.u32 %v5870_v41, %v4672_v42 }
  0x80   : >> { %1181 = vmatpush.bf16.msra.mxu0 %v5883_v13  ;;  %1623 = vmatpush.bf16.msra.mxu2 %v5839_v14  ;;  %402 = vst.msk [vmem:[#allocation3 + $0x18] sm:$0xf] %vm398_vm2, %v365_v36  ;;  %v5835_v50 = vld [vmem:[%s6300_s29 + $0x8] sm:$0xff]  ;;  %v5878_v56 = vld [vmem:[%s6300_s29 + $0x60] sm:$0xff]  ;;  %v4867_v62 = vor.u32 %v5825_v43, %v4864_v48 }
  0x81   : >> { %v449_v51 = vld [vmem:[#allocation2 + $0xa9] sm:$0xff]  ;;  %2124 = vmatpush.bf16.msrb.mxu1 %v5928_v46  ;;  %v454_v0 = vld [vmem:[#allocation2 + $0xe1] sm:$0xff] }
  0x82   : >> { %v485_v54 = vpack.c.bf16 %v449_v51, %v449_v51  ;;  %v490_v7 = vpack.c.bf16 %v454_v0, %v454_v0  ;;  %v5927_v9 = vld [vmem:[%s6300_s29 + $0xe8] sm:$0xff]  ;;  %v5827_v16 = vld [vmem:[#allocation3 + $0xd4] sm:$0xf]  ;;  %v5829_v34 = vld [vmem:[#allocation3 + $0xe4] sm:$0xf] }
  0x83   : >> { %v452_v10 = vld [vmem:[#allocation2 + $0xc9] sm:$0xff]  ;;  %v4680_v15 = vld [vmem:[#allocation3 + $0xe8] sm:$0xf0]  ;;  %v5926_v18 = vld [vmem:[%s6300_s29 + $0xe0] sm:$0xff] }
  0x84   : >> { %1182 = vmatpush.bf16.msra.mxu0 %v5882_v23  ;;  %1624 = vmatpush.bf16.msra.mxu2 %v5838_v24  ;;  %v720_v11 = vld [vmem:[#allocation2 + $0x182] sm:$0xff]  ;;  %v488_v12 = vpack.c.bf16 %v452_v10, %v452_v10  ;;  %v721_v13 = vld [vmem:[#allocation2 + $0x18a] sm:$0xff]  ;;  %v692_v23 = vld [vmem:[#allocation2 + $0x32] sm:$0xff] }
  0x85   : >> { %569 = vrot.lane.b32.xlu1 %v484_v44, %s6119_s26  ;;  %567 = vrot.lane.b32.xlu0 %v483_v45, %s6119_s26  ;;  %v330_v45 = vld [vmem:[#allocation2 + $0x30] sm:$0xff]  ;;  %v756_v14 = vpack.c.bf16 %v720_v11, %v720_v11  ;;  %v4872_v17 = vld [vmem:[#allocation3 + $0xd8] sm:$0xf0]  ;;  %v5874_v33 = vld [vmem:[#allocation3 + $0xf4] sm:$0xf] }
  0x86   : >> { %4756 = vmatmul.msk.bf16.gmra.mxu1 %vm199_vm0, %v4643_v25  ;;  %4948 = vmatmul.msk.bf16.gmra.mxu3 %vm199_vm0, %v4835_v26  ;;  %v328_v25 = vld [vmem:[#allocation2 + $0x18] sm:$0xff]  ;;  %v366_v49 = vpack.c.bf16 %v330_v45, %v330_v45  ;;  %v333_v24 = vld [vmem:[#allocation2 + $0x50] sm:$0xff]  ;;  %v5922_v37 = vld [vmem:[%s6300_s29 + $0xc0] sm:$0xff] }
  0x87   : >> { %v364_v26 = vpack.c.bf16 %v328_v25, %v328_v25  ;;  %571 = vrot.lane.b32.xlu2 %v485_v54, %s6119_s26  ;;  %2125 = vmatpush.bf16.msrb.mxu1 %v5927_v9  ;;  %792 = vst.msk [vmem:[#allocation3 + $0x104] sm:$0xf] %vm398_vm2, %v756_v14  ;;  %v332_v25 = vld [vmem:[#allocation2 + $0x48] sm:$0xff]  ;;  %v4880_v36 = vld [vmem:[#allocation3 + $0xe8] sm:$0xf0]  ;;  %v334_v54 = vld [vmem:[#allocation2 + $0x60] sm:$0xff] }
  0x88   : >> { %1183 = vmatpush.bf16.msra.mxu0 %v5881_v27  ;;  %1625 = vmatpush.bf16.msra.mxu2 %v5837_v28  ;;  %403 = vst.msk [vmem:[#allocation3 + $0x20] sm:$0xf] %vm398_vm2, %v366_v49  ;;  %v728_v27 = vpack.c.bf16 %v692_v23, %v692_v23  ;;  %v5931_v28 = vld [vmem:[%s6300_s29 + $0x108] sm:$0xff]  ;;  %v368_v31 = vpack.c.bf16 %v332_v25, %v332_v25  ;;  %v5831_v4 = vld [vmem:[#allocation3 + $0xf4] sm:$0xf]  ;;  %v455_v9 = vld [vmem:[#allocation2 + $0xf1] sm:$0xff] }
  0x89   : >> { %401 = vst.msk [vmem:[#allocation3 + $0x10] sm:$0xf] %vm398_vm2, %v364_v26  ;;  %v693_v26 = vld [vmem:[#allocation2 + $0x3a] sm:$0xff]  ;;  %2218 = vmatpush.bf16.msrb.mxu3 %v5931_v28  ;;  %v457_v49 = vld [vmem:[#allocation2 + $0x109] sm:$0xff]  ;;  %v491_v10 = vpack.c.bf16 %v455_v9, %v455_v9 }
  0x8a   : >> { %764 = vst.msk [vmem:[#allocation3 + $0x24] sm:$0xf] %vm398_vm2, %v728_v27  ;;  %v694_v51 = vld [vmem:[#allocation2 + $0x4a] sm:$0xff] }
  0x8b   : >> { %2126 = vmatpush.bf16.msrb.mxu1 %v5926_v18  ;;  %405 = vst.msk [vmem:[#allocation3 + $0x30] sm:$0xf] %vm398_vm2, %v368_v31  ;;  %v460_v18 = vld [vmem:[#allocation2 + $0x129] sm:$0xff] }
  0x8c   : >> { %1184 = vmatpush.bf16.msra.mxu0 %v5880_v38  ;;  %v5930_v38 = vld [vmem:[%s6300_s29 + $0x100] sm:$0xff] }
  0x8d   : >> { %573 = vrot.lane.b32.xlu0 %v486_v3, %s6119_s26  ;;  %575 = vrot.lane.b32.xlu1 %v487_v30, %s6119_s26  ;;  %v453_v3 = vld [vmem:[#allocation2 + $0xd9] sm:$0xff] }
  0x8e   : >> { %v489_v8 = vpack.c.bf16 %v453_v3, %v453_v3  ;;  %2219 = vmatpush.bf16.msrb.mxu3 %v5930_v38  ;;  %v5876_v3 = vld [vmem:[#allocation3 + $0x104] sm:$0xf] }
  0x8f   : >> { %577 = vrot.lane.b32.xlu2 %v488_v12, %s6119_s26 }
  0x90   : >> { %1185 = vmatpush.bf16.msra.mxu0 %v5879_v47 }
  0x91   : >> { %v5890_v28 = vld [vmem:[#allocation3 + $0x24] sm:$0xf] }
  0x94   : >> { %1186 = vmatpush.bf16.msra.mxu0 %v5878_v56  ;;  %v695_v56 = vld [vmem:[#allocation2 + $0x52] sm:$0xff] }
  0x95   : >> { %581 = vrot.lane.b32.xlu1 %v490_v7, %s6119_s26  ;;  %579 = vrot.lane.b32.xlu0 %v489_v8, %s6119_s26  ;;  %v731_v0 = vpack.c.bf16 %v695_v56, %v695_v56 }
  0x96   : >> { %4757 = vmatmul.msk.bf16.gmra.mxu1 %vm199_vm0, %v4651_v39  ;;  %4949 = vmatmul.msk.bf16.gmra.mxu3 %vm199_vm0, %v4843_v40  ;;  %v5836_v39 = vld [vmem:[%s6300_s29 + $0x10] sm:$0xff]  ;;  %v755_v40 = vpack.c.bf16 %v719_v32, %v719_v32  ;;  %v729_v32 = vpack.c.bf16 %v693_v26, %v693_v26 }
  0x97   : >> { %1626 = vmatpush.bf16.msra.mxu2 %v5836_v39  ;;  %767 = vst.msk [vmem:[#allocation3 + $0x3c] sm:$0xf] %vm398_vm2, %v731_v0  ;;  %583 = vrot.lane.b32.xlu2 %v491_v10, %s6119_s26 }
  0x98   : >> { %791 = vst.msk [vmem:[#allocation3 + $0xfc] sm:$0xf] %vm398_vm2, %v755_v40  ;;  %1272 = vmatpush.bf16.msrb.mxu0 %v6304_v52  ;;  %v5872_v52 = vld [vmem:[#allocation3 + $0xe4] sm:$0xf]  ;;  %v4883_v40 = vor.u32 %v5829_v34, %v4880_v36 }
  0x99   : >> { %765 = vst.msk [vmem:[#allocation3 + $0x2c] sm:$0xf] %vm398_vm2, %v729_v32  ;;  %v458_v32 = vld [vmem:[#allocation2 + $0x111] sm:$0xff] }
  0x9a   : >> { %v494_v36 = vpack.c.bf16 %v458_v32, %v458_v32 }
  0x9b   : >> { %1627 = vmatpush.bf16.msra.mxu2 %v5835_v50  ;;  %v493_v50 = vpack.c.bf16 %v457_v49, %v457_v49  ;;  %v338_v49 = vld [vmem:[#allocation2 + $0x90] sm:$0xff] }
  0x9c   : >> { %1273 = vmatpush.bf16.msrb.mxu0 %v6315_v57  ;;  %v456_v57 = vld [vmem:[#allocation2 + $0xf9] sm:$0xff] }
  0x9d   : >> { %587 = vrot.lane.b32.xlu1 %v493_v50, %s6119_s26  ;;  %v699_v50 = vld [vmem:[#allocation2 + $0x82] sm:$0xff] }
  0x9f   : >> { %v4688_v35 = vld [vmem:[#allocation3 + $0xf8] sm:$0xf0]  ;;  %589 = vrot.lane.b32.xlu2 %v494_v36, %s6119_s26 }
  0xa0   : >> { %1274 = vmatpush.bf16.msrb.mxu0 %v6326_v1  ;;  %v492_v1 = vpack.c.bf16 %v456_v57, %v456_v57  ;;  %v4691_v39 = vor.u32 %v5874_v33, %v4688_v35  ;;  %v4888_v8 = vld [vmem:[#allocation3 + $0xf8] sm:$0xf0]  ;;  %v337_v57 = vld [vmem:[#allocation2 + $0x80] sm:$0xff] }
  0xa1   : >> { %v4891_v12 = vor.u32 %v5831_v4, %v4888_v8  ;;  %v373_v26 = vpack.c.bf16 %v337_v57, %v337_v57 }
  0xa2   : >> { %585 = vrot.lane.b32.xlu0 %v492_v1, %s6119_s26  ;;  %v336_v1 = vld [vmem:[#allocation2 + $0x78] sm:$0xff] }
  0xa3   : >> { %v372_v27 = vpack.c.bf16 %v336_v1, %v336_v1  ;;  %410 = vst.msk [vmem:[#allocation3 + $0x58] sm:$0xf] %vm398_vm2, %v373_v26 }
  0xa4   : >> { %1275 = vmatpush.bf16.msrb.mxu0 %v6337_v5  ;;  %v369_v5 = vpack.c.bf16 %v333_v24, %v333_v24 }
  0xa5   : >> { %409 = vst.msk [vmem:[#allocation3 + $0x50] sm:$0xf] %vm398_vm2, %v372_v27 }
  0xa6   : >> { %4758 = vmatmul.msk.bf16.gmra.mxu1 %vm199_vm0, %v4659_v59  ;;  %4950 = vmatmul.msk.bf16.gmra.mxu3 %vm199_vm0, %v4851_v60  ;;  %v5834_v59 = vld [vmem:[%s6300_s29] sm:$0xff]  ;;  %v367_v60 = vpack.c.bf16 %v331_v55, %v331_v55  ;;  %406 = vst.msk [vmem:[#allocation3 + $0x38] sm:$0xf] %vm398_vm2, %v369_v5  ;;  %v335_v55 = vld [vmem:[#allocation2 + $0x68] sm:$0xff] }
  0xa7   : >> { %1628 = vmatpush.bf16.msra.mxu2 %v5834_v59  ;;  %v730_v59 = vpack.c.bf16 %v694_v51, %v694_v51 }
  0xa8   : >> { %404 = vst.msk [vmem:[#allocation3 + $0x28] sm:$0xf] %vm398_vm2, %v367_v60 }
  0xa9   : >> { %766 = vst.msk [vmem:[#allocation3 + $0x34] sm:$0xf] %vm398_vm2, %v730_v59  ;;  %v374_v59 = vpack.c.bf16 %v338_v49, %v338_v49  ;;  %v343_v49 = vld [vmem:[#allocation2 + $0xc8] sm:$0xff] }
  0xab   : >> { %1714 = vmatpush.bf16.msrb.mxu2 %v6307_v53  ;;  %v757_v53 = vpack.c.bf16 %v721_v13, %v721_v13  ;;  %411 = vst.msk [vmem:[#allocation3 + $0x60] sm:$0xf] %vm398_vm2, %v374_v59 }
  0xad   : >> { %793 = vst.msk [vmem:[#allocation3 + $0x10c] sm:$0xf] %vm398_vm2, %v757_v53 }
  0xaf   : >> { %1715 = vmatpush.bf16.msrb.mxu2 %v6319_v58  ;;  %v5925_v58 = vld [vmem:[%s6300_s29 + $0xd8] sm:$0xff] }
  0xb0   : >> { %2127 = vmatpush.bf16.msrb.mxu1 %v5925_v58  ;;  %v696_v58 = vld [vmem:[#allocation2 + $0x62] sm:$0xff] }
  0xb1   : >> { %v732_v23 = vpack.c.bf16 %v696_v58, %v696_v58 }
  0xb3   : >> { %1716 = vmatpush.bf16.msrb.mxu2 %v6332_v2  ;;  %v5924_v2 = vld [vmem:[%s6300_s29 + $0xd0] sm:$0xff]  ;;  %768 = vst.msk [vmem:[#allocation3 + $0x44] sm:$0xf] %vm398_vm2, %v732_v23 }
  0xb4   : >> { %2128 = vmatpush.bf16.msrb.mxu1 %v5924_v2  ;;  %v4696_v7 = vld [vmem:[#allocation3 + $0x108] sm:$0xf0]  ;;  %v697_v2 = vld [vmem:[#allocation2 + $0x6a] sm:$0xff] }
  0xb5   : >> { %v4699_v11 = vor.u32 %v5876_v3, %v4696_v7 }
  0xb6   : >> { %4759 = vmatmul.msk.bf16.gmra.mxu1 %vm199_vm0, %v4667_v19  ;;  %4951 = vmatmul.msk.bf16.gmra.mxu3 %vm199_vm0, %v4859_v20  ;;  %v4683_v19 = vor.u32 %v5872_v52, %v4680_v15  ;;  %v4875_v20 = vor.u32 %v5827_v16, %v4872_v17 }
  0xb7   : >> { %1717 = vmatpush.bf16.msrb.mxu2 %v6340_v6  ;;  %v5923_v6 = vld [vmem:[%s6300_s29 + $0xc8] sm:$0xff] }
  0xb8   : >> { %2129 = vmatpush.bf16.msrb.mxu1 %v5923_v6  ;;  %v733_v6 = vpack.c.bf16 %v697_v2, %v697_v2 }
  0xba   : >> { %769 = vst.msk [vmem:[#allocation3 + $0x4c] sm:$0xf] %vm398_vm2, %v733_v6  ;;  %v5894_v27 = vld [vmem:[#allocation3 + $0x44] sm:$0xf] }
  0xbc   : >> { %2130 = vmatpush.bf16.msrb.mxu1 %v5922_v37 }
  0xc1   : >> { %v552_v44 = vpop.permute.xlu2 %551 }
  0xc2   : >> { %656 = vst.msk [vmem:[#allocation3 + $0x20] sm:$0xf] %vm651_vm3, %v552_v44 }
  0xc6   : >> { %4760 = vmatmul.msk.bf16.gmra.mxu1 %vm199_vm0, %v4675_v61  ;;  %4952 = vmatmul.msk.bf16.gmra.mxu3 %vm199_vm0, %v4867_v62  ;;  %v370_v61 = vpack.c.bf16 %v334_v54, %v334_v54  ;;  %v371_v62 = vpack.c.bf16 %v335_v55, %v335_v55 }
  0xc8   : >> { %407 = vst.msk [vmem:[#allocation3 + $0x40] sm:$0xf] %vm398_vm2, %v370_v61  ;;  %v735_v61 = vpack.c.bf16 %v699_v50, %v699_v50  ;;  %v342_v50 = vld [vmem:[#allocation2 + $0xc0] sm:$0xff] }
  0xc9   : >> { %v554_v63 = vpop.permute.xlu2 %553  ;;  %408 = vst.msk [vmem:[#allocation3 + $0x48] sm:$0xf] %vm398_vm2, %v371_v62  ;;  %v4582_v13 = vld [vmem:[#allocation3 + $0x20] sm:$0xf]  ;;  %v5892_v62 = vld [vmem:[#allocation3 + $0x34] sm:$0xf]  ;;  %v378_v59 = vpack.c.bf16 %v342_v50, %v342_v50 }
  0xca   : >> { %657 = vst.msk [vmem:[#allocation3 + $0x28] sm:$0xf] %vm651_vm3, %v554_v63  ;;  %v4983_v34 = vld [vmem:[#allocation3 + $0x20] sm:$0xf] }
  0xcb   : >> { %771 = vst.msk [vmem:[#allocation3 + $0x5c] sm:$0xf] %vm398_vm2, %v735_v61 }
  0xcc   : >> { %415 = vst.msk [vmem:[#allocation3 + $0x80] sm:$0xf] %vm398_vm2, %v378_v59 }
  0xd1   : >> { %v560_v60 = vpop.permute.xlu2 %559  ;;  %v5849_v14 = vld [vmem:[#allocation3 + $0x24] sm:$0xf0] }
  0xd2   : >> { %660 = vst.msk [vmem:[#allocation3 + $0x40] sm:$0xf] %vm651_vm3, %v560_v60  ;;  %v4583_v15 = vor.u32 %v5849_v14, %v4582_v13  ;;  %v5891_v35 = vld [vmem:[#allocation3 + $0x24] sm:$0xf0] }
  0xd6   : >> { %4761 = vmatmul.msk.bf16.gmra.mxu1 %vm199_vm0, %v4683_v19  ;;  %4953 = vmatmul.msk.bf16.gmra.mxu3 %vm199_vm0, %v4875_v20  ;;  %v459_v19 = vld [vmem:[#allocation2 + $0x121] sm:$0xff] }
  0xd7   : >> { %v548_v21 = vpop.permute.xlu1 %547  ;;  %v544_v22 = vpop.permute.xlu0 %543 }
  0xd8   : >> { %654 = vst.msk [vmem:[#allocation3 + $0x10] sm:$0xf] %vm651_vm3, %v548_v21  ;;  %v496_v21 = vpack.c.bf16 %v460_v18, %v460_v18  ;;  %v700_v18 = vld [vmem:[#allocation2 + $0x92] sm:$0xff] }
  0xd9   : >> { %652 = vst.msk [vmem:[#allocation3] sm:$0xf] %vm651_vm3, %v544_v22  ;;  %v495_v22 = vpack.c.bf16 %v459_v19, %v459_v19  ;;  %v566_v25 = vpop.permute.xlu2 %565  ;;  %v4598_v0 = vld [vmem:[#allocation3 + $0x40] sm:$0xf]  ;;  %v340_v19 = vld [vmem:[#allocation2 + $0xa8] sm:$0xff]  ;;  %v736_v58 = vpack.c.bf16 %v700_v18, %v700_v18 }
  0xda   : >> { %593 = vrot.lane.b32.xlu1 %v496_v21, %s6119_s26  ;;  %663 = vst.msk [vmem:[#allocation3 + $0x58] sm:$0xf] %vm651_vm3, %v566_v25  ;;  %v341_v21 = vld [vmem:[#allocation2 + $0xb0] sm:$0xff]  ;;  %v376_v1 = vpack.c.bf16 %v340_v19, %v340_v19 }
  0xdb   : >> { %591 = vrot.lane.b32.xlu0 %v495_v22, %s6119_s26  ;;  %v701_v22 = vld [vmem:[#allocation2 + $0x9a] sm:$0xff]  ;;  %v377_v2 = vpack.c.bf16 %v341_v21, %v341_v21  ;;  %772 = vst.msk [vmem:[#allocation3 + $0x64] sm:$0xf] %vm398_vm2, %v736_v58  ;;  %v468_v19 = vld [vmem:[#allocation2 + $0x189] sm:$0xff] }
  0xdc   : >> { %413 = vst.msk [vmem:[#allocation3 + $0x70] sm:$0xf] %vm398_vm2, %v376_v1  ;;  %v737_v26 = vpack.c.bf16 %v701_v22, %v701_v22  ;;  %v504_v22 = vpack.c.bf16 %v468_v19, %v468_v19  ;;  %v345_v58 = vld [vmem:[#allocation2 + $0xe0] sm:$0xff]  ;;  %v344_v1 = vld [vmem:[#allocation2 + $0xd8] sm:$0xff] }
  0xdd   : >> { %414 = vst.msk [vmem:[#allocation3 + $0x78] sm:$0xf] %vm398_vm2, %v377_v2 }
  0xde   : >> { %773 = vst.msk [vmem:[#allocation3 + $0x6c] sm:$0xf] %vm398_vm2, %v737_v26 }
  0xdf   : >> { %v550_v29 = vpop.permute.xlu1 %549  ;;  %v546_v30 = vpop.permute.xlu0 %545  ;;  %v4574_v41 = vld [vmem:[#allocation3 + $0x10] sm:$0xf] }
  0xe0   : >> { %655 = vst.msk [vmem:[#allocation3 + $0x18] sm:$0xf] %vm651_vm3, %v550_v29  ;;  %v4766_v46 = vld [vmem:[#allocation3] sm:$0xf]  ;;  %v4774_v16 = vld [vmem:[#allocation3 + $0x10] sm:$0xf] }
  0xe1   : >> { %653 = vst.msk [vmem:[#allocation3 + $0x8] sm:$0xf] %vm651_vm3, %v546_v30  ;;  %v4985_v29 = vld [vmem:[#allocation3 + $0x28] sm:$0xf0]  ;;  %v572_v23 = vpop.permute.xlu2 %571  ;;  %v5855_v6 = vld [vmem:[#allocation3 + $0x54] sm:$0xf0] }
  0xe2   : >> { %v4988_v37 = vor.u32 %v5890_v28, %v4985_v29  ;;  %666 = vst.msk [vmem:[#allocation3 + $0x70] sm:$0xf] %vm651_vm3, %v572_v23  ;;  %v461_v29 = vld [vmem:[#allocation2 + $0x139] sm:$0xff]  ;;  %v381_v23 = vpack.c.bf16 %v345_v58, %v345_v58  ;;  %v349_v58 = vld [vmem:[#allocation2 + $0x110] sm:$0xff] }
  0xe4   : >> { %418 = vst.msk [vmem:[#allocation3 + $0x98] sm:$0xf] %vm398_vm2, %v381_v23 }
  0xe6   : >> { %4762 = vmatmul.msk.bf16.gmra.mxu1 %vm199_vm0, %v4691_v39  ;;  %4954 = vmatmul.msk.bf16.gmra.mxu3 %vm199_vm0, %v4883_v40  ;;  %v4782_v40 = vld [vmem:[#allocation3 + $0x20] sm:$0xf] }
  0xe7   : >> { %v5847_v42 = vld [vmem:[#allocation3 + $0x14] sm:$0xf0]  ;;  %v558_v43 = vpop.permute.xlu1 %557  ;;  %v556_v44 = vpop.permute.xlu0 %555 }
  0xe8   : >> { %v4575_v45 = vor.u32 %v5847_v42, %v4574_v41  ;;  %v5802_v47 = vld [vmem:[#allocation3 + $0x4] sm:$0xf0]  ;;  %659 = vst.msk [vmem:[#allocation3 + $0x38] sm:$0xf] %vm651_vm3, %v558_v43  ;;  %v5804_v52 = vld [vmem:[#allocation3 + $0x14] sm:$0xf0]  ;;  %v4984_v42 = vor.u32 %v5891_v35, %v4983_v34  ;;  %v497_v34 = vpack.c.bf16 %v461_v29, %v461_v29 }
  0xe9   : >> { %v4767_v48 = vor.u32 %v5802_v47, %v4766_v46  ;;  %658 = vst.msk [vmem:[#allocation3 + $0x30] sm:$0xf] %vm651_vm3, %v556_v44  ;;  %v4775_v17 = vor.u32 %v5804_v52, %v4774_v16  ;;  %v5806_v41 = vld [vmem:[#allocation3 + $0x24] sm:$0xf0]  ;;  %v462_v44 = vld [vmem:[#allocation2 + $0x141] sm:$0xff] }
  0xea   : >> { %1187 = vmatmul.bf16.vlgmr.msra.gmra.mxu0 %v4575_v45  ;;  %v4783_v43 = vor.u32 %v5806_v41, %v4782_v40  ;;  %v498_v46 = vpack.c.bf16 %v462_v44, %v462_v44  ;;  %v698_v47 = vld [vmem:[#allocation2 + $0x7a] sm:$0xff]  ;;  %595 = vrot.lane.b32.xlu2 %v497_v34, %s6119_s26  ;;  %v465_v44 = vld [vmem:[#allocation2 + $0x169] sm:$0xff] }
  0xeb   : >> { %1629 = vmatmul.bf16.vlgmr.msra.gmra.mxu2 %v4767_v48  ;;  %v339_v48 = vld [vmem:[#allocation2 + $0x98] sm:$0xff]  ;;  %v734_v51 = vpack.c.bf16 %v698_v47, %v698_v47 }
  0xec   : >> { %597 = vrot.lane.b32.xlu0 %v498_v46, %s6119_s26  ;;  %v375_v56 = vpack.c.bf16 %v339_v48, %v339_v48  ;;  %v501_v48 = vpack.c.bf16 %v465_v44, %v465_v44 }
  0xed   : >> { %770 = vst.msk [vmem:[#allocation3 + $0x54] sm:$0xf] %vm398_vm2, %v734_v51 }
  0xee   : >> { %412 = vst.msk [vmem:[#allocation3 + $0x68] sm:$0xf] %vm398_vm2, %v375_v56  ;;  %v379_v56 = vpack.c.bf16 %v343_v49, %v343_v49 }
  0xef   : >> { %v562_v63 = vpop.permute.xlu0 %561  ;;  %v564_v5 = vpop.permute.xlu1 %563  ;;  %v5851_v30 = vld [vmem:[#allocation3 + $0x34] sm:$0xf0] }
  0xf0   : >> { %661 = vst.msk [vmem:[#allocation3 + $0x48] sm:$0xf] %vm651_vm3, %v562_v63  ;;  %v4590_v31 = vld [vmem:[#allocation3 + $0x30] sm:$0xf]  ;;  %v4993_v63 = vld [vmem:[#allocation3 + $0x38] sm:$0xf0] }
  0xf1   : >> { %662 = vst.msk [vmem:[#allocation3 + $0x50] sm:$0xf] %vm651_vm3, %v564_v5  ;;  %v4591_v39 = vor.u32 %v5851_v30, %v4590_v31  ;;  %v4991_v7 = vld [vmem:[#allocation3 + $0x30] sm:$0xf]  ;;  %v5893_v8 = vld [vmem:[#allocation3 + $0x34] sm:$0xf0]  ;;  %v4996_v9 = vor.u32 %v5892_v62, %v4993_v63 }
  0xf2   : >> { %v5808_v13 = vld [vmem:[#allocation3 + $0x34] sm:$0xf0]  ;;  %v4992_v14 = vor.u32 %v5893_v8, %v4991_v7  ;;  %v5001_v5 = vld [vmem:[#allocation3 + $0x48] sm:$0xf0]  ;;  %v4999_v31 = vld [vmem:[#allocation3 + $0x40] sm:$0xf] }
  0xf3   : >> { %v6450_v53 = vpop.f32.mrf.mxu1  ;;  %v5004_v35 = vor.u32 %v5894_v27, %v5001_v5  ;;  %416 = vst.msk [vmem:[#allocation3 + $0x88] sm:$0xf] %vm398_vm2, %v379_v56  ;;  %v5009_v62 = vld [vmem:[#allocation3 + $0x58] sm:$0xf0]  ;;  %v5898_v5 = vld [vmem:[#allocation3 + $0x64] sm:$0xf] }
  0xf4   : >> { %603 = vrot.lane.b32.xlu0 %v501_v48, %s6119_s26  ;;  %v5896_v61 = vld [vmem:[#allocation3 + $0x54] sm:$0xf]  ;;  %v347_v48 = vld [vmem:[#allocation2 + $0xf8] sm:$0xff] }
  0xf6   : >> { %4763 = vmatmul.msk.bf16.gmra.mxu1 %vm199_vm0, %v4699_v11  ;;  %4955 = vmatmul.msk.bf16.gmra.mxu3 %vm199_vm0, %v4891_v12  ;;  %v4790_v12 = vld [vmem:[#allocation3 + $0x30] sm:$0xf] }
  0xf7   : >> { %v570_v55 = vpop.permute.xlu1 %569  ;;  %v568_v60 = vpop.permute.xlu0 %567  ;;  %v5853_v3 = vld [vmem:[#allocation3 + $0x44] sm:$0xf0]  ;;  %v4791_v52 = vor.u32 %v5808_v13, %v4790_v12  ;;  %v5012_v12 = vor.u32 %v5896_v61, %v5009_v62  ;;  %v5025_v61 = vld [vmem:[#allocation3 + $0x78] sm:$0xf0] }
  0xf8   : >> { %665 = vst.msk [vmem:[#allocation3 + $0x68] sm:$0xf] %vm651_vm3, %v570_v55  ;;  %v4599_v11 = vor.u32 %v5853_v3, %v4598_v0  ;;  %v4606_v28 = vld [vmem:[#allocation3 + $0x50] sm:$0xf]  ;;  %v5895_v32 = vld [vmem:[#allocation3 + $0x44] sm:$0xf0]  ;;  %v578_v55 = vpop.permute.xlu2 %577 }
  0xf9   : >> { %v6455_v20 = vpop.f32.mrf.mxu3  ;;  %664 = vst.msk [vmem:[#allocation3 + $0x60] sm:$0xf] %vm651_vm3, %v568_v60  ;;  %v5810_v40 = vld [vmem:[#allocation3 + $0x44] sm:$0xf0]  ;;  %v5000_v41 = vor.u32 %v5895_v32, %v4999_v31  ;;  %v5007_v8 = vld [vmem:[#allocation3 + $0x50] sm:$0xf] }
  0xfa   : >> { %1192 = vmatmul.bf16.gmra.mxu0 %v4583_v15  ;;  %v463_v15 = vld [vmem:[#allocation2 + $0x151] sm:$0xff]  ;;  %669 = vst.msk [vmem:[#allocation3 + $0x88] sm:$0xf] %vm651_vm3, %v578_v55  ;;  %v464_v3 = vld [vmem:[#allocation2 + $0x159] sm:$0xff]  ;;  %v383_v55 = vpack.c.bf16 %v347_v48, %v347_v48 }
  0xfb   : >> { %1634 = vmatmul.bf16.gmra.mxu2 %v4775_v17  ;;  %v6457_v24 = vpop.f32.mrf.mxu1  ;;  %v499_v17 = vpack.c.bf16 %v463_v15, %v463_v15  ;;  %v5812_v15 = vld [vmem:[#allocation3 + $0x54] sm:$0xf0] }
  0xfc   : >> { %609 = vrot.lane.b32.xlu0 %v504_v22, %s6119_s26  ;;  %420 = vst.msk [vmem:[#allocation3 + $0xa8] sm:$0xf] %vm398_vm2, %v383_v55 }
  0xfd   : >> { %599 = vrot.lane.b32.xlu1 %v499_v17, %s6119_s26 }
  0xff   : >> { %v574_v25 = vpop.permute.xlu0 %573  ;;  %v576_v60 = vpop.permute.xlu1 %575  ;;  %v5857_v63 = vld [vmem:[#allocation3 + $0x64] sm:$0xf0] }
 0x100   : >> { %667 = vst.msk [vmem:[#allocation3 + $0x78] sm:$0xf] %vm651_vm3, %v574_v25  ;;  %v4614_v0 = vld [vmem:[#allocation3 + $0x60] sm:$0xf]  ;;  %v380_v25 = vpack.c.bf16 %v344_v1, %v344_v1  ;;  %v5899_v34 = vld [vmem:[#allocation3 + $0x64] sm:$0xf0]  ;;  %v584_v56 = vpop.permute.xlu2 %583 }
 0x101   : >> { %v6466_v33 = vpop.f32.mrf.mxu3  ;;  %668 = vst.msk [vmem:[#allocation3 + $0x80] sm:$0xf] %vm651_vm3, %v576_v60  ;;  %v5015_v32 = vld [vmem:[#allocation3 + $0x60] sm:$0xf]  ;;  %v5900_v60 = vld [vmem:[#allocation3 + $0x74] sm:$0xf] }
 0x102   : >> { %417 = vst.msk [vmem:[#allocation3 + $0x90] sm:$0xf] %vm398_vm2, %v380_v25  ;;  %v5861_v62 = vld [vmem:[#allocation3 + $0x84] sm:$0xf0]  ;;  %v348_v1 = vld [vmem:[#allocation2 + $0x108] sm:$0xff]  ;;  %v385_v25 = vpack.c.bf16 %v349_v58, %v349_v58 }
 0x103   : >> { %v6469_v38 = vpop.f32.mrf.mxu1 }
 0x104   : >> { %422 = vst.msk [vmem:[#allocation3 + $0xb8] sm:$0xf] %vm398_vm2, %v385_v25 }
 0x106   : >> { %2131 = vmatmul.bf16.vlgmr.msrb.gmra.mxu1 %v4984_v42  ;;  %5157 = vmatmul.msk.bf16.vlgmr.msrb.gmra.mxu3 %vm199_vm0, %v4988_v37  ;;  %v4607_v37 = vor.u32 %v5855_v6, %v4606_v28  ;;  %v5017_v6 = vld [vmem:[#allocation3 + $0x68] sm:$0xf0]  ;;  %v4622_v28 = vld [vmem:[#allocation3 + $0x70] sm:$0xf] }
 0x107   : >> { %v582_v26 = vpop.permute.xlu1 %581  ;;  %v580_v27 = vpop.permute.xlu0 %579  ;;  %v5859_v29 = vld [vmem:[#allocation3 + $0x74] sm:$0xf0] }
 0x108   : >> { %671 = vst.msk [vmem:[#allocation3 + $0x98] sm:$0xf] %vm651_vm3, %v582_v26  ;;  %v384_v26 = vpack.c.bf16 %v348_v1, %v348_v1  ;;  %v4830_v48 = vld [vmem:[#allocation3 + $0x80] sm:$0xf] }
 0x109   : >> { %v6473_v45 = vpop.f32.mrf.mxu3  ;;  %670 = vst.msk [vmem:[#allocation3 + $0x90] sm:$0xf] %vm651_vm3, %v580_v27  ;;  %v469_v27 = vld [vmem:[#allocation2 + $0x199] sm:$0xff] }
 0x10a   : >> { %1197 = vmatmul.bf16.gmra.mxu0 %v4591_v39  ;;  %v4798_v39 = vld [vmem:[#allocation3 + $0x40] sm:$0xf]  ;;  %421 = vst.msk [vmem:[#allocation3 + $0xb0] sm:$0xf] %vm398_vm2, %v384_v26 }
 0x10b   : >> { %1639 = vmatmul.bf16.gmra.mxu2 %v4783_v43  ;;  %v6475_v54 = vpop.f32.mrf.mxu1  ;;  %v4799_v42 = vor.u32 %v5810_v40, %v4798_v39  ;;  %v466_v43 = vld [vmem:[#allocation2 + $0x171] sm:$0xff]  ;;  %v4623_v39 = vor.u32 %v5859_v29, %v4622_v28  ;;  %v505_v28 = vpack.c.bf16 %v469_v27, %v469_v27 }
 0x10c   : >> { %v502_v47 = vpack.c.bf16 %v466_v43, %v466_v43  ;;  %v4814_v40 = vld [vmem:[#allocation3 + $0x60] sm:$0xf]  ;;  %v5902_v29 = vld [vmem:[#allocation3 + $0x84] sm:$0xf] }
 0x10e   : >> { %605 = vrot.lane.b32.xlu1 %v502_v47, %s6119_s26  ;;  %v346_v47 = vld [vmem:[#allocation2 + $0xf0] sm:$0xff] }
 0x10f   : >> { %v382_v50 = vpack.c.bf16 %v346_v47, %v346_v47  ;;  %v5905_v25 = vld [vmem:[#allocation3 + $0x94] sm:$0xf0] }
 0x110   : >> { %v5039_v1 = vld [vmem:[#allocation3 + $0x90] sm:$0xf] }
 0x111   : >> { %v6483_v4 = vpop.f32.mrf.mxu3  ;;  %419 = vst.msk [vmem:[#allocation3 + $0xa0] sm:$0xf] %vm398_vm2, %v382_v50  ;;  %v5818_v50 = vld [vmem:[#allocation3 + $0x84] sm:$0xf0] }
 0x112   : >> { %672 = vst.msk [vmem:[#allocation3 + $0xa0] sm:$0xf] %vm651_vm3, %v584_v56 }
 0x113   : >> { %v6486_v10 = vpop.f32.mrf.mxu1 }
 0x114   : >> { %v586_v59 = vpop.permute.xlu0 %585 }
 0x115   : >> { %673 = vst.msk [vmem:[#allocation3 + $0xa8] sm:$0xf] %vm651_vm3, %v586_v59  ;;  %v4831_v59 = vor.u32 %v5818_v50, %v4830_v48  ;;  %v353_v48 = vld [vmem:[#allocation2 + $0x140] sm:$0xff] }
 0x116   : >> { %2136 = vmatmul.bf16.gmra.mxu1 %v4992_v14  ;;  %5158 = vmatmul.msk.bf16.gmra.mxu3 %vm199_vm0, %v4996_v9  ;;  %v5897_v9 = vld [vmem:[#allocation3 + $0x54] sm:$0xf0]  ;;  %v4615_v14 = vor.u32 %v5857_v63, %v4614_v0  ;;  %v4630_v63 = vld [vmem:[#allocation3 + $0x80] sm:$0xf] }
 0x117   : >> { %v5008_v17 = vor.u32 %v5897_v9, %v5007_v8  ;;  %v467_v0 = vld [vmem:[#allocation2 + $0x181] sm:$0xff]  ;;  %611 = vrot.lane.b32.xlu1 %v505_v28, %s6119_s26 }
 0x118   : >> { %v5023_v8 = vld [vmem:[#allocation3 + $0x70] sm:$0xf]  ;;  %v5901_v9 = vld [vmem:[#allocation3 + $0x74] sm:$0xf0] }
 0x119   : >> { %v6489_v16 = vpop.f32.mrf.mxu3  ;;  %v4838_v28 = vld [vmem:[#allocation3 + $0x90] sm:$0xf] }
 0x11a   : >> { %1202 = vmatmul.bf16.gmra.mxu0 %v4599_v11  ;;  %v500_v11 = vpack.c.bf16 %v464_v3, %v464_v3 }
 0x11b   : >> { %1644 = vmatmul.bf16.gmra.mxu2 %v4791_v52  ;;  %v6491_v57 = vpop.f32.mrf.mxu1  ;;  %v4806_v52 = vld [vmem:[#allocation3 + $0x50] sm:$0xf] }
 0x11c   : >> { %601 = vrot.lane.b32.xlu2 %v500_v11, %s6119_s26  ;;  %v4807_v18 = vor.u32 %v5812_v15, %v4806_v52  ;;  %v503_v11 = vpack.c.bf16 %v467_v0, %v467_v0  ;;  %v4631_v52 = vor.u32 %v5861_v62, %v4630_v63  ;;  %v4822_v15 = vld [vmem:[#allocation3 + $0x70] sm:$0xf] }
 0x11d   : >> { %v350_v62 = vld [vmem:[#allocation2 + $0x120] sm:$0xff] }
 0x121   : >> { %v6499_v30 = vpop.f32.mrf.mxu3 }
 0x123   : >> { %v6502_v36 = vpop.f32.mrf.mxu1 }
 0x124   : >> { %607 = vrot.lane.b32.xlu2 %v503_v11, %s6119_s26 }
 0x126   : >> { %2141 = vmatmul.bf16.gmra.mxu1 %v5000_v41  ;;  %5159 = vmatmul.msk.bf16.gmra.mxu3 %vm199_vm0, %v5004_v35  ;;  %v5020_v35 = vor.u32 %v5898_v5, %v5017_v6  ;;  %v5814_v41 = vld [vmem:[#allocation3 + $0x64] sm:$0xf0]  ;;  %v590_v5 = vpop.permute.xlu2 %589  ;;  %v588_v6 = vpop.permute.xlu1 %587 }
 0x127   : >> { %v4815_v43 = vor.u32 %v5814_v41, %v4814_v40  ;;  %675 = vst.msk [vmem:[#allocation3 + $0xb8] sm:$0xf] %vm651_vm3, %v590_v5  ;;  %v5031_v40 = vld [vmem:[#allocation3 + $0x80] sm:$0xf]  ;;  %v5903_v41 = vld [vmem:[#allocation3 + $0x84] sm:$0xf0] }
 0x128   : >> { %674 = vst.msk [vmem:[#allocation3 + $0xb0] sm:$0xf] %vm651_vm3, %v588_v6  ;;  %v5032_v56 = vor.u32 %v5903_v41, %v5031_v40 }
 0x129   : >> { %v6506_v46 = vpop.f32.mrf.mxu3 }
 0x12a   : >> { %1207 = vmatmul.bf16.gmra.mxu0 %v4607_v37 }
 0x12b   : >> { %1649 = vmatmul.bf16.gmra.mxu2 %v4799_v42  ;;  %v6508_v51 = vpop.f32.mrf.mxu1  ;;  %v5016_v42 = vor.u32 %v5899_v34, %v5015_v32  ;;  %v5033_v32 = vld [vmem:[#allocation3 + $0x88] sm:$0xf0]  ;;  %v4638_v34 = vld [vmem:[#allocation3 + $0x90] sm:$0xf] }
 0x131   : >> { %v6516_v7 = vpop.f32.mrf.mxu3 }
 0x133   : >> { %v6518_v13 = vpop.f32.mrf.mxu1 }
 0x136   : >> { %2146 = vmatmul.bf16.gmra.mxu1 %v5008_v17  ;;  %5160 = vmatmul.msk.bf16.gmra.mxu3 %vm199_vm0, %v5012_v12  ;;  %v5028_v12 = vor.u32 %v5900_v60, %v5025_v61  ;;  %v5816_v17 = vld [vmem:[#allocation3 + $0x74] sm:$0xf0] }
 0x137   : >> { %v4823_v19 = vor.u32 %v5816_v17, %v4822_v15  ;;  %v351_v61 = vld [vmem:[#allocation2 + $0x128] sm:$0xff]  ;;  %v5904_v15 = vld [vmem:[#allocation3 + $0x94] sm:$0xf] }
 0x138   : >> { %v5041_v17 = vld [vmem:[#allocation3 + $0x98] sm:$0xf0] }
 0x139   : >> { %v6522_v21 = vpop.f32.mrf.mxu3  ;;  %v5044_v26 = vor.u32 %v5904_v15, %v5041_v17  ;;  %v4654_v15 = vld [vmem:[#allocation3 + $0xb0] sm:$0xf]  ;;  %v5867_v17 = vld [vmem:[#allocation3 + $0xb4] sm:$0xf0] }
 0x13a   : >> { %1212 = vmatmul.bf16.gmra.mxu0 %v4615_v14 }
 0x13b   : >> { %1654 = vmatmul.bf16.gmra.mxu2 %v4807_v18  ;;  %v6524_v2 = vpop.f32.mrf.mxu1  ;;  %v5024_v18 = vor.u32 %v5901_v9, %v5023_v8  ;;  %v387_v8 = vpack.c.bf16 %v351_v61, %v351_v61  ;;  %v386_v9 = vpack.c.bf16 %v350_v62, %v350_v62  ;;  %v389_v61 = vpack.c.bf16 %v353_v48, %v353_v48 }
 0x13d   : >> { %424 = vst.msk [vmem:[#allocation3 + $0xc8] sm:$0xf] %vm398_vm2, %v387_v8 }
 0x13e   : >> { %423 = vst.msk [vmem:[#allocation3 + $0xc0] sm:$0xf] %vm398_vm2, %v386_v9 }
 0x13f   : >> { %426 = vst.msk [vmem:[#allocation3 + $0xd8] sm:$0xf] %vm398_vm2, %v389_v61  ;;  %v354_v61 = vld [vmem:[#allocation2 + $0x150] sm:$0xff] }
 0x141   : >> { %v6531_v31 = vpop.f32.mrf.mxu3 }
 0x143   : >> { %v6533_v37 = vpop.f32.mrf.mxu1 }
 0x144   : >> { %v596_v8 = vpop.permute.xlu2 %595 }
 0x146   : >> { %2151 = vmatmul.bf16.gmra.mxu1 %v5016_v42  ;;  %5161 = vmatmul.msk.bf16.gmra.mxu3 %vm199_vm0, %v5020_v35  ;;  %v5863_v35 = vld [vmem:[#allocation3 + $0x94] sm:$0xf0]  ;;  %v5036_v42 = vor.u32 %v5902_v29, %v5033_v32 }
 0x147   : >> { %v4639_v47 = vor.u32 %v5863_v35, %v4638_v34  ;;  %v5820_v29 = vld [vmem:[#allocation3 + $0x94] sm:$0xf0]  ;;  %v5040_v34 = vor.u32 %v5905_v25, %v5039_v1  ;;  %v5907_v1 = vld [vmem:[#allocation3 + $0xa4] sm:$0xf0] }
 0x148   : >> { %v470_v35 = vld [vmem:[#allocation2 + $0x1a1] sm:$0xff]  ;;  %v4839_v41 = vor.u32 %v5820_v29, %v4838_v28  ;;  %v4655_v28 = vor.u32 %v5867_v17, %v4654_v15  ;;  %v4846_v29 = vld [vmem:[#allocation3 + $0xa0] sm:$0xf] }
 0x149   : >> { %v6536_v44 = vpop.f32.mrf.mxu3  ;;  %v506_v40 = vpack.c.bf16 %v470_v35, %v470_v35 }
 0x14a   : >> { %1217 = vmatmul.bf16.gmra.mxu0 %v4623_v39 }
 0x14b   : >> { %1659 = vmatmul.bf16.gmra.mxu2 %v4815_v43  ;;  %v6538_v49 = vpop.f32.mrf.mxu1  ;;  %613 = vrot.lane.b32.xlu2 %v506_v40, %s6119_s26 }
 0x151   : >> { %v6544_v3 = vpop.f32.mrf.mxu3 }
 0x153   : >> { %v6546_v14 = vpop.f32.mrf.mxu1 }
 0x156   : >> { %2156 = vmatmul.bf16.gmra.mxu1 %v5024_v18  ;;  %5162 = vmatmul.msk.bf16.gmra.mxu3 %vm199_vm0, %v5028_v12  ;;  %v594_v12 = vpop.permute.xlu1 %593  ;;  %v4646_v18 = vld [vmem:[#allocation3 + $0xa0] sm:$0xf] }
 0x157   : >> { %677 = vst.msk [vmem:[#allocation3 + $0xc8] sm:$0xf] %vm651_vm3, %v594_v12  ;;  %v5906_v12 = vld [vmem:[#allocation3 + $0xa4] sm:$0xf] }
 0x159   : >> { %v6550_v22 = vpop.f32.mrf.mxu3 }
 0x15a   : >> { %1222 = vmatmul.bf16.gmra.mxu0 %v4631_v52  ;;  %v592_v52 = vpop.permute.xlu0 %591 }
 0x15b   : >> { %1664 = vmatmul.bf16.gmra.mxu2 %v4823_v19  ;;  %v6552_v23 = vpop.f32.mrf.mxu1  ;;  %v5865_v19 = vld [vmem:[#allocation3 + $0xa4] sm:$0xf0]  ;;  %676 = vst.msk [vmem:[#allocation3 + $0xc0] sm:$0xf] %vm651_vm3, %v592_v52  ;;  %v5049_v52 = vld [vmem:[#allocation3 + $0xa8] sm:$0xf0] }
 0x15c   : >> { %v4647_v6 = vor.u32 %v5865_v19, %v4646_v18  ;;  %v5047_v19 = vld [vmem:[#allocation3 + $0xa0] sm:$0xf]  ;;  %v5052_v25 = vor.u32 %v5906_v12, %v5049_v52  ;;  %v390_v52 = vpack.c.bf16 %v354_v61, %v354_v61 }
 0x15d   : >> { %v5048_v40 = vor.u32 %v5907_v1, %v5047_v19  ;;  %v5908_v1 = vld [vmem:[#allocation3 + $0xb4] sm:$0xf] }
 0x15e   : >> { %427 = vst.msk [vmem:[#allocation3 + $0xe0] sm:$0xf] %vm398_vm2, %v390_v52 }
 0x161   : >> { %v6559_v39 = vpop.f32.mrf.mxu3 }
 0x162   : >> { %v598_v9 = vpop.permute.xlu0 %597 }
 0x163   : >> { %v6561_v43 = vpop.f32.mrf.mxu1  ;;  %679 = vst.msk [vmem:[#allocation3 + $0xd8] sm:$0xf] %vm651_vm3, %v598_v9 }
 0x166   : >> { %2161 = vmatmul.bf16.gmra.mxu1 %v5032_v56  ;;  %5163 = vmatmul.msk.bf16.gmra.mxu3 %vm199_vm0, %v5036_v42 }
 0x167   : >> { %v6563_v55 = vpop.f32.mrf.mxu0 }
 0x169   : >> { %v6566_v60 = vpop.f32.mrf.mxu3 }
 0x16a   : >> { %1227 = vmatmul.bf16.gmra.mxu0 %v4639_v47  ;;  %v352_v47 = vld [vmem:[#allocation2 + $0x138] sm:$0xff] }
 0x16b   : >> { %1669 = vmatmul.bf16.gmra.mxu2 %v4831_v59  ;;  %v6570_v0 = vpop.f32.mrf.mxu1  ;;  %v388_v59 = vpack.c.bf16 %v352_v47, %v352_v47 }
 0x16d   : >> { %425 = vst.msk [vmem:[#allocation3 + $0xd0] sm:$0xf] %vm398_vm2, %v388_v59  ;;  %v355_v59 = vld [vmem:[#allocation2 + $0x158] sm:$0xff] }
 0x16e   : >> { %v6568_v63 = vpop.f32.mrf.mxu2  ;;  %678 = vst.msk [vmem:[#allocation3 + $0xd0] sm:$0xf] %vm651_vm3, %v596_v8  ;;  %v391_v12 = vpack.c.bf16 %v355_v59, %v355_v59 }
 0x16f   : >> { %v6572_v11 = vpop.f32.mrf.mxu0  ;;  %v600_v19 = vpop.permute.xlu1 %599 }
 0x170   : >> { %428 = vst.msk [vmem:[#allocation3 + $0xe8] sm:$0xf] %vm398_vm2, %v391_v12 }
 0x171   : >> { %v6578_v58 = vpop.f32.mrf.mxu3  ;;  %680 = vst.msk [vmem:[#allocation3 + $0xe0] sm:$0xf] %vm651_vm3, %v600_v19 }
 0x173   : >> { %v6582_v5 = vpop.f32.mrf.mxu1 }
 0x174   : >> { %7478 = vst [vmem:[#allocation4_spill] sm:$0xff] %v6582_v5 }
 0x176   : >> { %v6580_v27 = vpop.f32.mrf.mxu2  ;;  %2166 = vmatmul.bf16.gmra.mxu1 %v5040_v34  ;;  %5164 = vmatmul.msk.bf16.gmra.mxu3 %vm199_vm0, %v5044_v26  ;;  %v5822_v34 = vld [vmem:[#allocation3 + $0xa4] sm:$0xf0]  ;;  %v602_v17 = vpop.permute.xlu2 %601 }
 0x177   : >> { %v6584_v32 = vpop.f32.mrf.mxu0  ;;  %681 = vst.msk [vmem:[#allocation3 + $0xe8] sm:$0xf] %vm651_vm3, %v602_v17  ;;  %v5824_v17 = vld [vmem:[#allocation3 + $0xb4] sm:$0xf0] }
 0x178   : >> { %7479 = vst [vmem:[#allocation5_spill] sm:$0xff] %v6584_v32 }
 0x179   : >> { %v6588_v42 = vpop.f32.mrf.mxu3 }
 0x17a   : >> { %1232 = vmatmul.bf16.gmra.mxu0 %v4647_v6  ;;  %7480 = vst [vmem:[#allocation6_spill] sm:$0xff] %v6588_v42 }
 0x17b   : >> { %1674 = vmatmul.bf16.gmra.mxu2 %v4839_v41  ;;  %v6592_v56 = vpop.f32.mrf.mxu1  ;;  %v4847_v41 = vor.u32 %v5822_v34, %v4846_v29  ;;  %v5055_v34 = vld [vmem:[#allocation3 + $0xb0] sm:$0xf] }
 0x17c   : >> { %7482 = vst [vmem:[#allocation8_spill] sm:$0xff] %v6592_v56 }
 0x17e   : >> { %v6590_v50 = vpop.f32.mrf.mxu2 }
 0x17f   : >> { %7481 = vst [vmem:[#allocation7_spill] sm:$0xff] %v6590_v50  ;;  %v6598_v62 = vpop.f32.mrf.mxu0 }
 0x180   : >> { %7483 = vst [vmem:[#allocation9_spill] sm:$0xff] %v6598_v62 }
 0x181   : >> { %v6604_v18 = vpop.f32.mrf.mxu3 }
 0x182   : >> { %7484 = vst [vmem:[#allocation10_spill] sm:$0xff] %v6604_v18 }
 0x183   : >> { %v2132_v6 = vpop.f32.mrf.mxu1 }
 0x186   : >> { %v6606_v26 = vpop.f32.mrf.mxu2  ;;  %2171 = vmatmul.bf16.gmra.mxu1 %v5048_v40  ;;  %5165 = vmatmul.msk.bf16.gmra.mxu3 %vm199_vm0, %v5052_v25  ;;  %v5057_v25 = vld [vmem:[#allocation3 + $0xb8] sm:$0xf0]  ;;  %v5909_v40 = vld [vmem:[#allocation3 + $0xb4] sm:$0xf0] }
 0x187   : >> { %7485 = vst [vmem:[#allocation11_spill] sm:$0xff] %v6606_v26  ;;  %v6608_v35 = vpop.f32.mrf.mxu0 }
 0x188   : >> { %7486 = vst [vmem:[#allocation12_spill] sm:$0xff] %v6608_v35  ;;  %v5056_v35 = vor.u32 %v5909_v40, %v5055_v34  ;;  %v5065_v34 = vld [vmem:[#allocation3 + $0xc8] sm:$0xf0]  ;;  %v4670_v40 = vld [vmem:[#allocation3 + $0xd0] sm:$0xf] }
 0x189   : >> { %v2221_v47 = vpop.f32.mrf.mxu3 }
 0x18a   : >> { %1237 = vmatmul.bf16.gmra.mxu0 %v4655_v28  ;;  %v6611_v48 = vadd.f32 %v2221_v47, %v2132_v6  ;;  %v4662_v6 = vld [vmem:[#allocation3 + $0xc0] sm:$0xf]  ;;  %v5869_v28 = vld [vmem:[#allocation3 + $0xc4] sm:$0xf0]  ;;  %v5060_v47 = vor.u32 %v5908_v1, %v5057_v25  ;;  %v356_v1 = vld [vmem:[#allocation2 + $0x168] sm:$0xff] }
 0x18b   : >> { %1679 = vmatmul.bf16.gmra.mxu2 %v4847_v41  ;;  %v2134_v9 = vpop.f32.mrf.mxu1  ;;  %v4663_v12 = vor.u32 %v5869_v28, %v4662_v6  ;;  %v392_v28 = vpack.c.bf16 %v356_v1, %v356_v1 }
 0x18d   : >> { %429 = vst.msk [vmem:[#allocation3 + $0xf0] sm:$0xf] %vm398_vm2, %v392_v28 }
 0x18e   : >> { %v6613_v8 = vpop.f32.mrf.mxu2 }
 0x18f   : >> { %7487 = vst [vmem:[#allocation13_spill] sm:$0xff] %v6613_v8  ;;  %v6615_v15 = vpop.f32.mrf.mxu0 }
 0x190   : >> { %7488 = vst [vmem:[#allocation14_spill] sm:$0xff] %v6615_v15  ;;  %v4854_v15 = vld [vmem:[#allocation3 + $0xb0] sm:$0xf] }
 0x191   : >> { %v2223_v29 = vpop.f32.mrf.mxu3  ;;  %v4855_v52 = vor.u32 %v5824_v17, %v4854_v15  ;;  %v5910_v15 = vld [vmem:[#allocation3 + $0xc4] sm:$0xf]  ;;  %v5911_v17 = vld [vmem:[#allocation3 + $0xc4] sm:$0xf0] }
 0x192   : >> { %v6621_v41 = vadd.f32 %v2223_v29, %v2134_v9  ;;  %v357_v9 = vld [vmem:[#allocation2 + $0x170] sm:$0xff] }
 0x193   : >> { %v2137_v61 = vpop.f32.mrf.mxu1  ;;  %v393_v6 = vpack.c.bf16 %v357_v9, %v357_v9 }
 0x194   : >> { %7489 = vst [vmem:[#allocation15_spill] sm:$0xff] %v6621_v41 }
 0x195   : >> { %430 = vst.msk [vmem:[#allocation3 + $0xf8] sm:$0xf] %vm398_vm2, %v393_v6 }
 0x196   : >> { %v6623_v59 = vpop.f32.mrf.mxu2  ;;  %2176 = vmatmul.bf16.gmra.mxu1 %v5056_v35  ;;  %5166 = vmatmul.msk.bf16.gmra.mxu3 %vm199_vm0, %v5060_v47  ;;  %v604_v35 = vpop.permute.xlu0 %603  ;;  %v5871_v47 = vld [vmem:[#allocation3 + $0xd4] sm:$0xf0] }
 0x197   : >> { %7490 = vst [vmem:[#allocation16_spill] sm:$0xff] %v6623_v59  ;;  %v6625_v8 = vpop.f32.mrf.mxu0  ;;  %v4671_v6 = vor.u32 %v5871_v47, %v4670_v40 }
 0x198   : >> { %7491 = vst [vmem:[#allocation17_spill] sm:$0xff] %v6625_v8  ;;  %v606_v8 = vpop.permute.xlu1 %605 }
 0x199   : >> { %v2226_v19 = vpop.f32.mrf.mxu3  ;;  %683 = vst.msk [vmem:[#allocation3 + $0xf8] sm:$0xf] %vm651_vm3, %v606_v8  ;;  %v5826_v8 = vld [vmem:[#allocation3 + $0xc4] sm:$0xf0] }
 0x19a   : >> { %1242 = vmatmul.bf16.gmra.mxu0 %v4663_v12  ;;  %v6628_v26 = vadd.f32 %v2226_v19, %v2137_v61  ;;  %682 = vst.msk [vmem:[#allocation3 + $0xf0] sm:$0xf] %vm651_vm3, %v604_v35  ;;  %v5063_v12 = vld [vmem:[#allocation3 + $0xc0] sm:$0xf]  ;;  %v5068_v19 = vor.u32 %v5910_v15, %v5065_v34  ;;  %v359_v15 = vld [vmem:[#allocation2 + $0x188] sm:$0xff] }
 0x19b   : >> { %1684 = vmatmul.bf16.gmra.mxu2 %v4855_v52  ;;  %v2139_v29 = vpop.f32.mrf.mxu1  ;;  %v5064_v18 = vor.u32 %v5911_v17, %v5063_v12  ;;  %v395_v47 = vpack.c.bf16 %v359_v15, %v359_v15  ;;  %v5073_v12 = vld [vmem:[#allocation3 + $0xd8] sm:$0xf0]  ;;  %v4678_v17 = vld [vmem:[#allocation3 + $0xe0] sm:$0xf] }
 0x19c   : >> { %7492 = vst [vmem:[#allocation18_spill] sm:$0xff] %v6628_v26 }
 0x19d   : >> { %432 = vst.msk [vmem:[#allocation3 + $0x108] sm:$0xf] %vm398_vm2, %v395_v47 }
 0x19e   : >> { %v6630_v25 = vpop.f32.mrf.mxu2 }
 0x19f   : >> { %7493 = vst [vmem:[#allocation19_spill] sm:$0xff] %v6630_v25  ;;  %v6632_v59 = vpop.f32.mrf.mxu0 }
 0x1a0   : >> { %7494 = vst [vmem:[#allocation20_spill] sm:$0xff] %v6632_v59  ;;  %v4862_v59 = vld [vmem:[#allocation3 + $0xc0] sm:$0xf] }
 0x1a1   : >> { %v2228_v61 = vpop.f32.mrf.mxu3  ;;  %v4863_v28 = vor.u32 %v5826_v8, %v4862_v59  ;;  %v5912_v59 = vld [vmem:[#allocation3 + $0xd4] sm:$0xf]  ;;  %v5913_v8 = vld [vmem:[#allocation3 + $0xd4] sm:$0xf0] }
 0x1a2   : >> { %v6638_v52 = vadd.f32 %v2228_v61, %v2139_v29  ;;  %v358_v29 = vld [vmem:[#allocation2 + $0x180] sm:$0xff] }
 0x1a3   : >> { %v2142_v1 = vpop.f32.mrf.mxu1  ;;  %v394_v40 = vpack.c.bf16 %v358_v29, %v358_v29 }
 0x1a4   : >> { %7495 = vst [vmem:[#allocation21_spill] sm:$0xff] %v6638_v52 }
 0x1a5   : >> { %431 = vst.msk [vmem:[#allocation3 + $0x100] sm:$0xf] %vm398_vm2, %v394_v40 }
 0x1a6   : >> { %v6640_v9 = vpop.f32.mrf.mxu2  ;;  %2181 = vmatmul.bf16.gmra.mxu1 %v5064_v18  ;;  %5167 = vmatmul.msk.bf16.gmra.mxu3 %vm199_vm0, %v5068_v19  ;;  %v610_v18 = vpop.permute.xlu0 %609  ;;  %v5873_v19 = vld [vmem:[#allocation3 + $0xe4] sm:$0xf0] }
 0x1a7   : >> { %7496 = vst [vmem:[#allocation22_spill] sm:$0xff] %v6640_v9  ;;  %v6642_v25 = vpop.f32.mrf.mxu0  ;;  %v4679_v40 = vor.u32 %v5873_v19, %v4678_v17  ;;  %v688_v17 = vld [vmem:[#allocation2 + $0x2] sm:$0xff] }
 0x1a8   : >> { %7497 = vst [vmem:[#allocation23_spill] sm:$0xff] %v6642_v25  ;;  %v608_v25 = vpop.permute.xlu2 %607 }
 0x1a9   : >> { %v2231_v35 = vpop.f32.mrf.mxu3  ;;  %684 = vst.msk [vmem:[#allocation3 + $0x100] sm:$0xf] %vm651_vm3, %v608_v25  ;;  %v5828_v25 = vld [vmem:[#allocation3 + $0xd4] sm:$0xf0] }
 0x1aa   : >> { %1247 = vmatmul.bf16.gmra.mxu0 %v4671_v6  ;;  %v6645_v62 = vadd.f32 %v2231_v35, %v2142_v1  ;;  %685 = vst.msk [vmem:[#allocation3 + $0x108] sm:$0xf] %vm651_vm3, %v610_v18  ;;  %v5071_v6 = vld [vmem:[#allocation3 + $0xd0] sm:$0xf]  ;;  %v5076_v35 = vor.u32 %v5912_v59, %v5073_v12 }
 0x1ab   : >> { %1689 = vmatmul.bf16.gmra.mxu2 %v4863_v28  ;;  %v2144_v61 = vpop.f32.mrf.mxu1  ;;  %v690_v12 = vld [vmem:[#allocation2 + $0x1a] sm:$0xff] }
 0x1ac   : >> { %7498 = vst [vmem:[#allocation24_spill] sm:$0xff] %v6645_v62  ;;  %v5072_v62 = vor.u32 %v5913_v8, %v5071_v6  ;;  %v689_v6 = vld [vmem:[#allocation2 + $0xa] sm:$0xff] }
 0x1ad   : >> { %v725_v8 = vpack.c.bf16 %v689_v6, %v689_v6 }
 0x1ae   : >> { %v6647_v34 = vpop.f32.mrf.mxu2 }
 0x1af   : >> { %7499 = vst [vmem:[#allocation25_spill] sm:$0xff] %v6647_v34  ;;  %v6649_v9 = vpop.f32.mrf.mxu0 }
 0x1b0   : >> { %7500 = vst [vmem:[#allocation26_spill] sm:$0xff] %v6649_v9  ;;  %v4870_v9 = vld [vmem:[#allocation3 + $0xd0] sm:$0xf] }
 0x1b1   : >> { %v2233_v1 = vpop.f32.mrf.mxu3  ;;  %v4871_v47 = vor.u32 %v5828_v25, %v4870_v9  ;;  %v5914_v9 = vld [vmem:[#allocation3 + $0xe4] sm:$0xf]  ;;  %761 = vst.msk [vmem:[#allocation3 + $0xc] sm:$0xf] %vm398_vm2, %v725_v8  ;;  %v722_v8 = vld [vmem:[#allocation2 + $0x19a] sm:$0xff] }
 0x1b2   : >> { %v6655_v28 = vadd.f32 %v2233_v1, %v2144_v61  ;;  %v691_v1 = vld [vmem:[#allocation2 + $0x22] sm:$0xff] }
 0x1b3   : >> { %v2147_v15 = vpop.f32.mrf.mxu1 }
 0x1b4   : >> { %7501 = vst [vmem:[#allocation27_spill] sm:$0xff] %v6655_v28 }
 0x1b6   : >> { %v6657_v29 = vpop.f32.mrf.mxu2  ;;  %2186 = vmatmul.bf16.gmra.mxu1 %v5072_v62  ;;  %5168 = vmatmul.msk.bf16.gmra.mxu3 %vm199_vm0, %v5076_v35  ;;  %v724_v62 = vpack.c.bf16 %v688_v17, %v688_v17  ;;  %v5081_v35 = vld [vmem:[#allocation3 + $0xe8] sm:$0xf0] }
 0x1b7   : >> { %7502 = vst [vmem:[#allocation28_spill] sm:$0xff] %v6657_v29  ;;  %v6659_v34 = vpop.f32.mrf.mxu0  ;;  %v726_v29 = vpack.c.bf16 %v690_v12, %v690_v12 }
 0x1b8   : >> { %7503 = vst [vmem:[#allocation29_spill] sm:$0xff] %v6659_v34  ;;  %v727_v34 = vpack.c.bf16 %v691_v1, %v691_v1  ;;  %v5084_v1 = vor.u32 %v5914_v9, %v5081_v35  ;;  %v758_v9 = vpack.c.bf16 %v722_v8, %v722_v8  ;;  %v5917_v8 = vld [vmem:[#allocation3 + $0xf4] sm:$0xf0] }
 0x1b9   : >> { %v2236_v18 = vpop.f32.mrf.mxu3  ;;  %762 = vst.msk [vmem:[#allocation3 + $0x14] sm:$0xf] %vm398_vm2, %v726_v29 }
 0x1ba   : >> { %1252 = vmatmul.bf16.gmra.mxu0 %v4679_v40  ;;  %v6662_v52 = vadd.f32 %v2236_v18, %v2147_v15  ;;  %763 = vst.msk [vmem:[#allocation3 + $0x1c] sm:$0xf] %vm398_vm2, %v727_v34  ;;  %v4686_v15 = vld [vmem:[#allocation3 + $0xf0] sm:$0xf]  ;;  %v5875_v40 = vld [vmem:[#allocation3 + $0xf4] sm:$0xf0] }
 0x1bb   : >> { %1694 = vmatmul.bf16.gmra.mxu2 %v4871_v47  ;;  %v2149_v59 = vpop.f32.mrf.mxu1  ;;  %760 = vst.msk [vmem:[#allocation3 + $0x4] sm:$0xf] %vm398_vm2, %v724_v62  ;;  %v5079_v47 = vld [vmem:[#allocation3 + $0xe0] sm:$0xf]  ;;  %v5915_v18 = vld [vmem:[#allocation3 + $0xe4] sm:$0xf0]  ;;  %v4687_v29 = vor.u32 %v5875_v40, %v4686_v15 }
 0x1bc   : >> { %7504 = vst [vmem:[#allocation30_spill] sm:$0xff] %v6662_v52  ;;  %v5080_v34 = vor.u32 %v5915_v18, %v5079_v47  ;;  %v361_v47 = vld [vmem:[#allocation2 + $0x1a0] sm:$0xff]  ;;  %v5089_v18 = vld [vmem:[#allocation3 + $0xf8] sm:$0xf0] }
 0x1bd   : >> { %794 = vst.msk [vmem:[#allocation3 + $0x114] sm:$0xf] %vm398_vm2, %v758_v9  ;;  %v612_v9 = vpop.permute.xlu1 %611 }
 0x1be   : >> { %v6664_v61 = vpop.f32.mrf.mxu2 }
 0x1bf   : >> { %7505 = vst [vmem:[#allocation31_spill] sm:$0xff] %v6664_v61  ;;  %v6666_v19 = vpop.f32.mrf.mxu0  ;;  %v5830_v61 = vld [vmem:[#allocation3 + $0xe4] sm:$0xf0] }
 0x1c0   : >> { %7506 = vst [vmem:[#allocation32_spill] sm:$0xff] %v6666_v19  ;;  %v4878_v19 = vld [vmem:[#allocation3 + $0xe0] sm:$0xf] }
 0x1c1   : >> { %v2238_v25 = vpop.f32.mrf.mxu3  ;;  %v4879_v62 = vor.u32 %v5830_v61, %v4878_v19  ;;  %v360_v61 = vld [vmem:[#allocation2 + $0x198] sm:$0xff]  ;;  %v5916_v19 = vld [vmem:[#allocation3 + $0xf4] sm:$0xf] }
 0x1c2   : >> { %v6672_v12 = vadd.f32 %v2238_v25, %v2149_v59  ;;  %v723_v59 = vld [vmem:[#allocation2 + $0x1a2] sm:$0xff] }
 0x1c3   : >> { %v2152_v6 = vpop.f32.mrf.mxu1  ;;  %v759_v35 = vpack.c.bf16 %v723_v59, %v723_v59  ;;  %v614_v59 = vpop.permute.xlu2 %613 }
 0x1c4   : >> { %7507 = vst [vmem:[#allocation33_spill] sm:$0xff] %v6672_v12 }
 0x1c5   : >> { %795 = vst.msk [vmem:[#allocation3 + $0x11c] sm:$0xf] %vm398_vm2, %v759_v35 }
 0x1c6   : >> { %v6674_v17 = vpop.f32.mrf.mxu2  ;;  %2191 = vmatmul.bf16.gmra.mxu1 %v5080_v34  ;;  %5169 = vmatmul.msk.bf16.gmra.mxu3 %vm199_vm0, %v5084_v1  ;;  %v397_v1 = vpack.c.bf16 %v361_v47, %v361_v47  ;;  %v4694_v34 = vld [vmem:[#allocation3 + $0x100] sm:$0xf]  ;;  %v4886_v47 = vld [vmem:[#allocation3 + $0xf0] sm:$0xf] }
 0x1c7   : >> { %7508 = vst [vmem:[#allocation34_spill] sm:$0xff] %v6674_v17  ;;  %v6676_v52 = vpop.f32.mrf.mxu0 }
 0x1c8   : >> { %7509 = vst [vmem:[#allocation35_spill] sm:$0xff] %v6676_v52 }
 0x1c9   : >> { %v2241_v28 = vpop.f32.mrf.mxu3  ;;  %434 = vst.msk [vmem:[#allocation3 + $0x118] sm:$0xf] %vm398_vm2, %v397_v1 }
 0x1ca   : >> { %1257 = vmatmul.bf16.gmra.mxu0 %v4687_v29  ;;  %v6679_v25 = vadd.f32 %v2241_v28, %v2152_v6  ;;  %v396_v29 = vpack.c.bf16 %v360_v61, %v360_v61  ;;  %v5877_v28 = vld [vmem:[#allocation3 + $0x104] sm:$0xf0]  ;;  %687 = vst.msk [vmem:[#allocation3 + $0x118] sm:$0xf] %vm651_vm3, %v614_v59  ;;  %v5832_v61 = vld [vmem:[#allocation3 + $0xf4] sm:$0xf0] }
 0x1cb   : >> { %1699 = vmatmul.bf16.gmra.mxu2 %v4879_v62  ;;  %v2154_v15 = vpop.f32.mrf.mxu1  ;;  %v5087_v62 = vld [vmem:[#allocation3 + $0xf0] sm:$0xf]  ;;  %v5097_v59 = vld [vmem:[#allocation3 + $0x108] sm:$0xf0] }
 0x1cc   : >> { %7510 = vst [vmem:[#allocation36_spill] sm:$0xff] %v6679_v25  ;;  %v4695_v25 = vor.u32 %v5877_v28, %v4694_v34  ;;  %v5088_v26 = vor.u32 %v5917_v8, %v5087_v62  ;;  %v5918_v28 = vld [vmem:[#allocation3 + $0x104] sm:$0xf]  ;;  %v5919_v8 = vld [vmem:[#allocation3 + $0x104] sm:$0xf0] }
 0x1cd   : >> { %433 = vst.msk [vmem:[#allocation3 + $0x110] sm:$0xf] %vm398_vm2, %v396_v29  ;;  %v5846_v29 = vld [vmem:[#allocation3 + $0x14] sm:$0xf] }
 0x1ce   : >> { %v6681_v17 = vpop.f32.mrf.mxu2  ;;  %686 = vst.msk [vmem:[#allocation3 + $0x110] sm:$0xf] %vm651_vm3, %v612_v9  ;;  %v5801_v9 = vld [vmem:[#allocation3 + $0x4] sm:$0xf] }
 0x1cf   : >> { %7511 = vst [vmem:[#allocation37_spill] sm:$0xff] %v6681_v17  ;;  %v6683_v40 = vpop.f32.mrf.mxu0 }
 0x1d0   : >> { %7512 = vst [vmem:[#allocation38_spill] sm:$0xff] %v6683_v40  ;;  %v5092_v40 = vor.u32 %v5916_v19, %v5089_v18 }
 0x1d1   : >> { %v2243_v6 = vpop.f32.mrf.mxu3 }
 0x1d2   : >> { %v6688_v17 = vadd.f32 %v2243_v6, %v2154_v15  ;;  %v4887_v15 = vor.u32 %v5832_v61, %v4886_v47 }
 0x1d3   : >> { %v2157_v52 = vpop.f32.mrf.mxu1 }
 0x1d4   : >> { %7513 = vst [vmem:[#allocation39_spill] sm:$0xff] %v6688_v17  ;;  %v4576_v17 = vld [vmem:[#allocation3 + $0x18] sm:$0xf0] }
 0x1d5   : >> { %v4579_v61 = vor.u32 %v5846_v29, %v4576_v17  ;;  %v5921_v17 = vld [vmem:[#allocation3 + $0x114] sm:$0xf0]  ;;  %v5848_v29 = vld [vmem:[#allocation3 + $0x24] sm:$0xf] }
 0x1d6   : >> { %v6691_v35 = vpop.f32.mrf.mxu2  ;;  %2196 = vmatmul.bf16.gmra.mxu1 %v5088_v26  ;;  %5170 = vmatmul.msk.bf16.gmra.mxu3 %vm199_vm0, %v5092_v40  ;;  %v4768_v26 = vld [vmem:[#allocation3 + $0x8] sm:$0xf0]  ;;  %v5100_v40 = vor.u32 %v5918_v28, %v5097_v59  ;;  %v5920_v28 = vld [vmem:[#allocation3 + $0x114] sm:$0xf]  ;;  %v5105_v59 = vld [vmem:[#allocation3 + $0x118] sm:$0xf0] }
 0x1d7   : >> { %7514 = vst [vmem:[#allocation40_spill] sm:$0xff] %v6691_v35  ;;  %v1223_v12 = vpop.f32.mrf.mxu0  ;;  %v5095_v35 = vld [vmem:[#allocation3 + $0x100] sm:$0xf] }
 0x1d9   : >> { %v2246_v19 = vpop.f32.mrf.mxu3 }
 0x1da   : >> { %1262 = vmatmul.bf16.gmra.mxu0 %v4695_v25  ;;  %v6696_v18 = vadd.f32 %v2246_v19, %v2157_v52  ;;  %v4771_v19 = vor.u32 %v5801_v9, %v4768_v26  ;;  %v5803_v9 = vld [vmem:[#allocation3 + $0x14] sm:$0xf]  ;;  %v4776_v26 = vld [vmem:[#allocation3 + $0x18] sm:$0xf0] }
 0x1db   : >> { %1704 = vmatmul.bf16.gmra.mxu2 %v4887_v15  ;;  %v2159_v6 = vpop.f32.mrf.mxu1  ;;  %v5096_v15 = vor.u32 %v5919_v8, %v5095_v35  ;;  %v4584_v35 = vld [vmem:[#allocation3 + $0x28] sm:$0xf0]  ;;  %v4779_v41 = vor.u32 %v5803_v9, %v4776_v26  ;;  %v4592_v9 = vld [vmem:[#allocation3 + $0x38] sm:$0xf0] }
 0x1dc   : >> { %7515 = vst [vmem:[#allocation41_spill] sm:$0xff] %v6696_v18  ;;  %v4784_v26 = vld [vmem:[#allocation3 + $0x28] sm:$0xf0] }
 0x1de   : >> { %v1665_v1 = vpop.f32.mrf.mxu2 }
 0x1df   : >> { %v1225_v34 = vpop.f32.mrf.mxu0 }
 0x1e1   : >> { %v2248_v62 = vpop.f32.mrf.mxu3 }
 0x1e2   : >> { %v6698_v56 = vadd.f32 %v2248_v62, %v2159_v6 }
 0x1e3   : >> { %v2162_v47 = vpop.f32.mrf.mxu1 }
 0x1e4   : >> { %7516 = vst [vmem:[#allocation42_spill] sm:$0xff] %v6698_v56  ;;  %v5103_v56 = vld [vmem:[#allocation3 + $0x110] sm:$0xf] }
 0x1e6   : >> { %v1667_v25 = vpop.f32.mrf.mxu2  ;;  %2201 = vmatmul.bf16.gmra.mxu1 %v5096_v15  ;;  %5171 = vmatmul.msk.bf16.gmra.mxu3 %vm199_vm0, %v5100_v40  ;;  %v5104_v15 = vor.u32 %v5921_v17, %v5103_v56  ;;  %v6717_v56 = vld [vmem:[%s2333_s6] ss:$0 sm:$0xff] }
 0x1e7   : >> { %v1228_v52 = vpop.f32.mrf.mxu0 }
 0x1e9   : >> { %v2251_v18 = vpop.f32.mrf.mxu3 }
 0x1ea   : >> { %4748 = vmatmul.msk.bf16.vlgmr.msrb.gmra.mxu0 %vm199_vm0, %v4579_v61  ;;  %v6703_v50 = vadd.f32 %v2251_v18, %v2162_v47  ;;  %v5108_v61 = vor.u32 %v5920_v28, %v5105_v59  ;;  %v4587_v47 = vor.u32 %v5848_v29, %v4584_v35 }
 0x1eb   : >> { %4940 = vmatmul.msk.bf16.vlgmr.msrb.gmra.mxu2 %vm199_vm0, %v4771_v19  ;;  %v2164_v6 = vpop.f32.mrf.mxu1 }
 0x1ec   : >> { %7517 = vst [vmem:[#allocation43_spill] sm:$0xff] %v6703_v50  ;;  %v1313_v50 = vadd.f32 %v6450_v53, %v1223_v12 }
 0x1ee   : >> { %v1670_v42 = vpop.f32.mrf.mxu2  ;;  %v1666_v5 = vadd.f32 %v1665_v1, %v1313_v50  ;;  %v1315_v50 = vadd.f32 %v6457_v24, %v1225_v34  ;;  %v1318_v24 = vadd.f32 %v6469_v38, %v1228_v52 }
 0x1ef   : >> { %v1230_v62 = vpop.f32.mrf.mxu0 }
 0x1f0   : >> { %v1755_v28 = vadd.f32 %v6455_v20, %v1666_v5  ;;  %v1668_v29 = vadd.f32 %v1667_v25, %v1315_v50  ;;  %v5805_v5 = vld [vmem:[#allocation3 + $0x24] sm:$0xf]  ;;  %v1320_v38 = vadd.f32 %v6475_v54, %v1230_v62 }
 0x1f1   : >> { %v2253_v8 = vpop.f32.mrf.mxu3 }
 0x1f2   : >> { %v6705_v40 = vadd.f32 %v2253_v8, %v2164_v6  ;;  %v5850_v8 = vld [vmem:[#allocation3 + $0x34] sm:$0xf] }
 0x1f3   : >> { %v2167_v18 = vpop.f32.mrf.mxu1 }
 0x1f6   : >> { %v1672_v19 = vpop.f32.mrf.mxu2  ;;  %5172 = vmatmul.msk.bf16.gmra.mxu3 %vm199_vm0, %v5108_v61  ;;  %2206 = vmatmul.bf16.gmra.mxu1 %v5104_v15  ;;  %v1757_v61 = vadd.f32 %v6466_v33, %v1668_v29 }
 0x1f7   : >> { %v1233_v32 = vpop.f32.mrf.mxu0 }
 0x1f8   : >> { %v1323_v54 = vadd.f32 %v6486_v10, %v1233_v32 }
 0x1f9   : >> { %v2256_v6 = vpop.f32.mrf.mxu3 }
 0x1fa   : >> { %4749 = vmatmul.msk.bf16.gmra.mxu0 %vm199_vm0, %v4587_v47  ;;  %v2257_v59 = vadd.f32 %v2256_v6, %v2167_v18  ;;  %v4595_v6 = vor.u32 %v5850_v8, %v4592_v9 }
 0x1fb   : >> { %4941 = vmatmul.msk.bf16.gmra.mxu2 %vm199_vm0, %v4779_v41  ;;  %v2169_v12 = vpop.f32.mrf.mxu1 }
 0x1fc   : >> { %v2315_v1 = vadd.f32 %v2257_v59, %v1755_v28  ;;  %v4787_v28 = vor.u32 %v5805_v5, %v4784_v26  ;;  %v1671_v59 = vadd.f32 %v1670_v42, %v1318_v24  ;;  %v1673_v42 = vadd.f32 %v1672_v19, %v1320_v38  ;;  %v5852_v5 = vld [vmem:[#allocation3 + $0x44] sm:$0xf]  ;;  %v4600_v26 = vld [vmem:[#allocation3 + $0x48] sm:$0xf0] }
 0x1fe   : >> { %v1675_v53 = vpop.f32.mrf.mxu2  ;;  %v2352_v35 = vadd.f32 %v6717_v56, %v2315_v1  ;;  %v1760_v29 = vadd.f32 %v6473_v45, %v1671_v59  ;;  %v1762_v45 = vadd.f32 %v6483_v4, %v1673_v42 }
 0x1ff   : >> { %v1235_v17 = vpop.f32.mrf.mxu0 }
 0x200   : >> { %v2384_v41 = vmax.f32 %v2352_v35, 0.0  ;;  %v1325_v10 = vadd.f32 %v6491_v57, %v1235_v17 }
 0x201   : >> { %v2258_v20 = vpop.f32.mrf.mxu3 }
 0x202   : >> { %2416 = vst.msk [vmem:[#allocation2 + $0xc1] sm:$0xff] %vm199_vm0, %v2384_v41  ;;  %v2259_v15 = vadd.f32 %v2258_v20, %v2169_v12 }
 0x203   : >> { %v2172_v47 = vpop.f32.mrf.mxu1 }
 0x204   : >> { %v2316_v34 = vadd.f32 %v2259_v15, %v1757_v61  ;;  %v5807_v15 = vld [vmem:[#allocation3 + $0x34] sm:$0xf] }
 0x206   : >> { %v1677_v18 = vpop.f32.mrf.mxu2  ;;  %v2353_v50 = vadd.f32 %v6717_v56, %v2316_v34 }
 0x207   : >> { %v1238_v25 = vpop.f32.mrf.mxu0 }
 0x208   : >> { %v2385_v1 = vmax.f32 %v2353_v50, 0.0  ;;  %v1676_v50 = vadd.f32 %v1675_v53, %v1323_v54  ;;  %v1678_v53 = vadd.f32 %v1677_v18, %v1325_v10  ;;  %v1328_v57 = vadd.f32 %v6502_v36, %v1238_v25  ;;  %v5856_v10 = vld [vmem:[#allocation3 + $0x64] sm:$0xf] }
 0x209   : >> { %v2261_v33 = vpop.f32.mrf.mxu3 }
 0x20a   : >> { %4750 = vmatmul.msk.bf16.gmra.mxu0 %vm199_vm0, %v4595_v6  ;;  %2417 = vst.msk [vmem:[#allocation2 + $0xc9] sm:$0xff] %vm199_vm0, %v2385_v1  ;;  %v2262_v12 = vadd.f32 %v2261_v33, %v2172_v47  ;;  %v4792_v6 = vld [vmem:[#allocation3 + $0x38] sm:$0xf0] }
 0x20b   : >> { %4942 = vmatmul.msk.bf16.gmra.mxu2 %vm199_vm0, %v4787_v28  ;;  %v2174_v41 = vpop.f32.mrf.mxu1  ;;  %v4603_v28 = vor.u32 %v5852_v5, %v4600_v26  ;;  %v4795_v59 = vor.u32 %v5807_v15, %v4792_v6  ;;  %v4608_v5 = vld [vmem:[#allocation3 + $0x58] sm:$0xf0]  ;;  %v4800_v15 = vld [vmem:[#allocation3 + $0x48] sm:$0xf0] }
 0x20c   : >> { %v2317_v52 = vadd.f32 %v2262_v12, %v1760_v29  ;;  %v1765_v29 = vadd.f32 %v6489_v16, %v1676_v50  ;;  %v1767_v16 = vadd.f32 %v6499_v30, %v1678_v53 }
 0x20e   : >> { %v1680_v35 = vpop.f32.mrf.mxu2  ;;  %v2354_v9 = vadd.f32 %v6717_v56, %v2317_v52 }
 0x20f   : >> { %v1240_v8 = vpop.f32.mrf.mxu0  ;;  %v1681_v54 = vadd.f32 %v1680_v35, %v1328_v57 }
 0x210   : >> { %v2386_v20 = vmax.f32 %v2354_v9, 0.0  ;;  %v1330_v36 = vadd.f32 %v6508_v51, %v1240_v8 }
 0x211   : >> { %v2263_v61 = vpop.f32.mrf.mxu3  ;;  %v1770_v50 = vadd.f32 %v6506_v46, %v1681_v54 }
 0x212   : >> { %2418 = vst.msk [vmem:[#allocation2 + $0xd9] sm:$0xff] %vm199_vm0, %v2386_v20  ;;  %v2264_v47 = vadd.f32 %v2263_v61, %v2174_v41  ;;  %v5854_v20 = vld [vmem:[#allocation3 + $0x54] sm:$0xf]  ;;  %v5809_v61 = vld [vmem:[#allocation3 + $0x44] sm:$0xf] }
 0x213   : >> { %v2177_v34 = vpop.f32.mrf.mxu1 }
 0x214   : >> { %v2318_v62 = vadd.f32 %v2264_v47, %v1762_v45 }
 0x216   : >> { %v1682_v24 = vpop.f32.mrf.mxu2  ;;  %v2355_v1 = vadd.f32 %v6717_v56, %v2318_v62 }
 0x217   : >> { %v1243_v19 = vpop.f32.mrf.mxu0  ;;  %v1683_v35 = vadd.f32 %v1682_v24, %v1330_v36  ;;  %v4816_v36 = vld [vmem:[#allocation3 + $0x68] sm:$0xf0] }
 0x218   : >> { %v2387_v33 = vmax.f32 %v2355_v1, 0.0  ;;  %v1333_v51 = vadd.f32 %v6518_v13, %v1243_v19 }
 0x219   : >> { %v2266_v4 = vpop.f32.mrf.mxu3  ;;  %v1772_v46 = vadd.f32 %v6516_v7, %v1683_v35 }
 0x21a   : >> { %4751 = vmatmul.msk.bf16.gmra.mxu0 %vm199_vm0, %v4603_v28  ;;  %2419 = vst.msk [vmem:[#allocation2 + $0xe1] sm:$0xff] %vm199_vm0, %v2387_v33  ;;  %v2267_v12 = vadd.f32 %v2266_v4, %v2177_v34  ;;  %v4611_v34 = vor.u32 %v5854_v20, %v4608_v5  ;;  %v4803_v28 = vor.u32 %v5809_v61, %v4800_v15 }
 0x21b   : >> { %4943 = vmatmul.msk.bf16.gmra.mxu2 %vm199_vm0, %v4795_v59  ;;  %v2179_v38 = vpop.f32.mrf.mxu1 }
 0x21c   : >> { %v2319_v32 = vadd.f32 %v2267_v12, %v1765_v29 }
 0x21e   : >> { %v1685_v41 = vpop.f32.mrf.mxu2  ;;  %v2356_v42 = vadd.f32 %v6717_v56, %v2319_v32  ;;  %v4616_v32 = vld [vmem:[#allocation3 + $0x68] sm:$0xf0] }
 0x21f   : >> { %v1245_v52 = vpop.f32.mrf.mxu0  ;;  %v4619_v61 = vor.u32 %v5856_v10, %v4616_v32 }
 0x220   : >> { %v2388_v9 = vmax.f32 %v2356_v42, 0.0  ;;  %v5811_v42 = vld [vmem:[#allocation3 + $0x54] sm:$0xf]  ;;  %v1335_v13 = vadd.f32 %v6524_v2, %v1245_v52 }
 0x221   : >> { %v2268_v26 = vpop.f32.mrf.mxu3 }
 0x222   : >> { %2420 = vst.msk [vmem:[#allocation2 + $0xf1] sm:$0xff] %vm199_vm0, %v2388_v9  ;;  %v2269_v6 = vadd.f32 %v2268_v26, %v2179_v38  ;;  %v4808_v9 = vld [vmem:[#allocation3 + $0x58] sm:$0xf0] }
 0x223   : >> { %v2182_v47 = vpop.f32.mrf.mxu1  ;;  %v4811_v15 = vor.u32 %v5811_v42, %v4808_v9 }
 0x224   : >> { %v2320_v17 = vadd.f32 %v2269_v6, %v1767_v16  ;;  %v1686_v16 = vadd.f32 %v1685_v41, %v1333_v51 }
 0x226   : >> { %v1687_v45 = vpop.f32.mrf.mxu2  ;;  %v2357_v62 = vadd.f32 %v6717_v56, %v2320_v17 }
 0x227   : >> { %v1248_v18 = vpop.f32.mrf.mxu0  ;;  %v1688_v41 = vadd.f32 %v1687_v45, %v1335_v13 }
 0x228   : >> { %v2389_v59 = vmax.f32 %v2357_v62, 0.0  ;;  %v1338_v2 = vadd.f32 %v6533_v37, %v1248_v18 }
 0x229   : >> { %v2271_v30 = vpop.f32.mrf.mxu3 }
 0x22a   : >> { %4752 = vmatmul.msk.bf16.gmra.mxu0 %vm199_vm0, %v4611_v34  ;;  %2421 = vst.msk [vmem:[#allocation2 + $0xf9] sm:$0xff] %vm199_vm0, %v2389_v59  ;;  %v2272_v1 = vadd.f32 %v2271_v30, %v2182_v47  ;;  %v1775_v34 = vadd.f32 %v6522_v21, %v1686_v16  ;;  %v5858_v30 = vld [vmem:[#allocation3 + $0x74] sm:$0xf]  ;;  %v1777_v21 = vadd.f32 %v6531_v31, %v1688_v41 }
 0x22b   : >> { %4944 = vmatmul.msk.bf16.gmra.mxu2 %vm199_vm0, %v4803_v28  ;;  %v2184_v4 = vpop.f32.mrf.mxu1 }
 0x22c   : >> { %v2321_v25 = vadd.f32 %v2272_v1, %v1770_v50  ;;  %v4624_v50 = vld [vmem:[#allocation3 + $0x78] sm:$0xf0] }
 0x22e   : >> { %v1690_v33 = vpop.f32.mrf.mxu2  ;;  %v2358_v12 = vadd.f32 %v6717_v56, %v2321_v25 }
 0x22f   : >> { %v1250_v29 = vpop.f32.mrf.mxu0  ;;  %v1691_v32 = vadd.f32 %v1690_v33, %v1338_v2 }
 0x230   : >> { %v2390_v38 = vmax.f32 %v2358_v12, 0.0  ;;  %v1340_v37 = vadd.f32 %v6538_v49, %v1250_v29 }
 0x231   : >> { %v2273_v53 = vpop.f32.mrf.mxu3  ;;  %v1780_v9 = vadd.f32 %v6536_v44, %v1691_v32 }
 0x232   : >> { %2422 = vst.msk [vmem:[#allocation2 + $0x109] sm:$0xff] %vm199_vm0, %v2390_v38  ;;  %v2274_v20 = vadd.f32 %v2273_v53, %v2184_v4  ;;  %v5813_v4 = vld [vmem:[#allocation3 + $0x64] sm:$0xf]  ;;  %v4627_v38 = vor.u32 %v5858_v30, %v4624_v50 }
 0x233   : >> { %v2187_v26 = vpop.f32.mrf.mxu1  ;;  %v4819_v10 = vor.u32 %v5813_v4, %v4816_v36 }
 0x234   : >> { %v2322_v8 = vadd.f32 %v2274_v20, %v1772_v46 }
 0x236   : >> { %v1692_v5 = vpop.f32.mrf.mxu2  ;;  %v2359_v6 = vadd.f32 %v6717_v56, %v2322_v8 }
 0x237   : >> { %v1253_v24 = vpop.f32.mrf.mxu0  ;;  %v1693_v33 = vadd.f32 %v1692_v5, %v1340_v37 }
 0x238   : >> { %v2391_v47 = vmax.f32 %v2359_v6, 0.0 }
 0x239   : >> { %v2276_v7 = vpop.f32.mrf.mxu3  ;;  %v1782_v16 = vadd.f32 %v6544_v3, %v1693_v33 }
 0x23a   : >> { %4753 = vmatmul.msk.bf16.gmra.mxu0 %vm199_vm0, %v4619_v61  ;;  %2423 = vst.msk [vmem:[#allocation2 + $0x111] sm:$0xff] %vm199_vm0, %v2391_v47  ;;  %v2277_v57 = vadd.f32 %v2276_v7, %v2187_v26  ;;  %v1343_v7 = vadd.f32 %v6546_v14, %v1253_v24 }
 0x23b   : >> { %4945 = vmatmul.msk.bf16.gmra.mxu2 %vm199_vm0, %v4811_v15  ;;  %v2189_v28 = vpop.f32.mrf.mxu1 }
 0x23c   : >> { %v2323_v19 = vadd.f32 %v2277_v57, %v1775_v34 }
 0x23e   : >> { %v1695_v17 = vpop.f32.mrf.mxu2  ;;  %v2360_v62 = vadd.f32 %v6717_v56, %v2323_v19 }
 0x23f   : >> { %v1255_v54 = vpop.f32.mrf.mxu0 }
 0x240   : >> { %v2392_v59 = vmax.f32 %v2360_v62, 0.0  ;;  %v1345_v62 = vadd.f32 %v6552_v23, %v1255_v54 }
 0x241   : >> { %v2278_v1 = vpop.f32.mrf.mxu3 }
 0x242   : >> { %2424 = vst.msk [vmem:[#allocation2 + $0x121] sm:$0xff] %vm199_vm0, %v2392_v59  ;;  %v2279_v25 = vadd.f32 %v2278_v1, %v2189_v28  ;;  %v1696_v28 = vadd.f32 %v1695_v17, %v1343_v7  ;;  %v7520_v7 = vld [vmem:[#allocation5_spill] sm:$0xff] }
 0x243   : >> { %v2192_v12 = vpop.f32.mrf.mxu1 }
 0x244   : >> { %v2324_v52 = vadd.f32 %v2279_v25, %v1777_v21  ;;  %v1785_v13 = vadd.f32 %v6550_v22, %v1696_v28 }
 0x246   : >> { %v1697_v35 = vpop.f32.mrf.mxu2  ;;  %v2361_v53 = vadd.f32 %v6717_v56, %v2324_v52 }
 0x247   : >> { %v1258_v45 = vpop.f32.mrf.mxu0  ;;  %v1698_v50 = vadd.f32 %v1697_v35, %v1345_v62 }
 0x248   : >> { %v2393_v42 = vmax.f32 %v2361_v53, 0.0  ;;  %v1348_v21 = vadd.f32 %v6561_v43, %v1258_v45 }
 0x249   : >> { %v2281_v31 = vpop.f32.mrf.mxu3  ;;  %v1787_v1 = vadd.f32 %v6559_v39, %v1698_v50 }
 0x24a   : >> { %4754 = vmatmul.msk.bf16.gmra.mxu0 %vm199_vm0, %v4627_v38  ;;  %2425 = vst.msk [vmem:[#allocation2 + $0x129] sm:$0xff] %vm199_vm0, %v2393_v42  ;;  %v2282_v46 = vadd.f32 %v2281_v31, %v2192_v12 }
 0x24b   : >> { %4946 = vmatmul.msk.bf16.gmra.mxu2 %vm199_vm0, %v4819_v10  ;;  %v2194_v26 = vpop.f32.mrf.mxu1 }
 0x24c   : >> { %v2325_v18 = vadd.f32 %v2282_v46, %v1780_v9 }
 0x24e   : >> { %v1700_v20 = vpop.f32.mrf.mxu2  ;;  %v2362_v51 = vadd.f32 %v6717_v56, %v2325_v18 }
 0x24f   : >> { %v1260_v61 = vpop.f32.mrf.mxu0  ;;  %v1701_v38 = vadd.f32 %v1700_v20, %v1348_v21  ;;  %v7525_v21 = vld [vmem:[#allocation9_spill] sm:$0xff] }
 0x250   : >> { %v2394_v8 = vmax.f32 %v2362_v51, 0.0  ;;  %v1350_v53 = vadd.f32 %v6570_v0, %v1260_v61  ;;  %v7518_v51 = vld [vmem:[#allocation4_spill] sm:$0xff] }
 0x251   : >> { %v2283_v15 = vpop.f32.mrf.mxu3  ;;  %v1790_v52 = vadd.f32 %v6566_v60, %v1701_v38 }
 0x252   : >> { %2426 = vst.msk [vmem:[#allocation2 + $0x139] sm:$0xff] %vm199_vm0, %v2394_v8  ;;  %v2284_v6 = vadd.f32 %v2283_v15, %v2194_v26 }
 0x253   : >> { %v2197_v47 = vpop.f32.mrf.mxu1 }
 0x254   : >> { %v2326_v34 = vadd.f32 %v2284_v6, %v1782_v16 }
 0x256   : >> { %v1702_v44 = vpop.f32.mrf.mxu2  ;;  %v2363_v49 = vadd.f32 %v6717_v56, %v2326_v34 }
 0x257   : >> { %v1263_v57 = vpop.f32.mrf.mxu0  ;;  %v1703_v9 = vadd.f32 %v1702_v44, %v1350_v53 }
 0x258   : >> { %v2395_v29 = vmax.f32 %v2363_v49, 0.0  ;;  %v1353_v8 = vadd.f32 %v7518_v51, %v1263_v57  ;;  %v7532_v51 = vld [vmem:[#allocation14_spill] sm:$0xff] }
 0x259   : >> { %v2286_v5 = vpop.f32.mrf.mxu3 }
 0x25a   : >> { %2427 = vst.msk [vmem:[#allocation2 + $0x141] sm:$0xff] %vm199_vm0, %v2395_v29  ;;  %v2287_v19 = vadd.f32 %v2286_v5, %v2197_v47  ;;  %v7519_v47 = vld [vmem:[#allocation15_spill] sm:$0xff]  ;;  %v7521_v29 = vld [vmem:[#allocation6_spill] sm:$0xff] }
 0x25b   : >> { %v2199_v41 = vpop.f32.mrf.mxu1 }
 0x25c   : >> { %v2327_v59 = vadd.f32 %v2287_v19, %v1785_v13  ;;  %v7522_v19 = vld [vmem:[#allocation7_spill] sm:$0xff] }
 0x25e   : >> { %v1705_v3 = vpop.f32.mrf.mxu2  ;;  %v2364_v14 = vadd.f32 %v6717_v56, %v2327_v59 }
 0x25f   : >> { %v1265_v30 = vpop.f32.mrf.mxu0  ;;  %v1706_v6 = vadd.f32 %v1705_v3, %v1353_v8  ;;  %v7523_v3 = vld [vmem:[#allocation8_spill] sm:$0xff] }
 0x260   : >> { %v2396_v24 = vmax.f32 %v2364_v14, 0.0  ;;  %v1355_v59 = vadd.f32 %v7523_v3, %v1265_v30  ;;  %v7538_v3 = vld [vmem:[#allocation20_spill] sm:$0xff] }
 0x261   : >> { %v2288_v17 = vpop.f32.mrf.mxu3  ;;  %v1795_v5 = vadd.f32 %v7521_v29, %v1706_v6  ;;  %v7536_v29 = vld [vmem:[#allocation19_spill] sm:$0xff] }
 0x262   : >> { %2428 = vst.msk [vmem:[#allocation2 + $0x151] sm:$0xff] %vm199_vm0, %v2396_v24  ;;  %v2289_v4 = vadd.f32 %v2288_v17, %v2199_v41 }
 0x263   : >> { %v2202_v36 = vpop.f32.mrf.mxu1 }
 0x264   : >> { %v2328_v25 = vadd.f32 %v2289_v4, %v1787_v1  ;;  %v7524_v4 = vld [vmem:[#allocation18_spill] sm:$0xff] }
 0x266   : >> { %v1707_v22 = vpop.f32.mrf.mxu2  ;;  %v2365_v23 = vadd.f32 %v6717_v56, %v2328_v25 }
 0x267   : >> { %v1277_v12 = vpop.f32.mrf.mxu0  ;;  %v1708_v17 = vadd.f32 %v1707_v22, %v1355_v59 }
 0x268   : >> { %v1278_v54 = vadd.f32 %v1277_v12, %v6563_v55  ;;  %v2397_v35 = vmax.f32 %v2365_v23, 0.0 }
 0x269   : >> { %v2291_v2 = vpop.f32.mrf.mxu3 }
 0x26a   : >> { %2429 = vst.msk [vmem:[#allocation2 + $0x159] sm:$0xff] %vm199_vm0, %v2397_v35  ;;  %v2292_v39 = vadd.f32 %v2291_v2, %v2202_v36  ;;  %v1631_v10 = vadd.f32 %v6568_v63, %v1278_v54  ;;  %v1792_v63 = vadd.f32 %v6578_v58, %v1703_v9  ;;  %v7526_v35 = vld [vmem:[#allocation10_spill] sm:$0xff]  ;;  %v7529_v9 = vld [vmem:[#allocation12_spill] sm:$0xff] }
 0x26b   : >> { %v2204_v31 = vpop.f32.mrf.mxu1  ;;  %v1797_v2 = vadd.f32 %v7526_v35, %v1708_v17  ;;  %v7542_v35 = vld [vmem:[#allocation25_spill] sm:$0xff] }
 0x26c   : >> { %v2329_v43 = vadd.f32 %v2292_v39, %v1790_v52  ;;  %v7527_v39 = vld [vmem:[#allocation11_spill] sm:$0xff] }
 0x26e   : >> { %v1719_v32 = vpop.f32.mrf.mxu2  ;;  %v2366_v46 = vadd.f32 %v6717_v56, %v2329_v43 }
 0x26f   : >> { %v1720_v45 = vadd.f32 %v1719_v32, %v1631_v10  ;;  %v1279_v42 = vpop.f32.mrf.mxu0 }
 0x270   : >> { %v1280_v20 = vadd.f32 %v1279_v42, %v6572_v11  ;;  %v2398_v60 = vmax.f32 %v2366_v46, 0.0  ;;  %v7528_v42 = vld [vmem:[#allocation21_spill] sm:$0xff] }
 0x271   : >> { %v2301_v55 = vadd.f32 %v6611_v48, %v1720_v45  ;;  %v2293_v37 = vpop.f32.mrf.mxu3 }
 0x272   : >> { %2430 = vst.msk [vmem:[#allocation2 + $0x169] sm:$0xff] %vm199_vm0, %v2398_v60  ;;  %v2294_v18 = vadd.f32 %v2293_v37, %v2204_v31  ;;  %v1633_v61 = vadd.f32 %v6580_v27, %v1280_v20 }
 0x273   : >> { %v2338_v26 = vadd.f32 %v6717_v56, %v2301_v55  ;;  %v2207_v16 = vpop.f32.mrf.mxu1 }
 0x274   : >> { %v2330_v48 = vadd.f32 %v2294_v18, %v1792_v63 }
 0x275   : >> { %v2370_v0 = vmax.f32 %v2338_v26, 0.0  ;;  %v7530_v26 = vld [vmem:[#allocation13_spill] sm:$0xff] }
 0x276   : >> { %v1721_v33 = vpop.f32.mrf.mxu2  ;;  %v2367_v44 = vadd.f32 %v6717_v56, %v2330_v48 }
 0x277   : >> { %2402 = vst.msk [vmem:[#allocation2 + $0x19] sm:$0xff] %vm199_vm0, %v2370_v0  ;;  %v1722_v15 = vadd.f32 %v1721_v33, %v1633_v61  ;;  %v1282_v11 = vpop.f32.mrf.mxu0  ;;  %v7531_v61 = vld [vmem:[#allocation24_spill] sm:$0xff] }
 0x278   : >> { %v1283_v34 = vadd.f32 %v1282_v11, %v7520_v7  ;;  %v2399_v28 = vmax.f32 %v2367_v44, 0.0  ;;  %v7533_v11 = vld [vmem:[#allocation16_spill] sm:$0xff] }
 0x279   : >> { %v2302_v58 = vadd.f32 %v7519_v47, %v1722_v15  ;;  %v2296_v27 = vpop.f32.mrf.mxu3 }
 0x27a   : >> { %2431 = vst.msk [vmem:[#allocation2 + $0x171] sm:$0xff] %vm199_vm0, %v2399_v28  ;;  %v2297_v13 = vadd.f32 %v2296_v27, %v2207_v16  ;;  %v1636_v41 = vadd.f32 %v7522_v19, %v1283_v34  ;;  %v7535_v34 = vld [vmem:[#allocation17_spill] sm:$0xff] }
 0x27b   : >> { %v2339_v49 = vadd.f32 %v6717_v56, %v2302_v58  ;;  %v2209_v12 = vpop.f32.mrf.mxu1  ;;  %v7534_v58 = vld [vmem:[#allocation27_spill] sm:$0xff] }
 0x27c   : >> { %v2331_v50 = vadd.f32 %v2297_v13, %v1795_v5 }
 0x27d   : >> { %v2371_v57 = vmax.f32 %v2339_v49, 0.0 }
 0x27e   : >> { %v1724_v62 = vpop.f32.mrf.mxu2  ;;  %v2368_v1 = vadd.f32 %v6717_v56, %v2331_v50 }
 0x27f   : >> { %2403 = vst.msk [vmem:[#allocation2 + $0x21] sm:$0xff] %vm199_vm0, %v2371_v57  ;;  %v1725_v14 = vadd.f32 %v1724_v62, %v1636_v41  ;;  %v1284_v24 = vpop.f32.mrf.mxu0  ;;  %v7537_v41 = vld [vmem:[#allocation30_spill] sm:$0xff] }
 0x280   : >> { %v1285_v25 = vadd.f32 %v1284_v24, %v7525_v21  ;;  %v2400_v38 = vmax.f32 %v2368_v1, 0.0  ;;  %v7539_v24 = vld [vmem:[#allocation22_spill] sm:$0xff]  ;;  %v7540_v21 = vld [vmem:[#allocation33_spill] sm:$0xff] }
 0x281   : >> { %v2303_v36 = vadd.f32 %v7524_v4, %v1725_v14  ;;  %v2298_v54 = vpop.f32.mrf.mxu3 }
 0x282   : >> { %2432 = vst.msk [vmem:[#allocation2 + $0x181] sm:$0xff] %vm199_vm0, %v2400_v38  ;;  %v2299_v52 = vadd.f32 %v2298_v54, %v2209_v12  ;;  %v1638_v10 = vadd.f32 %v7527_v39, %v1285_v25  ;;  %v7541_v12 = vld [vmem:[#allocation23_spill] sm:$0xff] }
 0x283   : >> { %v2340_v23 = vadd.f32 %v6717_v56, %v2303_v36 }
 0x284   : >> { %v2332_v32 = vadd.f32 %v2299_v52, %v1797_v2 }
 0x285   : >> { %v2372_v30 = vmax.f32 %v2340_v23, 0.0 }
 0x286   : >> { %v1726_v22 = vpop.f32.mrf.mxu2  ;;  %v2369_v45 = vadd.f32 %v6717_v56, %v2332_v32  ;;  %v7544_v32 = vld [vmem:[#allocation26_spill] sm:$0xff] }
 0x287   : >> { %2404 = vst.msk [vmem:[#allocation2 + $0x31] sm:$0xff] %vm199_vm0, %v2372_v30  ;;  %v1727_v53 = vadd.f32 %v1726_v22, %v1638_v10  ;;  %v1287_v43 = vpop.f32.mrf.mxu0  ;;  %v7543_v10 = vld [vmem:[#allocation36_spill] sm:$0xff] }
 0x288   : >> { %v1288_v46 = vadd.f32 %v1287_v43, %v7529_v9  ;;  %v2401_v55 = vmax.f32 %v2369_v45, 0.0 }
 0x289   : >> { %v2304_v31 = vadd.f32 %v7528_v42, %v1727_v53  ;;  %v7545_v42 = vld [vmem:[#allocation28_spill] sm:$0xff] }
 0x28a   : >> { %2433 = vst.msk [vmem:[#allocation2 + $0x189] sm:$0xff] %vm199_vm0, %v2401_v55  ;;  %v1641_v37 = vadd.f32 %v7530_v26, %v1288_v46  ;;  %v7547_v26 = vld [vmem:[#allocation29_spill] sm:$0xff] }
 0x28b   : >> { %v2341_v20 = vadd.f32 %v6717_v56, %v2304_v31 }
 0x28d   : >> { %v2373_v60 = vmax.f32 %v2341_v20, 0.0  ;;  %v7546_v20 = vld [vmem:[#allocation39_spill] sm:$0xff] }
 0x28e   : >> { %v1729_v63 = vpop.f32.mrf.mxu2 }
 0x28f   : >> { %2405 = vst.msk [vmem:[#allocation2 + $0x39] sm:$0xff] %vm199_vm0, %v2373_v60  ;;  %v1730_v0 = vadd.f32 %v1729_v63, %v1641_v37  ;;  %v1289_v18 = vpop.f32.mrf.mxu0 }
 0x290   : >> { %v1290_v8 = vadd.f32 %v1289_v18, %v7532_v51  ;;  %v7548_v18 = vld [vmem:[#allocation31_spill] sm:$0xff] }
 0x291   : >> { %v2305_v33 = vadd.f32 %v7531_v61, %v1730_v0 }
 0x292   : >> { %v1643_v16 = vadd.f32 %v7533_v11, %v1290_v8  ;;  %v7550_v11 = vld [vmem:[#allocation32_spill] sm:$0xff] }
 0x293   : >> { %v2342_v48 = vadd.f32 %v6717_v56, %v2305_v33 }
 0x295   : >> { %v2374_v15 = vmax.f32 %v2342_v48, 0.0  ;;  %v7549_v48 = vld [vmem:[#allocation41_spill] sm:$0xff] }
 0x296   : >> { %v1731_v6 = vpop.f32.mrf.mxu2 }
 0x297   : >> { %2406 = vst.msk [vmem:[#allocation2 + $0x49] sm:$0xff] %vm199_vm0, %v2374_v15  ;;  %v1732_v44 = vadd.f32 %v1731_v6, %v1643_v16  ;;  %v1292_v47 = vpop.f32.mrf.mxu0 }
 0x298   : >> { %v1293_v28 = vadd.f32 %v1292_v47, %v7535_v34  ;;  %v7551_v47 = vld [vmem:[#allocation34_spill] sm:$0xff] }
 0x299   : >> { %v2306_v7 = vadd.f32 %v7534_v58, %v1732_v44 }
 0x29a   : >> { %v1646_v5 = vadd.f32 %v7536_v29, %v1293_v28  ;;  %v7553_v29 = vld [vmem:[#allocation35_spill] sm:$0xff] }
 0x29b   : >> { %v2343_v49 = vadd.f32 %v6717_v56, %v2306_v7 }
 0x29d   : >> { %v2375_v27 = vmax.f32 %v2343_v49, 0.0  ;;  %v7552_v49 = vld [vmem:[#allocation42_spill] sm:$0xff] }
 0x29e   : >> { %v1734_v57 = vpop.f32.mrf.mxu2 }
 0x29f   : >> { %2407 = vst.msk [vmem:[#allocation2 + $0x51] sm:$0xff] %vm199_vm0, %v2375_v27  ;;  %v1735_v13 = vadd.f32 %v1734_v57, %v1646_v5  ;;  %v1294_v19 = vpop.f32.mrf.mxu0 }
 0x2a0   : >> { %v1295_v59 = vadd.f32 %v1294_v19, %v7538_v3  ;;  %v7554_v19 = vld [vmem:[#allocation37_spill] sm:$0xff] }
 0x2a1   : >> { %v2307_v62 = vadd.f32 %v7537_v41, %v1735_v13 }
 0x2a2   : >> { %v1648_v17 = vadd.f32 %v7539_v24, %v1295_v59  ;;  %v7556_v24 = vld [vmem:[#allocation38_spill] sm:$0xff] }
 0x2a3   : >> { %v2344_v50 = vadd.f32 %v6717_v56, %v2307_v62 }
 0x2a5   : >> { %v2376_v14 = vmax.f32 %v2344_v50, 0.0  ;;  %v7555_v50 = vld [vmem:[#allocation43_spill] sm:$0xff] }
 0x2a6   : >> { %v1736_v1 = vpop.f32.mrf.mxu2 }
 0x2a7   : >> { %2408 = vst.msk [vmem:[#allocation2 + $0x61] sm:$0xff] %vm199_vm0, %v2376_v14  ;;  %v1737_v4 = vadd.f32 %v1736_v1, %v1648_v17  ;;  %v1297_v36 = vpop.f32.mrf.mxu0 }
 0x2a8   : >> { %v1298_v38 = vadd.f32 %v1297_v36, %v7541_v12  ;;  %v7557_v36 = vld [vmem:[#allocation40_spill] sm:$0xff] }
 0x2a9   : >> { %v2308_v25 = vadd.f32 %v7540_v21, %v1737_v4 }
 0x2aa   : >> { %v1651_v2 = vadd.f32 %v7542_v35, %v1298_v38  ;;  %v6875_v35 = vld [vmem:[%s7476_s3 + $0xb8] sm:$0xff] (%p322_p4) }
 0x2ab   : >> { %v2345_v23 = vadd.f32 %v6717_v56, %v2308_v25  ;;  %6074 = vmatpush.bf16.msra.mxu1 (%p322_p4), %v6875_v35 }
 0x2ad   : >> { %v2377_v54 = vmax.f32 %v2345_v23, 0.0 }
 0x2ae   : >> { %v1739_v30 = vpop.f32.mrf.mxu2 }
 0x2af   : >> { %2409 = vst.msk [vmem:[#allocation2 + $0x69] sm:$0xff] %vm199_vm0, %v2377_v54  ;;  %v1740_v52 = vadd.f32 %v1739_v30, %v1651_v2  ;;  %v1299_v39 = vpop.f32.mrf.mxu0  ;;  %v2543_v30 = vld [vmem:[#allocation2 + $0x1] sm:$0xff] (%p322_p4) }
 0x2b0   : >> { %v1300_v53 = vadd.f32 %v1299_v39, %v7544_v32  ;;  %v6887_v39 = vld [vmem:[%s7476_s3 + $0xb0] sm:$0xff] (%p322_p4) }
 0x2b1   : >> { %v2309_v22 = vadd.f32 %v7543_v10, %v1740_v52  ;;  %v2579_v52 = vpack.c.bf16 (%p322_p4), %v2543_v30, %v2543_v30  ;;  %v6892_v10 = vld [vmem:[%s7476_s3 + $0x50] sm:$0xff] (%p322_p4)  ;;  %6075 = vmatpush.bf16.msra.mxu1 (%p322_p4), %v6887_v39 }
 0x2b2   : >> { %v1653_v31 = vadd.f32 %v7545_v42, %v1300_v53  ;;  %v2544_v32 = vld [vmem:[#allocation2 + $0x9] sm:$0xff] (%p322_p4) }
 0x2b3   : >> { %v2346_v43 = vadd.f32 %v6717_v56, %v2309_v22  ;;  %v2546_v22 = vld [vmem:[#allocation2 + $0x21] sm:$0xff] (%p322_p4)  ;;  %2651 = vrot.lane.b32.xlu0 (%p322_p4), %v2579_v52, %s6120_s18 }
 0x2b4   : > { %v2812_v53 = vld [vmem:[#allocation2 + $0xc2] sm:$0xff] (%p322_p4) }
 0x2b5   : >> { %v2378_v45 = vmax.f32 %v2346_v43, 0.0  ;;  %v2813_v43 = vld [vmem:[#allocation2 + $0xca] sm:$0xff] (%p322_p4)  ;;  %v2848_v42 = vpack.c.bf16 (%p322_p4), %v2812_v53, %v2812_v53  ;;  %v2551_v53 = vld [vmem:[#allocation2 + $0x61] sm:$0xff] (%p322_p4) }
 0x2b6   : >> { %v1741_v9 = vpop.f32.mrf.mxu2 }
 0x2b7   : >> { %2410 = vst.msk [vmem:[#allocation2 + $0x79] sm:$0xff] %vm199_vm0, %v2378_v45  ;;  %v1742_v46 = vadd.f32 %v1741_v9, %v1653_v31  ;;  %v1302_v55 = vpop.f32.mrf.mxu0  ;;  %v2849_v31 = vpack.c.bf16 (%p322_p4), %v2813_v43, %v2813_v43  ;;  %v2587_v43 = vpack.c.bf16 (%p322_p4), %v2551_v53, %v2551_v53 }
 0x2b8   : >> { %v1303_v37 = vadd.f32 %v1302_v55, %v7547_v26  ;;  %v2814_v55 = vld [vmem:[#allocation2 + $0xda] sm:$0xff] (%p322_p4)  ;;  %v6906_v26 = vld [vmem:[%s7476_s3 + $0x48] sm:$0xff] (%p322_p4)  ;;  %2884 = vst.msk [vmem:[#allocation3 + $0x84] sm:$0xf] (%p322_p4), %vm398_vm2, %v2848_v42 }
 0x2b9   : >> { %v2310_v60 = vadd.f32 %v7546_v20, %v1742_v46  ;;  %v2815_v20 = vld [vmem:[#allocation2 + $0xe2] sm:$0xff] (%p322_p4)  ;;  %2885 = vst.msk [vmem:[#allocation3 + $0x8c] sm:$0xf] (%p322_p4), %vm398_vm2, %v2849_v31  ;;  %v2822_v31 = vld [vmem:[#allocation2 + $0x13a] sm:$0xff] (%p322_p4) }
 0x2ba   : >> { %v1656_v61 = vadd.f32 %v7548_v18, %v1303_v37  ;;  %v2850_v18 = vpack.c.bf16 (%p322_p4), %v2814_v55, %v2814_v55  ;;  %v2823_v55 = vld [vmem:[#allocation2 + $0x142] sm:$0xff] (%p322_p4) }
 0x2bb   : >> { %v2347_v63 = vadd.f32 %v6717_v56, %v2310_v60  ;;  %v6901_v60 = vld [vmem:[%s7476_s3 + $0xa8] sm:$0xff] (%p322_p4) }
 0x2bc   : > { %6076 = vmatpush.bf16.msra.mxu1 (%p322_p4), %v6901_v60  ;;  %2886 = vst.msk [vmem:[#allocation3 + $0x94] sm:$0xf] (%p322_p4), %vm398_vm2, %v2850_v18 }
 0x2bd   : >> { %v2379_v0 = vmax.f32 %v2347_v63, 0.0  ;;  %v2547_v63 = vld [vmem:[#allocation2 + $0x31] sm:$0xff] (%p322_p4) }
 0x2be   : >> { %v1744_v33 = vpop.f32.mrf.mxu2 }
 0x2bf   : >> { %2411 = vst.msk [vmem:[#allocation2 + $0x81] sm:$0xff] %vm199_vm0, %v2379_v0  ;;  %v1745_v51 = vadd.f32 %v1744_v33, %v1656_v61  ;;  %v1304_v8 = vpop.f32.mrf.mxu0  ;;  %v2582_v0 = vpack.c.bf16 (%p322_p4), %v2546_v22, %v2546_v22  ;;  %v2583_v61 = vpack.c.bf16 (%p322_p4), %v2547_v63, %v2547_v63  ;;  %v2816_v33 = vld [vmem:[#allocation2 + $0xf2] sm:$0xff] (%p322_p4) }
 0x2c0   : >> { %v1305_v16 = vadd.f32 %v1304_v8, %v7550_v11  ;;  %v2580_v8 = vpack.c.bf16 (%p322_p4), %v2544_v32, %v2544_v32  ;;  %v6917_v11 = vld [vmem:[%s7476_s3 + $0xa0] sm:$0xff] (%p322_p4) }
 0x2c1   : >> { %v2311_v15 = vadd.f32 %v7549_v48, %v1745_v51  ;;  %v2817_v51 = vld [vmem:[#allocation2 + $0xfa] sm:$0xff] (%p322_p4)  ;;  %v2851_v48 = vpack.c.bf16 (%p322_p4), %v2815_v20, %v2815_v20  ;;  %2659 = vrot.lane.b32.xlu2 (%p322_p4), %v2583_v61, %s6120_s18  ;;  %6077 = vmatpush.bf16.msra.mxu1 (%p322_p4), %v6917_v11  ;;  %v2858_v20 = vpack.c.bf16 (%p322_p4), %v2822_v31, %v2822_v31 }
 0x2c2   : >> { %v1658_v58 = vadd.f32 %v7551_v47, %v1305_v16  ;;  %v6922_v16 = vld [vmem:[%s7476_s3 + $0x40] sm:$0xff] (%p322_p4)  ;;  %2653 = vrot.lane.b32.xlu0 (%p322_p4), %v2580_v8, %s6120_s18  ;;  %v2550_v47 = vld [vmem:[#allocation2 + $0x51] sm:$0xff] (%p322_p4) }
 0x2c3   : >> { %v2348_v6 = vadd.f32 %v6717_v56, %v2311_v15  ;;  %v2852_v15 = vpack.c.bf16 (%p322_p4), %v2816_v33, %v2816_v33  ;;  %2887 = vst.msk [vmem:[#allocation3 + $0x9c] sm:$0xf] (%p322_p4), %vm398_vm2, %v2851_v48  ;;  %v5952_v30 = vld [vmem:[#allocation3 + $0x94] sm:$0xf] (%p322_p4) }
 0x2c4   : > { %2894 = vst.msk [vmem:[#allocation3 + $0xd4] sm:$0xf] (%p322_p4), %vm398_vm2, %v2858_v20  ;;  %v6060_v20 = vld [vmem:[%s7476_s3 + $0xf0] sm:$0xff] (%p322_p4) }
 0x2c5   : >> { %v2380_v44 = vmax.f32 %v2348_v6, 0.0  ;;  %v2548_v6 = vld [vmem:[#allocation2 + $0x39] sm:$0xff] (%p322_p4)  ;;  %2888 = vst.msk [vmem:[#allocation3 + $0xa4] sm:$0xf] (%p322_p4), %vm398_vm2, %v2852_v15 }
 0x2c6   : >> { %v1746_v7 = vpop.f32.mrf.mxu2  ;;  %v2554_v8 = vld [vmem:[#allocation2 + $0x81] sm:$0xff] (%p322_p4)  ;;  %v6065_v15 = vld [vmem:[%s7476_s3 + $0x118] sm:$0xff] (%p322_p4) }
 0x2c7   : >> { %2412 = vst.msk [vmem:[#allocation2 + $0x91] sm:$0xff] %vm199_vm0, %v2380_v44  ;;  %v1747_v34 = vadd.f32 %v1746_v7, %v1658_v58  ;;  %v1307_v28 = vpop.f32.mrf.mxu0  ;;  %v2853_v44 = vpack.c.bf16 (%p322_p4), %v2817_v51, %v2817_v51  ;;  %v2549_v58 = vld [vmem:[#allocation2 + $0x49] sm:$0xff] (%p322_p4)  ;;  %v2584_v7 = vpack.c.bf16 (%p322_p4), %v2548_v6, %v2548_v6  ;;  %v2590_v48 = vpack.c.bf16 (%p322_p4), %v2554_v8, %v2554_v8  ;;  %v6017_v6 = vld [vmem:[%s7476_s3 + $0x98] sm:$0xff] (%p322_p4)  ;;  %v6010_v8 = vld [vmem:[%s7476_s3 + $0x60] sm:$0xff] (%p322_p4) }
 0x2c8   : >> { %v1308_v5 = vadd.f32 %v1307_v28, %v7553_v29  ;;  %v5257_v28 = vld [vmem:[#allocation3 + $0x88] sm:$0xf0] (%p322_p4)  ;;  %3282 = vmatpush.bf16.msra.mxu0 (%p322_p4), %v6017_v6 }
 0x2c9   : >> { %v2312_v27 = vadd.f32 %v7552_v49, %v1747_v34  ;;  %v5992_v34 = vld [vmem:[#allocation3 + $0x84] sm:$0xf] (%p322_p4)  ;;  %2889 = vst.msk [vmem:[#allocation3 + $0xac] sm:$0xf] (%p322_p4), %vm398_vm2, %v2853_v44  ;;  %v2586_v49 = vpack.c.bf16 (%p322_p4), %v2550_v47, %v2550_v47  ;;  %2661 = vrot.lane.b32.xlu2 (%p322_p4), %v2584_v7, %s6120_s18  ;;  %v5973_v44 = vld [vmem:[%s7476_s3 + $0x38] sm:$0xff] (%p322_p4) }
 0x2ca   : >> { %v1661_v41 = vadd.f32 %v7554_v19, %v1308_v5  ;;  %v2585_v5 = vpack.c.bf16 (%p322_p4), %v2549_v58, %v2549_v58  ;;  %v2818_v19 = vld [vmem:[#allocation2 + $0x10a] sm:$0xff] (%p322_p4)  ;;  %3724 = vmatpush.bf16.msra.mxu2 (%p322_p4), %v5973_v44  ;;  %v2828_v44 = vld [vmem:[#allocation2 + $0x182] sm:$0xff] (%p322_p4) }
 0x2cb   : >> { %v2349_v57 = vadd.f32 %v6717_v56, %v2312_v27  ;;  %v5260_v27 = vor.u32 (%p322_p4), %v5992_v34, %v5257_v28  ;;  %v5465_v52 = vld [vmem:[#allocation3 + $0x98] sm:$0xf0] (%p322_p4)  ;;  %v6016_v7 = vld [vmem:[%s7476_s3 + $0x90] sm:$0xff] (%p322_p4)  ;;  %v6061_v34 = vld [vmem:[%s7476_s3 + $0xf8] sm:$0xff] (%p322_p4) }
 0x2cc   : > { %2663 = vrot.lane.b32.xlu0 (%p322_p4), %v2585_v5, %s6120_s18  ;;  %v5468_v32 = vor.u32 (%p322_p4), %v5952_v30, %v5465_v52  ;;  %v5954_v18 = vld [vmem:[#allocation3 + $0xa4] sm:$0xf] (%p322_p4)  ;;  %4224 = vmatpush.bf16.msrb.mxu1 (%p322_p4), %v6061_v34  ;;  %v6059_v34 = vld [vmem:[%s7476_s3 + $0xe8] sm:$0xff] (%p322_p4) }
 0x2cd   : >> { %v2381_v13 = vmax.f32 %v2349_v57, 0.0  ;;  %5380 = vmatmul.msk.bf16.vlgmr.msra.gmra.mxu1 (%p322_p4), %vm199_vm0, %v5260_v27  ;;  %v5972_v28 = vld [vmem:[%s7476_s3 + $0x30] sm:$0xff] (%p322_p4)  ;;  %v2825_v27 = vld [vmem:[#allocation2 + $0x15a] sm:$0xff] (%p322_p4)  ;;  %3283 = vmatpush.bf16.msra.mxu0 (%p322_p4), %v6016_v7 }
 0x2ce   : >> { %v1749_v62 = vpop.f32.mrf.mxu2  ;;  %v2555_v42 = vld [vmem:[#allocation2 + $0x91] sm:$0xff] (%p322_p4)  ;;  %v2861_v5 = vpack.c.bf16 (%p322_p4), %v2825_v27, %v2825_v27  ;;  %3725 = vmatpush.bf16.msra.mxu2 (%p322_p4), %v5972_v28  ;;  %v2562_v28 = vld [vmem:[#allocation2 + $0xe1] sm:$0xff] (%p322_p4) }
 0x2cf   : >> { %2413 = vst.msk [vmem:[#allocation2 + $0x99] sm:$0xff] %vm199_vm0, %v2381_v13  ;;  %v1750_v3 = vadd.f32 %v1749_v62, %v1661_v41  ;;  %v1309_v59 = vpop.f32.mrf.mxu0  ;;  %v2552_v41 = vld [vmem:[#allocation2 + $0x69] sm:$0xff] (%p322_p4)  ;;  %v2819_v62 = vld [vmem:[#allocation2 + $0x112] sm:$0xff] (%p322_p4)  ;;  %v2598_v27 = vpack.c.bf16 (%p322_p4), %v2562_v28, %v2562_v28 }
 0x2d0   : >> { %v1310_v17 = vadd.f32 %v1309_v59, %v7556_v24  ;;  %v2855_v59 = vpack.c.bf16 (%p322_p4), %v2819_v62, %v2819_v62  ;;  %v5265_v24 = vld [vmem:[#allocation3 + $0x98] sm:$0xf0] (%p322_p4)  ;;  %v5473_v61 = vld [vmem:[#allocation3 + $0xa8] sm:$0xf0] (%p322_p4)  ;;  %2897 = vst.msk [vmem:[#allocation3 + $0xec] sm:$0xf] (%p322_p4), %vm398_vm2, %v2861_v5  ;;  %4225 = vmatpush.bf16.msrb.mxu1 (%p322_p4), %v6060_v20 }
 0x2d1   : >> { %v2313_v14 = vadd.f32 %v7555_v50, %v1750_v3  ;;  %v2854_v3 = vpack.c.bf16 (%p322_p4), %v2818_v19, %v2818_v19  ;;  %v2588_v50 = vpack.c.bf16 (%p322_p4), %v2552_v41, %v2552_v41  ;;  %2667 = vrot.lane.b32.xlu2 (%p322_p4), %v2587_v43, %s6120_s18  ;;  %v5476_v51 = vor.u32 (%p322_p4), %v5954_v18, %v5473_v61  ;;  %v6015_v19 = vld [vmem:[%s7476_s3 + $0x88] sm:$0xff] (%p322_p4)  ;;  %v5968_v30 = vld [vmem:[%s7476_s3 + $0x10] sm:$0xff] (%p322_p4) }
 0x2d2   : >> { %v1663_v21 = vadd.f32 %v7557_v36, %v1310_v17  ;;  %2891 = vst.msk [vmem:[#allocation3 + $0xbc] sm:$0xf] (%p322_p4), %vm398_vm2, %v2855_v59  ;;  %v5950_v17 = vld [vmem:[#allocation3 + $0x84] sm:$0xf] (%p322_p4)  ;;  %v5971_v41 = vld [vmem:[%s7476_s3 + $0x28] sm:$0xff] (%p322_p4)  ;;  %3284 = vmatpush.bf16.msra.mxu0 (%p322_p4), %v6015_v19 }
 0x2d3   : >> { %v2350_v1 = vadd.f32 %v6717_v56, %v2313_v14  ;;  %2890 = vst.msk [vmem:[#allocation3 + $0xb4] sm:$0xf] (%p322_p4), %vm398_vm2, %v2854_v3  ;;  %v5994_v14 = vld [vmem:[#allocation3 + $0x94] sm:$0xf] (%p322_p4)  ;;  %3726 = vmatpush.bf16.msra.mxu2 (%p322_p4), %v5971_v41  ;;  %v5967_v18 = vld [vmem:[%s7476_s3 + $0x8] sm:$0xff] (%p322_p4)  ;;  %v6064_v5 = vld [vmem:[%s7476_s3 + $0x110] sm:$0xff] (%p322_p4) }
 0x2d4   : > { %2669 = vrot.lane.b32.xlu0 (%p322_p4), %v2588_v50, %s6120_s18  ;;  %4226 = vmatpush.bf16.msrb.mxu1 (%p322_p4), %v6059_v34 }
 0x2d5   : >> { %v2382_v4 = vmax.f32 %v2350_v1, 0.0  ;;  %v5457_v1 = vld [vmem:[#allocation3 + $0x88] sm:$0xf0] (%p322_p4) }
 0x2d6   : >> { %v1751_v25 = vpop.f32.mrf.mxu2  ;;  %v5460_v36 = vor.u32 (%p322_p4), %v5950_v17, %v5457_v1  ;;  %v2436_v17 = vld [vmem:[#allocation2 + $0x18] sm:$0xff] (%p322_p4)  ;;  %v2434_v1 = vld [vmem:[#allocation2] sm:$0xff] (%p322_p4) }
 0x2d7   : >> { %2414 = vst.msk [vmem:[#allocation2 + $0xa9] sm:$0xff] %vm199_vm0, %v2382_v4  ;;  %v1752_v12 = vadd.f32 %v1751_v25, %v1663_v21  ;;  %v5268_v4 = vor.u32 (%p322_p4), %v5994_v14, %v5265_v24  ;;  %v2553_v21 = vld [vmem:[#allocation2 + $0x79] sm:$0xff] (%p322_p4)  ;;  %v2820_v25 = vld [vmem:[#allocation2 + $0x122] sm:$0xff] (%p322_p4) }
 0x2d8   : > { %v6014_v14 = vld [vmem:[%s7476_s3 + $0x80] sm:$0xff] (%p322_p4) }
 0x2d9   : >> { %v2314_v38 = vadd.f32 %v6705_v40, %v1752_v12  ;;  %v6880_v40 = vld [vmem:[%s7476_s3 + $0x58] sm:$0xff] (%p322_p4)  ;;  %v2821_v12 = vld [vmem:[#allocation2 + $0x12a] sm:$0xff] (%p322_p4)  ;;  %2673 = vrot.lane.b32.xlu2 (%p322_p4), %v2590_v48, %s6120_s18  ;;  %v5970_v24 = vld [vmem:[%s7476_s3 + $0x20] sm:$0xff] (%p322_p4)  ;;  %3285 = vmatpush.bf16.msra.mxu0 (%p322_p4), %v6014_v14 }
 0x2da   : > { %6078 = vmatpush.bf16.msra.mxu3 (%p322_p4), %v6880_v40  ;;  %v5998_v63 = vld [vmem:[#allocation3 + $0xb4] sm:$0xf] (%p322_p4)  ;;  %v5481_v3 = vld [vmem:[#allocation3 + $0xb8] sm:$0xf0] (%p322_p4)  ;;  %3727 = vmatpush.bf16.msra.mxu2 (%p322_p4), %v5970_v24  ;;  %v2800_v14 = vld [vmem:[#allocation2 + $0x32] sm:$0xff] (%p322_p4) }
 0x2db   : >> { %v2351_v23 = vadd.f32 %v6717_v56, %v2314_v38  ;;  %324 = sbr.rel (!%p322_p4) target bundleno = 98 (0x62), region = 84  ;;  %v2545_v56 = vld [vmem:[#allocation2 + $0x19] sm:$0xff] (%p322_p4)  ;;  %v2589_v38 = vpack.c.bf16 (%p322_p4), %v2553_v21, %v2553_v21  ;;  %v5956_v62 = vld [vmem:[#allocation3 + $0xb4] sm:$0xf] (%p322_p4)  ;;  %v2836_v24 = vpack.c.bf16 (%p322_p4), %v2800_v14, %v2800_v14 }
 0x2dc   : > { %v2581_v2 = vpack.c.bf16 (%p322_p4), %v2545_v56, %v2545_v56  ;;  %v5996_v56 = vld [vmem:[#allocation3 + $0xa4] sm:$0xf] (%p322_p4)  ;;  %v5484_v50 = vor.u32 (%p322_p4), %v5956_v62, %v5481_v3  ;;  %v6013_v21 = vld [vmem:[%s7476_s3 + $0x78] sm:$0xff] (%p322_p4)  ;;  %v5966_v48 = vld [vmem:[%s7476_s3] sm:$0xff] (%p322_p4) }
 0x2dd   : >> { %v2383_v54 = vmax.f32 %v2351_v23, 0.0  ;;  %5381 = vmatmul.msk.bf16.gmra.mxu1 (%p322_p4), %vm199_vm0, %v5268_v4  ;;  %v2856_v23 = vpack.c.bf16 (%p322_p4), %v2820_v25, %v2820_v25  ;;  %v2472_v4 = vpack.c.bf16 (%p322_p4), %v2436_v17, %v2436_v17  ;;  %v5969_v25 = vld [vmem:[%s7476_s3 + $0x18] sm:$0xff] (%p322_p4)  ;;  %3286 = vmatpush.bf16.msra.mxu0 (%p322_p4), %v6013_v21  ;;  %v6058_v62 = vld [vmem:[%s7476_s3 + $0xe0] sm:$0xff] (%p322_p4)  ;;  %2872 = vst.msk [vmem:[#allocation3 + $0x24] sm:$0xf] (%p322_p4), %vm398_vm2, %v2836_v24 }
 0x2de   : > { %2655 = vrot.lane.b32.xlu1 (%p322_p4), %v2581_v2, %s6120_s18  ;;  %6079 = vmatpush.bf16.msra.mxu3 (%p322_p4), %v6892_v10  ;;  %v5273_v2 = vld [vmem:[#allocation3 + $0xa8] sm:$0xf0] (%p322_p4)  ;;  %v2567_v14 = vld [vmem:[#allocation2 + $0x121] sm:$0xff] (%p322_p4) }
 0x2df   : >> { %2415 = vst.msk [vmem:[#allocation2 + $0xb1] sm:$0xff] %vm199_vm0, %v2383_v54  ;;  %v2857_v54 = vpack.c.bf16 (%p322_p4), %v2821_v12, %v2821_v12  ;;  %v5276_v22 = vor.u32 (%p322_p4), %v5996_v56, %v5273_v2  ;;  %v2559_v12 = vld [vmem:[#allocation2 + $0xc1] sm:$0xff] (%p322_p4)  ;;  %3728 = vmatpush.bf16.msra.mxu2 (%p322_p4), %v5969_v25  ;;  %v6012_v2 = vld [vmem:[%s7476_s3 + $0x70] sm:$0xff] (%p322_p4)  ;;  %4227 = vmatpush.bf16.msrb.mxu1 (%p322_p4), %v6058_v62 }
 0x2e0   : > { %2892 = vst.msk [vmem:[#allocation3 + $0xc4] sm:$0xf] %vm398_vm2, %v2856_v23  ;;  %v2826_v23 = vld [vmem:[#allocation2 + $0x16a] sm:$0xff]  ;;  %v2603_v24 = vpack.c.bf16 %v2567_v14, %v2567_v14 }
 0x2e1   : > { %2893 = vst.msk [vmem:[#allocation3 + $0xcc] sm:$0xf] %vm398_vm2, %v2857_v54  ;;  %v2827_v54 = vld [vmem:[#allocation2 + $0x172] sm:$0xff]  ;;  %v2862_v56 = vpack.c.bf16 %v2826_v23, %v2826_v23  ;;  %3287 = vmatpush.bf16.msra.mxu0 %v6012_v2  ;;  %v5505_v23 = vld [vmem:[#allocation3 + $0xe8] sm:$0xf0] }
 0x2e2   : > { %6080 = vmatpush.bf16.msra.mxu3 %v6906_v26  ;;  %2509 = vst.msk [vmem:[#allocation3 + $0x10] sm:$0xf] %vm398_vm2, %v2472_v4  ;;  %v2863_v52 = vpack.c.bf16 %v2827_v54, %v2827_v54  ;;  %v2564_v4 = vld [vmem:[#allocation2 + $0xf9] sm:$0xff]  ;;  %v2441_v54 = vld [vmem:[#allocation2 + $0x50] sm:$0xff] }
 0x2e3   : > { %2898 = vst.msk [vmem:[#allocation3 + $0xf4] sm:$0xf] %vm398_vm2, %v2862_v56  ;;  %3729 = vmatpush.bf16.msra.mxu2 %v5968_v30  ;;  %v2477_v30 = vpack.c.bf16 %v2441_v54, %v2441_v54 }
 0x2e4   : > { %2899 = vst.msk [vmem:[#allocation3 + $0xfc] sm:$0xf] %vm398_vm2, %v2863_v52  ;;  %v2440_v52 = vld [vmem:[#allocation2 + $0x48] sm:$0xff] }
 0x2e5   : > { %2514 = vst.msk [vmem:[#allocation3 + $0x38] sm:$0xf] %vm398_vm2, %v2477_v30 }
 0x2e6   : > { %v2810_v45 = vld [vmem:[#allocation2 + $0xaa] sm:$0xff]  ;;  %v2811_v9 = vld [vmem:[#allocation2 + $0xb2] sm:$0xff]  ;;  %2657 = vrot.lane.b32.xlu1 %v2582_v0, %s6120_s18  ;;  %6081 = vmatpush.bf16.msra.mxu3 %v6922_v16 }
 0x2e7   : > { %v2846_v46 = vpack.c.bf16 %v2810_v45, %v2810_v45  ;;  %v2847_v37 = vpack.c.bf16 %v2811_v9, %v2811_v9  ;;  %v2556_v45 = vld [vmem:[#allocation2 + $0x99] sm:$0xff]  ;;  %v5281_v0 = vld [vmem:[#allocation3 + $0xb8] sm:$0xf0]  ;;  %v2558_v47 = vld [vmem:[#allocation2 + $0xb1] sm:$0xff]  ;;  %3730 = vmatpush.bf16.msra.mxu2 %v5967_v18 }
 0x2e8   : > { %v2592_v9 = vpack.c.bf16 %v2556_v45, %v2556_v45  ;;  %v5284_v33 = vor.u32 %v5998_v63, %v5281_v0  ;;  %v2594_v58 = vpack.c.bf16 %v2558_v47, %v2558_v47  ;;  %v5958_v53 = vld [vmem:[#allocation3 + $0xc4] sm:$0xf]  ;;  %v5489_v43 = vld [vmem:[#allocation3 + $0xc8] sm:$0xf0]  ;;  %v2437_v45 = vld [vmem:[#allocation2 + $0x20] sm:$0xff] }
 0x2e9   : > { %2882 = vst.msk [vmem:[#allocation3 + $0x74] sm:$0xf] %vm398_vm2, %v2846_v46  ;;  %v2591_v46 = vpack.c.bf16 %v2555_v42, %v2555_v42  ;;  %v2435_v42 = vld [vmem:[#allocation2 + $0x8] sm:$0xff]  ;;  %v5492_v63 = vor.u32 %v5958_v53, %v5489_v43  ;;  %v6062_v53 = vld [vmem:[%s7476_s3 + $0x100] sm:$0xff] }
 0x2ea   : > { %2883 = vst.msk [vmem:[#allocation3 + $0x7c] sm:$0xf] %vm398_vm2, %v2847_v37  ;;  %v2859_v37 = vpack.c.bf16 %v2823_v55, %v2823_v55  ;;  %4317 = vmatpush.bf16.msrb.mxu3 %v6065_v15  ;;  %v2438_v55 = vld [vmem:[#allocation2 + $0x30] sm:$0xff]  ;;  %v2439_v15 = vld [vmem:[#allocation2 + $0x38] sm:$0xff]  ;;  %v6006_v21 = vld [vmem:[#allocation3 + $0xf4] sm:$0xf] }
 0x2eb   : > { %2675 = vrot.lane.b32.xlu0 %v2591_v46, %s6120_s18  ;;  %v2471_v46 = vpack.c.bf16 %v2435_v42, %v2435_v42  ;;  %v2474_v0 = vpack.c.bf16 %v2438_v55, %v2438_v55  ;;  %v2475_v6 = vpack.c.bf16 %v2439_v15, %v2439_v15  ;;  %3731 = vmatpush.bf16.msra.mxu2 %v5966_v48  ;;  %v2829_v47 = vld [vmem:[#allocation2 + $0x18a] sm:$0xff]  ;;  %v5964_v15 = vld [vmem:[#allocation3 + $0xf4] sm:$0xf] }
 0x2ec   : > { %2895 = vst.msk [vmem:[#allocation3 + $0xdc] sm:$0xf] %vm398_vm2, %v2859_v37  ;;  %v6011_v37 = vld [vmem:[%s7476_s3 + $0x68] sm:$0xff]  ;;  %v2865_v7 = vpack.c.bf16 %v2829_v47, %v2829_v47 }
 0x2ed   : > { %5382 = vmatmul.msk.bf16.gmra.mxu1 %vm199_vm0, %v5276_v22  ;;  %v6002_v22 = vld [vmem:[#allocation3 + $0xd4] sm:$0xf]  ;;  %2508 = vst.msk [vmem:[#allocation3 + $0x8] sm:$0xf] %vm398_vm2, %v2471_v46  ;;  %3288 = vmatpush.bf16.msra.mxu0 %v6011_v37  ;;  %v5313_v25 = vld [vmem:[#allocation3 + $0xf8] sm:$0xf0] }
 0x2ee   : > { %2665 = vrot.lane.b32.xlu1 %v2586_v49, %s6120_s18  ;;  %v2824_v49 = vld [vmem:[#allocation2 + $0x152] sm:$0xff]  ;;  %2511 = vst.msk [vmem:[#allocation3 + $0x20] sm:$0xf] %vm398_vm2, %v2474_v0  ;;  %4318 = vmatpush.bf16.msrb.mxu3 %v6064_v5  ;;  %v5316_v2 = vor.u32 %v6006_v21, %v5313_v25  ;;  %v2443_v47 = vld [vmem:[#allocation2 + $0x68] sm:$0xff] }
 0x2ef   : > { %2512 = vst.msk [vmem:[#allocation3 + $0x28] sm:$0xf] %vm398_vm2, %v2475_v6  ;;  %3817 = vmatpush.bf16.msrb.mxu2 %v6880_v40  ;;  %v5960_v40 = vld [vmem:[#allocation3 + $0xd4] sm:$0xf]  ;;  %v2803_v0 = vld [vmem:[#allocation2 + $0x52] sm:$0xff]  ;;  %v2479_v34 = vpack.c.bf16 %v2443_v47, %v2443_v47 }
 0x2f0   : > { %v5948_v29 = vld [vmem:[#allocation3 + $0x74] sm:$0xf]  ;;  %2901 = vst.msk [vmem:[#allocation3 + $0x10c] sm:$0xf] %vm398_vm2, %v2865_v7  ;;  %v5513_v6 = vld [vmem:[#allocation3 + $0xf8] sm:$0xf0] }
 0x2f1   : > { %v5449_v57 = vld [vmem:[#allocation3 + $0x78] sm:$0xf0]  ;;  %3289 = vmatpush.bf16.msra.mxu0 %v6010_v8  ;;  %2516 = vst.msk [vmem:[#allocation3 + $0x48] sm:$0xf] %vm398_vm2, %v2479_v34  ;;  %v2444_v21 = vld [vmem:[#allocation2 + $0x78] sm:$0xff] }
 0x2f2   : > { %v5452_v13 = vor.u32 %v5948_v29, %v5449_v57  ;;  %v2860_v29 = vpack.c.bf16 %v2824_v49, %v2824_v49  ;;  %v6000_v57 = vld [vmem:[#allocation3 + $0xc4] sm:$0xf]  ;;  %v2561_v49 = vld [vmem:[#allocation2 + $0xd9] sm:$0xff] }
 0x2f3   : > { %2681 = vrot.lane.b32.xlu0 %v2594_v58, %s6120_s18  ;;  %v2864_v58 = vpack.c.bf16 %v2828_v44, %v2828_v44  ;;  %v5497_v19 = vld [vmem:[#allocation3 + $0xd8] sm:$0xf0]  ;;  %3818 = vmatpush.bf16.msrb.mxu2 %v6892_v10  ;;  %v2442_v44 = vld [vmem:[#allocation2 + $0x60] sm:$0xff] }
 0x2f4   : > { %5572 = vmatmul.msk.bf16.vlgmr.msra.gmra.mxu3 %vm199_vm0, %v5452_v13  ;;  %2896 = vst.msk [vmem:[#allocation3 + $0xe4] sm:$0xf] %vm398_vm2, %v2860_v29  ;;  %v5289_v13 = vld [vmem:[#allocation3 + $0xc8] sm:$0xf0]  ;;  %v2597_v29 = vpack.c.bf16 %v2561_v49, %v2561_v49  ;;  %v5500_v3 = vor.u32 %v5960_v40, %v5497_v19  ;;  %v2478_v7 = vpack.c.bf16 %v2442_v44, %v2442_v44 }
 0x2f5   : > { %v5292_v59 = vor.u32 %v6000_v57, %v5289_v13  ;;  %3375 = vmatpush.bf16.msrb.mxu0 %v6875_v35  ;;  %2900 = vst.msk [vmem:[#allocation3 + $0x104] sm:$0xf] %vm398_vm2, %v2864_v58  ;;  %v5305_v57 = vld [vmem:[#allocation3 + $0xe8] sm:$0xf0]  ;;  %v5516_v49 = vor.u32 %v5964_v15, %v5513_v6  ;;  %v2446_v15 = vld [vmem:[#allocation2 + $0x90] sm:$0xff] }
 0x2f6   : > { %2671 = vrot.lane.b32.xlu1 %v2589_v38, %s6120_s18  ;;  %v2595_v38 = vpack.c.bf16 %v2559_v12, %v2559_v12  ;;  %2515 = vst.msk [vmem:[#allocation3 + $0x40] sm:$0xf] %vm398_vm2, %v2478_v7  ;;  %v2482_v44 = vpack.c.bf16 %v2446_v15, %v2446_v15 }
 0x2f7   : > { %3819 = vmatpush.bf16.msrb.mxu2 %v6906_v26  ;;  %v6056_v26 = vld [vmem:[%s7476_s3 + $0xd0] sm:$0xff]  ;;  %v5321_v48 = vld [vmem:[#allocation3 + $0x108] sm:$0xf0] }
 0x2f8   : > { %2519 = vst.msk [vmem:[#allocation3 + $0x60] sm:$0xf] %vm398_vm2, %v2482_v44 }
 0x2f9   : > { %3376 = vmatpush.bf16.msrb.mxu0 %v6887_v39  ;;  %v6057_v39 = vld [vmem:[%s7476_s3 + $0xd8] sm:$0xff] }
 0x2fa   : > { %4228 = vmatpush.bf16.msrb.mxu1 %v6057_v39 }
 0x2fb   : > { %v6004_v35 = vld [vmem:[#allocation3 + $0xe4] sm:$0xf]  ;;  %2687 = vrot.lane.b32.xlu0 %v2597_v29, %s6120_s18  ;;  %3820 = vmatpush.bf16.msrb.mxu2 %v6922_v16  ;;  %v6055_v16 = vld [vmem:[%s7476_s3 + $0xc8] sm:$0xff] }
 0x2fc   : > { %v5308_v41 = vor.u32 %v6004_v35, %v5305_v57  ;;  %v6008_v8 = vld [vmem:[#allocation3 + $0x104] sm:$0xf] }
 0x2fd   : > { %5383 = vmatmul.msk.bf16.gmra.mxu1 %vm199_vm0, %v5284_v33  ;;  %v2557_v33 = vld [vmem:[#allocation2 + $0xa9] sm:$0xff]  ;;  %3377 = vmatpush.bf16.msrb.mxu0 %v6901_v60  ;;  %v5324_v58 = vor.u32 %v6008_v8, %v5321_v48  ;;  %v2563_v57 = vld [vmem:[#allocation2 + $0xf1] sm:$0xff] }
 0x2fe   : > { %2677 = vrot.lane.b32.xlu1 %v2592_v9, %s6120_s18  ;;  %v2473_v9 = vpack.c.bf16 %v2437_v45, %v2437_v45  ;;  %4229 = vmatpush.bf16.msrb.mxu1 %v6056_v26  ;;  %v2599_v40 = vpack.c.bf16 %v2563_v57, %v2563_v57  ;;  %v2568_v26 = vld [vmem:[#allocation2 + $0x129] sm:$0xff]  ;;  %v2447_v48 = vld [vmem:[#allocation2 + $0x98] sm:$0xff] }
 0x2ff   : > { %v2483_v6 = vpack.c.bf16 %v2447_v48, %v2447_v48  ;;  %v2450_v48 = vld [vmem:[#allocation2 + $0xc0] sm:$0xff] }
 0x300   : > { %2510 = vst.msk [vmem:[#allocation3 + $0x18] sm:$0xf] %vm398_vm2, %v2473_v9 }
 0x301   : > { %3378 = vmatpush.bf16.msrb.mxu0 %v6917_v11  ;;  %v2801_v11 = vld [vmem:[#allocation2 + $0x3a] sm:$0xff]  ;;  %2520 = vst.msk [vmem:[#allocation3 + $0x68] sm:$0xf] %vm398_vm2, %v2483_v6  ;;  %v2486_v6 = vpack.c.bf16 %v2450_v48, %v2450_v48 }
 0x302   : > { %v2837_v17 = vpack.c.bf16 %v2801_v11, %v2801_v11  ;;  %4230 = vmatpush.bf16.msrb.mxu1 %v6055_v16  ;;  %v2604_v11 = vpack.c.bf16 %v2568_v26, %v2568_v26 }
 0x303   : > { %2523 = vst.msk [vmem:[#allocation3 + $0x80] sm:$0xf] %vm398_vm2, %v2486_v6 }
 0x304   : > { %5573 = vmatmul.msk.bf16.gmra.mxu3 %vm199_vm0, %v5460_v36  ;;  %v2470_v36 = vpack.c.bf16 %v2434_v1, %v2434_v1  ;;  %v6063_v1 = vld [vmem:[%s7476_s3 + $0x108] sm:$0xff]  ;;  %2873 = vst.msk [vmem:[#allocation3 + $0x2c] sm:$0xf] %vm398_vm2, %v2837_v17 }
 0x305   : > { %4319 = vmatpush.bf16.msrb.mxu3 %v6063_v1  ;;  %v6022_v1 = vld [vmem:[#allocation3 + $0x24] sm:$0xf] }
 0x306   : > { %2507 = vst.msk [vmem:[#allocation3] sm:$0xf] %vm398_vm2, %v2470_v36  ;;  %2683 = vrot.lane.b32.xlu1 %v2595_v38, %s6120_s18  ;;  %v2600_v36 = vpack.c.bf16 %v2564_v4, %v2564_v4  ;;  %v5962_v38 = vld [vmem:[#allocation3 + $0xe4] sm:$0xf] }
 0x307   : > { %v5508_v43 = vor.u32 %v5962_v38, %v5505_v23 }
 0x308   : > { %2693 = vrot.lane.b32.xlu0 %v2600_v36, %s6120_s18  ;;  %v2445_v36 = vld [vmem:[#allocation2 + $0x80] sm:$0xff] }
 0x309   : > { %4320 = vmatpush.bf16.msrb.mxu3 %v6062_v53  ;;  %v2481_v25 = vpack.c.bf16 %v2445_v36, %v2445_v36 }
 0x30b   : > { %v5609_v4 = vld [vmem:[#allocation3 + $0x28] sm:$0xf0]  ;;  %2518 = vst.msk [vmem:[#allocation3 + $0x58] sm:$0xf] %vm398_vm2, %v2481_v25 }
 0x30d   : > { %5384 = vmatmul.msk.bf16.gmra.mxu1 %vm199_vm0, %v5292_v59  ;;  %v2560_v59 = vld [vmem:[#allocation2 + $0xc9] sm:$0xff] }
 0x30e   : > { %2689 = vrot.lane.b32.xlu1 %v2598_v27, %s6120_s18  ;;  %v2596_v10 = vpack.c.bf16 %v2560_v59, %v2560_v59  ;;  %v2804_v59 = vld [vmem:[#allocation2 + $0x62] sm:$0xff] }
 0x310   : > { %2699 = vrot.lane.b32.xlu0 %v2603_v24, %s6120_s18 }
 0x314   : > { %5574 = vmatmul.msk.bf16.gmra.mxu3 %vm199_vm0, %v5468_v32  ;;  %v5297_v32 = vld [vmem:[#allocation3 + $0xd8] sm:$0xf0] }
 0x315   : > { %v5300_v31 = vor.u32 %v6002_v22, %v5297_v32  ;;  %v2476_v22 = vpack.c.bf16 %v2440_v52, %v2440_v52  ;;  %v6054_v32 = vld [vmem:[%s7476_s3 + $0xc0] sm:$0xff] }
 0x316   : > { %4231 = vmatpush.bf16.msrb.mxu1 %v6054_v32  ;;  %v2566_v32 = vld [vmem:[#allocation2 + $0x111] sm:$0xff] }
 0x317   : > { %2513 = vst.msk [vmem:[#allocation3 + $0x30] sm:$0xf] %vm398_vm2, %v2476_v22 }
 0x31b   : > { %v2660_v61 = vpop.permute.xlu2 %2659 }
 0x31c   : > { %2764 = vst.msk [vmem:[#allocation3 + $0x20] sm:$0xf] %vm651_vm3, %v2660_v61  ;;  %v2839_v61 = vpack.c.bf16 %v2803_v0, %v2803_v0  ;;  %v2570_v0 = vld [vmem:[#allocation2 + $0x141] sm:$0xff] }
 0x31d   : > { %5385 = vmatmul.msk.bf16.gmra.mxu1 %vm199_vm0, %v5300_v31 }
 0x31e   : > { %2875 = vst.msk [vmem:[#allocation3 + $0x3c] sm:$0xf] %vm398_vm2, %v2839_v61 }
 0x323   : > { %v2662_v13 = vpop.permute.xlu2 %2661  ;;  %v5207_v5 = vld [vmem:[#allocation3 + $0x20] sm:$0xf] }
 0x324   : > { %5575 = vmatmul.msk.bf16.gmra.mxu3 %vm199_vm0, %v5476_v51  ;;  %v2593_v51 = vpack.c.bf16 %v2557_v33, %v2557_v33  ;;  %2765 = vst.msk [vmem:[#allocation3 + $0x28] sm:$0xf] %vm651_vm3, %v2662_v13  ;;  %v2565_v33 = vld [vmem:[#allocation2 + $0x109] sm:$0xff] }
 0x325   : > { %v2652_v60 = vpop.permute.xlu0 %2651  ;;  %v5607_v17 = vld [vmem:[#allocation3 + $0x20] sm:$0xf]  ;;  %v5617_v8 = vld [vmem:[#allocation3 + $0x38] sm:$0xf0] }
 0x326   : > { %2679 = vrot.lane.b32.xlu2 %v2593_v51, %s6120_s18  ;;  %2760 = vst.msk [vmem:[#allocation3] sm:$0xf] %vm651_vm3, %v2652_v60  ;;  %v2601_v51 = vpack.c.bf16 %v2565_v33, %v2565_v33 }
 0x328   : > { %2695 = vrot.lane.b32.xlu1 %v2601_v51, %s6120_s18 }
 0x32b   : > { %v2668_v27 = vpop.permute.xlu2 %2667  ;;  %v5981_v35 = vld [vmem:[#allocation3 + $0x24] sm:$0xf0] }
 0x32c   : > { %2768 = vst.msk [vmem:[#allocation3 + $0x40] sm:$0xf] %vm651_vm3, %v2668_v27  ;;  %v5208_v19 = vor.u32 %v5981_v35, %v5207_v5  ;;  %v6023_v16 = vld [vmem:[#allocation3 + $0x24] sm:$0xf0] }
 0x32d   : > { %5386 = vmatmul.msk.bf16.gmra.mxu1 %vm199_vm0, %v5308_v41  ;;  %v5391_v46 = vld [vmem:[#allocation3] sm:$0xf]  ;;  %v5608_v54 = vor.u32 %v6023_v16, %v5607_v17  ;;  %v2448_v16 = vld [vmem:[#allocation2 + $0xa8] sm:$0xff] }
 0x32e   : > { %2685 = vrot.lane.b32.xlu2 %v2596_v10, %s6120_s18  ;;  %v2805_v10 = vld [vmem:[#allocation2 + $0x6a] sm:$0xff] }
 0x32f   : > { %v2841_v60 = vpack.c.bf16 %v2805_v10, %v2805_v10 }
 0x330   : > { %2701 = vrot.lane.b32.xlu1 %v2604_v11, %s6120_s18 }
 0x331   : > { %2877 = vst.msk [vmem:[#allocation3 + $0x4c] sm:$0xf] %vm398_vm2, %v2841_v60  ;;  %v2571_v60 = vld [vmem:[#allocation2 + $0x151] sm:$0xff] }
 0x332   : > { %v2607_v26 = vpack.c.bf16 %v2571_v60, %v2571_v60 }
 0x333   : > { %v5623_v14 = vld [vmem:[#allocation3 + $0x40] sm:$0xf] }
 0x334   : > { %5576 = vmatmul.msk.bf16.gmra.mxu3 %vm199_vm0, %v5484_v50  ;;  %v2654_v56 = vpop.permute.xlu0 %2653 }
 0x335   : > { %2761 = vst.msk [vmem:[#allocation3 + $0x8] sm:$0xf] %vm651_vm3, %v2654_v56  ;;  %v5612_v56 = vor.u32 %v6022_v1, %v5609_v4  ;;  %v2449_v1 = vld [vmem:[#allocation2 + $0xb0] sm:$0xff]  ;;  %v2484_v4 = vpack.c.bf16 %v2448_v16, %v2448_v16 }
 0x336   : > { %2691 = vrot.lane.b32.xlu2 %v2599_v40, %s6120_s18  ;;  %v2485_v36 = vpack.c.bf16 %v2449_v1, %v2449_v1  ;;  %v2453_v1 = vld [vmem:[#allocation2 + $0xe0] sm:$0xff] }
 0x337   : > { %2521 = vst.msk [vmem:[#allocation3 + $0x70] sm:$0xf] %vm398_vm2, %v2484_v4  ;;  %v2452_v4 = vld [vmem:[#allocation2 + $0xd8] sm:$0xff] }
 0x338   : > { %2707 = vrot.lane.b32.xlu1 %v2607_v26, %s6120_s18  ;;  %v5625_v17 = vld [vmem:[#allocation3 + $0x48] sm:$0xf0]  ;;  %2522 = vst.msk [vmem:[#allocation3 + $0x78] sm:$0xf] %vm398_vm2, %v2485_v36  ;;  %v2576_v26 = vld [vmem:[#allocation2 + $0x189] sm:$0xff]  ;;  %v2489_v36 = vpack.c.bf16 %v2453_v1, %v2453_v1 }
 0x33a   : > { %2526 = vst.msk [vmem:[#allocation3 + $0x98] sm:$0xf] %vm398_vm2, %v2489_v36  ;;  %v5657_v36 = vld [vmem:[#allocation3 + $0x88] sm:$0xf0] }
 0x33c   : > { %v5935_v55 = vld [vmem:[#allocation3 + $0x4] sm:$0xf0] }
 0x33d   : > { %5387 = vmatmul.msk.bf16.gmra.mxu1 %vm199_vm0, %v5316_v2  ;;  %v5392_v37 = vor.u32 %v5935_v55, %v5391_v46  ;;  %v2674_v2 = vpop.permute.xlu2 %2673  ;;  %v2806_v55 = vld [vmem:[#allocation2 + $0x7a] sm:$0xff] }
 0x33e   : > { %v2664_v20 = vpop.permute.xlu0 %2663  ;;  %2771 = vst.msk [vmem:[#allocation3 + $0x58] sm:$0xf] %vm651_vm3, %v2674_v2 }
 0x33f   : > { %2766 = vst.msk [vmem:[#allocation3 + $0x30] sm:$0xf] %vm651_vm3, %v2664_v20  ;;  %3732 = vmatmul.bf16.vlgmr.msra.gmra.mxu2 %v5392_v37  ;;  %v2807_v20 = vld [vmem:[#allocation2 + $0x82] sm:$0xff]  ;;  %v2842_v37 = vpack.c.bf16 %v2806_v55, %v2806_v55 }
 0x341   : > { %2878 = vst.msk [vmem:[#allocation3 + $0x54] sm:$0xf] %vm398_vm2, %v2842_v37  ;;  %v2573_v37 = vld [vmem:[#allocation2 + $0x169] sm:$0xff] }
 0x344   : > { %5577 = vmatmul.msk.bf16.gmra.mxu3 %vm199_vm0, %v5492_v63  ;;  %v2802_v63 = vld [vmem:[#allocation2 + $0x4a] sm:$0xff] }
 0x345   : > { %v2838_v18 = vpack.c.bf16 %v2802_v63, %v2802_v63  ;;  %v2843_v63 = vpack.c.bf16 %v2807_v20, %v2807_v20  ;;  %v2574_v20 = vld [vmem:[#allocation2 + $0x171] sm:$0xff] }
 0x346   : > { %v2670_v29 = vpop.permute.xlu0 %2669  ;;  %v5215_v52 = vld [vmem:[#allocation3 + $0x30] sm:$0xf] }
 0x347   : > { %2874 = vst.msk [vmem:[#allocation3 + $0x34] sm:$0xf] %vm398_vm2, %v2838_v18  ;;  %v2606_v18 = vpack.c.bf16 %v2570_v0, %v2570_v0  ;;  %v5615_v61 = vld [vmem:[#allocation3 + $0x30] sm:$0xf]  ;;  %v2609_v0 = vpack.c.bf16 %v2573_v37, %v2573_v37 }
 0x348   : > { %2769 = vst.msk [vmem:[#allocation3 + $0x48] sm:$0xf] %vm651_vm3, %v2670_v29  ;;  %v5223_v29 = vld [vmem:[#allocation3 + $0x40] sm:$0xf]  ;;  %v5415_v57 = vld [vmem:[#allocation3 + $0x30] sm:$0xf] }
 0x349   : > { %2705 = vrot.lane.b32.xlu0 %v2606_v18, %s6120_s18  ;;  %2879 = vst.msk [vmem:[#allocation3 + $0x5c] sm:$0xf] %vm398_vm2, %v2843_v63  ;;  %v2610_v63 = vpack.c.bf16 %v2574_v20, %v2574_v20 }
 0x34a   : > { %v7090_v28 = vpop.f32.mrf.mxu1 }
 0x34b   : > { %2713 = vrot.lane.b32.xlu1 %v2610_v63, %s6120_s18 }
 0x34d   : > { %5388 = vmatmul.msk.bf16.gmra.mxu1 %vm199_vm0, %v5324_v58 }
 0x34e   : > { %v6024_v51 = vld [vmem:[#allocation3 + $0x34] sm:$0xf] }
 0x34f   : > { %v5620_v34 = vor.u32 %v6024_v51, %v5617_v8  ;;  %v5985_v5 = vld [vmem:[#allocation3 + $0x44] sm:$0xf0]  ;;  %v2451_v8 = vld [vmem:[#allocation2 + $0xc8] sm:$0xff] }
 0x350   : > { %v2656_v50 = vpop.permute.xlu1 %2655  ;;  %v5224_v35 = vor.u32 %v5985_v5, %v5223_v29  ;;  %v6027_v11 = vld [vmem:[#allocation3 + $0x44] sm:$0xf0]  ;;  %v5633_v51 = vld [vmem:[#allocation3 + $0x58] sm:$0xf0]  ;;  %v2487_v15 = vpack.c.bf16 %v2451_v8, %v2451_v8 }
 0x351   : > { %2762 = vst.msk [vmem:[#allocation3 + $0x10] sm:$0xf] %vm651_vm3, %v2656_v50  ;;  %v2840_v50 = vpack.c.bf16 %v2804_v59, %v2804_v59  ;;  %v2809_v59 = vld [vmem:[#allocation2 + $0x9a] sm:$0xff]  ;;  %2711 = vrot.lane.b32.xlu0 %v2609_v0, %s6120_s18 }
 0x352   : > { %2524 = vst.msk [vmem:[#allocation3 + $0x88] sm:$0xf] %vm398_vm2, %v2487_v15  ;;  %v2455_v8 = vld [vmem:[#allocation2 + $0xf8] sm:$0xff] }
 0x353   : > { %2876 = vst.msk [vmem:[#allocation3 + $0x44] sm:$0xf] %vm398_vm2, %v2840_v50  ;;  %v2845_v50 = vpack.c.bf16 %v2809_v59, %v2809_v59  ;;  %v2491_v15 = vpack.c.bf16 %v2455_v8, %v2455_v8 }
 0x354   : > { %5578 = vmatmul.msk.bf16.gmra.mxu3 %vm199_vm0, %v5500_v3  ;;  %v7101_v3 = vpop.f32.mrf.mxu1 }
 0x355   : > { %2881 = vst.msk [vmem:[#allocation3 + $0x6c] sm:$0xf] %vm398_vm2, %v2845_v50 }
 0x356   : > { %2528 = vst.msk [vmem:[#allocation3 + $0xa8] sm:$0xf] %vm398_vm2, %v2491_v15 }
 0x358   : > { %v2658_v12 = vpop.permute.xlu1 %2657  ;;  %v5199_v45 = vld [vmem:[#allocation3 + $0x10] sm:$0xf] }
 0x359   : > { %2763 = vst.msk [vmem:[#allocation3 + $0x18] sm:$0xf] %vm651_vm3, %v2658_v12  ;;  %v5399_v41 = vld [vmem:[#allocation3 + $0x10] sm:$0xf]  ;;  %v2480_v12 = vpack.c.bf16 %v2444_v21, %v2444_v21 }
 0x35a   : > { %v6026_v24 = vld [vmem:[#allocation3 + $0x44] sm:$0xf] }
 0x35b   : > { %2517 = vst.msk [vmem:[#allocation3 + $0x50] sm:$0xf] %vm398_vm2, %v2480_v12  ;;  %v5624_v12 = vor.u32 %v6027_v11, %v5623_v14  ;;  %v2612_v14 = vpack.c.bf16 %v2576_v26, %v2576_v26 }
 0x35c   : > { %v7109_v23 = vpop.f32.mrf.mxu1  ;;  %v5641_v16 = vld [vmem:[#allocation3 + $0x68] sm:$0xf0] }
 0x35d   : > { %4232 = vmatmul.bf16.vlgmr.msrb.gmra.mxu1 %v5608_v54  ;;  %v2676_v27 = vpop.permute.xlu0 %2675  ;;  %v5628_v54 = vor.u32 %v6026_v24, %v5625_v17  ;;  %2717 = vrot.lane.b32.xlu0 %v2612_v14, %s6120_s18 }
 0x35e   : > { %2772 = vst.msk [vmem:[#allocation3 + $0x60] sm:$0xf] %vm651_vm3, %v2676_v27 }
 0x360   : > { %v5979_v42 = vld [vmem:[#allocation3 + $0x14] sm:$0xf0]  ;;  %v2666_v31 = vpop.permute.xlu1 %2665 }
 0x361   : > { %v5200_v9 = vor.u32 %v5979_v42, %v5199_v45  ;;  %2767 = vst.msk [vmem:[#allocation3 + $0x38] sm:$0xf] %vm651_vm3, %v2666_v31  ;;  %v5937_v13 = vld [vmem:[#allocation3 + $0x14] sm:$0xf0]  ;;  %v5939_v45 = vld [vmem:[#allocation3 + $0x24] sm:$0xf0]  ;;  %v2602_v42 = vpack.c.bf16 %v2566_v32, %v2566_v32 }
 0x362   : > { %v5400_v39 = vor.u32 %v5937_v13, %v5399_v41 }
 0x363   : > { %3290 = vmatmul.bf16.vlgmr.msra.gmra.mxu0 %v5200_v9  ;;  %2697 = vrot.lane.b32.xlu2 %v2602_v42, %s6120_s18 }
 0x364   : > { %5579 = vmatmul.msk.bf16.gmra.mxu3 %vm199_vm0, %v5508_v43  ;;  %3737 = vmatmul.bf16.gmra.mxu2 %v5400_v39  ;;  %v5407_v43 = vld [vmem:[#allocation3 + $0x20] sm:$0xf]  ;;  %v7119_v9 = vpop.f32.mrf.mxu1 }
 0x365   : > { %v5408_v46 = vor.u32 %v5939_v45, %v5407_v43  ;;  %v2808_v39 = vld [vmem:[#allocation2 + $0x92] sm:$0xff]  ;;  %v2682_v2 = vpop.permute.xlu0 %2681 }
 0x366   : > { %v2844_v10 = vpack.c.bf16 %v2808_v39, %v2808_v39  ;;  %2775 = vst.msk [vmem:[#allocation3 + $0x78] sm:$0xf] %vm651_vm3, %v2682_v2  ;;  %v5943_v43 = vld [vmem:[#allocation3 + $0x44] sm:$0xf0]  ;;  %v5239_v5 = vld [vmem:[#allocation3 + $0x60] sm:$0xf] }
 0x367   : > { %v5945_v39 = vld [vmem:[#allocation3 + $0x54] sm:$0xf0]  ;;  %v5639_v11 = vld [vmem:[#allocation3 + $0x60] sm:$0xf] }
 0x368   : > { %v2672_v30 = vpop.permute.xlu1 %2671  ;;  %v5983_v22 = vld [vmem:[#allocation3 + $0x34] sm:$0xf0]  ;;  %2880 = vst.msk [vmem:[#allocation3 + $0x64] sm:$0xf] %vm398_vm2, %v2844_v10 }
 0x369   : > { %2770 = vst.msk [vmem:[#allocation3 + $0x50] sm:$0xf] %vm651_vm3, %v2672_v30  ;;  %v5216_v53 = vor.u32 %v5983_v22, %v5215_v52  ;;  %v6025_v33 = vld [vmem:[#allocation3 + $0x34] sm:$0xf0]  ;;  %v2569_v22 = vld [vmem:[#allocation2 + $0x139] sm:$0xff] }
 0x36a   : > { %v5616_v7 = vor.u32 %v6025_v33, %v5615_v61  ;;  %v5941_v13 = vld [vmem:[#allocation3 + $0x34] sm:$0xf0]  ;;  %v2605_v45 = vpack.c.bf16 %v2569_v22, %v2569_v22  ;;  %v6028_v33 = vld [vmem:[#allocation3 + $0x54] sm:$0xf] }
 0x36b   : > { %v5416_v41 = vor.u32 %v5941_v13, %v5415_v57  ;;  %v5987_v52 = vld [vmem:[#allocation3 + $0x54] sm:$0xf0]  ;;  %v2572_v57 = vld [vmem:[#allocation2 + $0x159] sm:$0xff] }
 0x36c   : > { %v7126_v58 = vpop.f32.mrf.mxu1  ;;  %2703 = vrot.lane.b32.xlu2 %v2605_v45, %s6120_s18  ;;  %v6029_v61 = vld [vmem:[#allocation3 + $0x54] sm:$0xf0]  ;;  %v2608_v59 = vpack.c.bf16 %v2572_v57, %v2572_v57  ;;  %v5439_v45 = vld [vmem:[#allocation3 + $0x60] sm:$0xf] }
 0x36d   : > { %4237 = vmatmul.bf16.gmra.mxu1 %v5616_v7  ;;  %v2688_v22 = vpop.permute.xlu0 %2687 }
 0x36f   : > { %v6030_v17 = vld [vmem:[#allocation3 + $0x64] sm:$0xf] }
 0x370   : > { %v5231_v30 = vld [vmem:[#allocation3 + $0x50] sm:$0xf] }
 0x371   : > { %v5232_v32 = vor.u32 %v5987_v52, %v5231_v30  ;;  %v5631_v18 = vld [vmem:[#allocation3 + $0x50] sm:$0xf]  ;;  %v5644_v30 = vor.u32 %v6030_v17, %v5641_v16 }
 0x373   : > { %3295 = vmatmul.bf16.gmra.mxu0 %v5208_v19 }
 0x374   : > { %5580 = vmatmul.msk.bf16.gmra.mxu3 %vm199_vm0, %v5516_v49  ;;  %3742 = vmatmul.bf16.gmra.mxu2 %v5408_v46  ;;  %v2678_v49 = vpop.permute.xlu1 %2677  ;;  %v7135_v19 = vpop.f32.mrf.mxu1 }
 0x375   : > { %2773 = vst.msk [vmem:[#allocation3 + $0x68] sm:$0xf] %vm651_vm3, %v2678_v49  ;;  %v5636_v49 = vor.u32 %v6028_v33, %v5633_v51  ;;  %2709 = vrot.lane.b32.xlu2 %v2608_v59, %s6120_s18  ;;  %v5649_v33 = vld [vmem:[#allocation3 + $0x78] sm:$0xf0]  ;;  %v2454_v51 = vld [vmem:[#allocation2 + $0xf0] sm:$0xff] }
 0x376   : > { %v2490_v48 = vpack.c.bf16 %v2454_v51, %v2454_v51  ;;  %v5949_v59 = vld [vmem:[#allocation3 + $0x74] sm:$0xf0] }
 0x377   : > { %v7099_v62 = vpop.f32.mrf.mxu3 }
 0x378   : > { %2527 = vst.msk [vmem:[#allocation3 + $0xa0] sm:$0xf] %vm398_vm2, %v2490_v48 }
 0x37c   : > { %v7142_v25 = vpop.f32.mrf.mxu1  ;;  %v2684_v29 = vpop.permute.xlu1 %2683  ;;  %v6031_v24 = vld [vmem:[#allocation3 + $0x64] sm:$0xf0] }
 0x37d   : > { %4242 = vmatmul.bf16.gmra.mxu1 %v5624_v12  ;;  %2776 = vst.msk [vmem:[#allocation3 + $0x80] sm:$0xf] %vm651_vm3, %v2684_v29  ;;  %v2488_v12 = vpack.c.bf16 %v2452_v4, %v2452_v4  ;;  %v5640_v2 = vor.u32 %v6031_v24, %v5639_v11  ;;  %v2577_v24 = vld [vmem:[#allocation2 + $0x199] sm:$0xff]  ;;  %v6034_v4 = vld [vmem:[#allocation3 + $0x84] sm:$0xf] }
 0x37e   : > { %v2613_v17 = vpack.c.bf16 %v2577_v24, %v2577_v24 }
 0x37f   : > { %v7107_v38 = vpop.f32.mrf.mxu3  ;;  %2525 = vst.msk [vmem:[#allocation3 + $0x90] sm:$0xf] %vm398_vm2, %v2488_v12  ;;  %v2457_v12 = vld [vmem:[#allocation2 + $0x110] sm:$0xff] }
 0x380   : > { %2778 = vst.msk [vmem:[#allocation3 + $0x90] sm:$0xf] %vm651_vm3, %v2688_v22  ;;  %2719 = vrot.lane.b32.xlu1 %v2613_v17, %s6120_s18 }
 0x383   : > { %3300 = vmatmul.bf16.gmra.mxu0 %v5216_v53  ;;  %v5423_v53 = vld [vmem:[#allocation3 + $0x40] sm:$0xf] }
 0x384   : > { %5781 = vmatmul.msk.bf16.vlgmr.msrb.gmra.mxu3 %vm199_vm0, %v5612_v56  ;;  %3747 = vmatmul.bf16.gmra.mxu2 %v5416_v41  ;;  %v2680_v56 = vpop.permute.xlu2 %2679  ;;  %v7152_v46 = vpop.f32.mrf.mxu1  ;;  %v5424_v55 = vor.u32 %v5943_v43, %v5423_v53  ;;  %v5431_v41 = vld [vmem:[#allocation3 + $0x50] sm:$0xf]  ;;  %v5991_v53 = vld [vmem:[#allocation3 + $0x74] sm:$0xf0]  ;;  %v5655_v16 = vld [vmem:[#allocation3 + $0x80] sm:$0xf] }
 0x385   : > { %2774 = vst.msk [vmem:[#allocation3 + $0x70] sm:$0xf] %vm651_vm3, %v2680_v56  ;;  %v5432_v60 = vor.u32 %v5945_v39, %v5431_v41  ;;  %v2690_v52 = vpop.permute.xlu1 %2689 }
 0x386   : > { %2779 = vst.msk [vmem:[#allocation3 + $0x98] sm:$0xf] %vm651_vm3, %v2690_v52 }
 0x387   : > { %v7117_v31 = vpop.f32.mrf.mxu3 }
 0x38c   : > { %v7158_v7 = vpop.f32.mrf.mxu1  ;;  %v2686_v27 = vpop.permute.xlu2 %2685  ;;  %v5647_v0 = vld [vmem:[#allocation3 + $0x70] sm:$0xf] }
 0x38d   : > { %2777 = vst.msk [vmem:[#allocation3 + $0x88] sm:$0xf] %vm651_vm3, %v2686_v27  ;;  %v5447_v39 = vld [vmem:[#allocation3 + $0x70] sm:$0xf] }
 0x38e   : > { %v5448_v11 = vor.u32 %v5949_v59, %v5447_v39 }
 0x38f   : > { %v7124_v47 = vpop.f32.mrf.mxu3 }
 0x393   : > { %3305 = vmatmul.bf16.gmra.mxu0 %v5224_v35  ;;  %v5989_v35 = vld [vmem:[#allocation3 + $0x64] sm:$0xf0] }
 0x394   : > { %5782 = vmatmul.msk.bf16.gmra.mxu3 %vm199_vm0, %v5620_v34  ;;  %3752 = vmatmul.bf16.gmra.mxu2 %v5424_v55  ;;  %v5632_v34 = vor.u32 %v6029_v61, %v5631_v18  ;;  %v5240_v13 = vor.u32 %v5989_v35, %v5239_v5  ;;  %v7168_v50 = vpop.f32.mrf.mxu1  ;;  %v5947_v55 = vld [vmem:[#allocation3 + $0x64] sm:$0xf0]  ;;  %v6033_v18 = vld [vmem:[#allocation3 + $0x74] sm:$0xf0]  ;;  %v6032_v61 = vld [vmem:[#allocation3 + $0x74] sm:$0xf]  ;;  %v2692_v29 = vpop.permute.xlu2 %2691 }
 0x395   : > { %v5440_v63 = vor.u32 %v5947_v55, %v5439_v45  ;;  %v5652_v27 = vor.u32 %v6032_v61, %v5649_v33  ;;  %v2694_v5 = vpop.permute.xlu0 %2693  ;;  %v5255_v35 = vld [vmem:[#allocation3 + $0x80] sm:$0xf]  ;;  %v5993_v57 = vld [vmem:[#allocation3 + $0x84] sm:$0xf0]  ;;  %2780 = vst.msk [vmem:[#allocation3 + $0xa0] sm:$0xf] %vm651_vm3, %v2692_v29 }
 0x396   : > { %4247 = vmatmul.bf16.gmra.mxu1 %v5632_v34  ;;  %2781 = vst.msk [vmem:[#allocation3 + $0xa8] sm:$0xf] %vm651_vm3, %v2694_v5  ;;  %v5256_v41 = vor.u32 %v5993_v57, %v5255_v35  ;;  %v6035_v1 = vld [vmem:[#allocation3 + $0x84] sm:$0xf0]  ;;  %v5455_v61 = vld [vmem:[#allocation3 + $0x80] sm:$0xf] }
 0x397   : > { %v7133_v40 = vpop.f32.mrf.mxu3  ;;  %v5951_v33 = vld [vmem:[#allocation3 + $0x84] sm:$0xf0]  ;;  %v6037_v29 = vld [vmem:[#allocation3 + $0x94] sm:$0xf0]  ;;  %v6036_v5 = vld [vmem:[#allocation3 + $0x94] sm:$0xf] }
 0x398   : > { %v5456_v15 = vor.u32 %v5951_v33, %v5455_v61  ;;  %v5665_v57 = vld [vmem:[#allocation3 + $0x98] sm:$0xf0] }
 0x399   : > { %v5668_v17 = vor.u32 %v6036_v5, %v5665_v57  ;;  %v2460_v5 = vld [vmem:[#allocation2 + $0x138] sm:$0xff]  ;;  %v2461_v57 = vld [vmem:[#allocation2 + $0x140] sm:$0xff] }
 0x39a   : > { %v2696_v55 = vpop.permute.xlu1 %2695 }
 0x39c   : > { %v7173_v56 = vpop.f32.mrf.mxu1  ;;  %v5671_v61 = vld [vmem:[#allocation3 + $0xa0] sm:$0xf] }
 0x39d   : > { %v6039_v33 = vld [vmem:[#allocation3 + $0xa4] sm:$0xf0] }
 0x39f   : > { %v7140_v21 = vpop.f32.mrf.mxu3 }
 0x3a3   : > { %3310 = vmatmul.bf16.gmra.mxu0 %v5232_v32  ;;  %v5247_v32 = vld [vmem:[#allocation3 + $0x70] sm:$0xf] }
 0x3a4   : > { %5783 = vmatmul.msk.bf16.gmra.mxu3 %vm199_vm0, %v5628_v54  ;;  %3757 = vmatmul.bf16.gmra.mxu2 %v5432_v60  ;;  %v5248_v43 = vor.u32 %v5991_v53, %v5247_v32  ;;  %v7182_v37 = vpop.f32.mrf.mxu1  ;;  %v5656_v53 = vor.u32 %v6035_v1, %v5655_v16  ;;  %v2702_v16 = vpop.permute.xlu1 %2701 }
 0x3a5   : > { %v2700_v1 = vpop.permute.xlu0 %2699 }
 0x3a6   : > { %4252 = vmatmul.bf16.gmra.mxu1 %v5640_v2  ;;  %v2456_v2 = vld [vmem:[#allocation2 + $0x108] sm:$0xff] }
 0x3a7   : > { %v7150_v42 = vpop.f32.mrf.mxu3  ;;  %v2492_v52 = vpack.c.bf16 %v2456_v2, %v2456_v2 }
 0x3a9   : > { %2529 = vst.msk [vmem:[#allocation3 + $0xb0] sm:$0xf] %vm398_vm2, %v2492_v52 }
 0x3aa   : > { %2782 = vst.msk [vmem:[#allocation3 + $0xb0] sm:$0xf] %vm651_vm3, %v2696_v55 }
 0x3ac   : > { %v7186_v34 = vpop.f32.mrf.mxu1 }
 0x3af   : > { %v7156_v44 = vpop.f32.mrf.mxu3 }
 0x3b3   : > { %3315 = vmatmul.bf16.gmra.mxu0 %v5240_v13  ;;  %v2575_v13 = vld [vmem:[#allocation2 + $0x181] sm:$0xff] }
 0x3b4   : > { %5784 = vmatmul.msk.bf16.gmra.mxu3 %vm199_vm0, %v5636_v49  ;;  %3762 = vmatmul.bf16.gmra.mxu2 %v5440_v63  ;;  %v5648_v49 = vor.u32 %v6033_v18, %v5647_v0  ;;  %v2611_v60 = vpack.c.bf16 %v2575_v13, %v2575_v13  ;;  %v7196_v14 = vpop.f32.mrf.mxu1  ;;  %v5263_v63 = vld [vmem:[#allocation3 + $0x90] sm:$0xf]  ;;  %v5995_v0 = vld [vmem:[#allocation3 + $0x94] sm:$0xf0] }
 0x3b5   : > { %v5264_v18 = vor.u32 %v5995_v0, %v5263_v63  ;;  %v2459_v13 = vld [vmem:[#allocation2 + $0x128] sm:$0xff] }
 0x3b6   : > { %4257 = vmatmul.bf16.gmra.mxu1 %v5648_v49  ;;  %2715 = vrot.lane.b32.xlu2 %v2611_v60, %s6120_s18  ;;  %v2495_v39 = vpack.c.bf16 %v2459_v13, %v2459_v13  ;;  %v2496_v13 = vpack.c.bf16 %v2460_v5, %v2460_v5  ;;  %v5679_v5 = vld [vmem:[#allocation3 + $0xb0] sm:$0xf] }
 0x3b7   : > { %v7166_v10 = vpop.f32.mrf.mxu3 }
 0x3b8   : > { %2532 = vst.msk [vmem:[#allocation3 + $0xc8] sm:$0xf] %vm398_vm2, %v2495_v39 }
 0x3b9   : > { %2785 = vst.msk [vmem:[#allocation3 + $0xc8] sm:$0xf] %vm651_vm3, %v2702_v16 }
 0x3ba   : > { %2533 = vst.msk [vmem:[#allocation3 + $0xd0] sm:$0xf] %vm398_vm2, %v2496_v13  ;;  %v6040_v13 = vld [vmem:[#allocation3 + $0xb4] sm:$0xf] }
 0x3bc   : > { %v7201_v32 = vpop.f32.mrf.mxu1 }
 0x3bd   : > { %v2698_v45 = vpop.permute.xlu2 %2697 }
 0x3bf   : > { %v7171_v54 = vpop.f32.mrf.mxu3 }
 0x3c2   : > { %v7214_v49 = vpop.f32.mrf.mxu2 }
 0x3c3   : > { %3320 = vmatmul.bf16.gmra.mxu0 %v5248_v43  ;;  %v5660_v43 = vor.u32 %v6034_v4, %v5657_v36  ;;  %v5271_v4 = vld [vmem:[#allocation3 + $0xa0] sm:$0xf]  ;;  %v5997_v36 = vld [vmem:[#allocation3 + $0xa4] sm:$0xf0] }
 0x3c4   : > { %5785 = vmatmul.msk.bf16.gmra.mxu3 %vm199_vm0, %v5644_v30  ;;  %3767 = vmatmul.bf16.gmra.mxu2 %v5448_v11  ;;  %v2493_v30 = vpack.c.bf16 %v2457_v12, %v2457_v12  ;;  %v7212_v48 = vpop.f32.mrf.mxu1  ;;  %v2578_v12 = vld [vmem:[#allocation2 + $0x1a1] sm:$0xff]  ;;  %v5272_v52 = vor.u32 %v5997_v36, %v5271_v4 }
 0x3c5   : > { %v2614_v2 = vpack.c.bf16 %v2578_v12, %v2578_v12  ;;  %v5279_v4 = vld [vmem:[#allocation3 + $0xb0] sm:$0xf] }
 0x3c6   : > { %2530 = vst.msk [vmem:[#allocation3 + $0xb8] sm:$0xf] %vm398_vm2, %v2493_v30  ;;  %4262 = vmatmul.bf16.gmra.mxu1 %v5656_v53  ;;  %v5463_v53 = vld [vmem:[#allocation3 + $0x90] sm:$0xf]  ;;  %v2704_v16 = vpop.permute.xlu2 %2703 }
 0x3c7   : > { %v7180_v20 = vpop.f32.mrf.mxu3  ;;  %2783 = vst.msk [vmem:[#allocation3 + $0xb8] sm:$0xf] %vm651_vm3, %v2698_v45  ;;  %2721 = vrot.lane.b32.xlu2 %v2614_v2, %s6120_s18 }
 0x3c8   : > { %2786 = vst.msk [vmem:[#allocation3 + $0xd0] sm:$0xf] %vm651_vm3, %v2704_v16  ;;  %v2462_v16 = vld [vmem:[#allocation2 + $0x150] sm:$0xff] }
 0x3ca   : > { %v7227_v30 = vpop.f32.mrf.mxu2 }
 0x3cb   : > { %7558 = vst [vmem:[#allocation44_spill] sm:$0xff] %v7227_v30 }
 0x3cc   : > { %v7220_v11 = vpop.f32.mrf.mxu1 }
 0x3ce   : > { %v5999_v36 = vld [vmem:[#allocation3 + $0xb4] sm:$0xf0] }
 0x3cf   : > { %v7184_v6 = vpop.f32.mrf.mxu3  ;;  %v5280_v2 = vor.u32 %v5999_v36, %v5279_v4  ;;  %v2498_v4 = vpack.c.bf16 %v2462_v16, %v2462_v16 }
 0x3d1   : > { %2535 = vst.msk [vmem:[#allocation3 + $0xe0] sm:$0xf] %vm398_vm2, %v2498_v4 }
 0x3d3   : > { %3325 = vmatmul.bf16.gmra.mxu0 %v5256_v41  ;;  %v2458_v41 = vld [vmem:[#allocation2 + $0x120] sm:$0xff] }
 0x3d4   : > { %5786 = vmatmul.msk.bf16.gmra.mxu3 %vm199_vm0, %v5652_v27  ;;  %3772 = vmatmul.bf16.gmra.mxu2 %v5456_v15  ;;  %v5663_v27 = vld [vmem:[#allocation3 + $0x90] sm:$0xf]  ;;  %v2494_v59 = vpack.c.bf16 %v2458_v41, %v2458_v41  ;;  %v7234_v63 = vpop.f32.mrf.mxu1  ;;  %v6038_v15 = vld [vmem:[#allocation3 + $0xa4] sm:$0xf]  ;;  %v2497_v41 = vpack.c.bf16 %v2461_v57, %v2461_v57  ;;  %v6041_v57 = vld [vmem:[#allocation3 + $0xb4] sm:$0xf0] }
 0x3d5   : > { %v5664_v24 = vor.u32 %v6037_v29, %v5663_v27  ;;  %7561 = vst [vmem:[#allocation47_spill] sm:$0xff] %v7234_v63  ;;  %v5673_v29 = vld [vmem:[#allocation3 + $0xa8] sm:$0xf0] }
 0x3d6   : > { %2531 = vst.msk [vmem:[#allocation3 + $0xc0] sm:$0xf] %vm398_vm2, %v2494_v59 }
 0x3d7   : > { %v7194_v26 = vpop.f32.mrf.mxu3  ;;  %4267 = vmatmul.bf16.gmra.mxu1 %v5664_v24  ;;  %2784 = vst.msk [vmem:[#allocation3 + $0xc0] sm:$0xf] %vm651_vm3, %v2700_v1  ;;  %v5672_v24 = vor.u32 %v6039_v33, %v5671_v61  ;;  %v2706_v1 = vpop.permute.xlu0 %2705 }
 0x3d8   : > { %2534 = vst.msk [vmem:[#allocation3 + $0xd8] sm:$0xf] %vm398_vm2, %v2497_v41 }
 0x3d9   : > { %2787 = vst.msk [vmem:[#allocation3 + $0xd8] sm:$0xf] %vm651_vm3, %v2706_v1 }
 0x3dc   : > { %v4233_v59 = vpop.f32.mrf.mxu1 }
 0x3de   : > { %v5687_v4 = vld [vmem:[#allocation3 + $0xc0] sm:$0xf] }
 0x3df   : > { %v7199_v22 = vpop.f32.mrf.mxu3 }
 0x3e0   : > { %v7208_v51 = vpop.f32.mrf.mxu0 }
 0x3e3   : > { %3330 = vmatmul.bf16.gmra.mxu0 %v5264_v18 }
 0x3e4   : > { %5787 = vmatmul.msk.bf16.gmra.mxu3 %vm199_vm0, %v5660_v43  ;;  %v5953_v43 = vld [vmem:[#allocation3 + $0x94] sm:$0xf0]  ;;  %v4235_v61 = vpop.f32.mrf.mxu1 }
 0x3e5   : > { %v5464_v0 = vor.u32 %v5953_v43, %v5463_v53  ;;  %v5955_v53 = vld [vmem:[#allocation3 + $0xa4] sm:$0xf0] }
 0x3e7   : > { %v7210_v8 = vpop.f32.mrf.mxu3  ;;  %3777 = vmatmul.bf16.gmra.mxu2 %v5464_v0  ;;  %v7236_v18 = vpop.f32.mrf.mxu2  ;;  %4272 = vmatmul.bf16.gmra.mxu1 %v5672_v24  ;;  %v5681_v24 = vld [vmem:[#allocation3 + $0xb8] sm:$0xf0] }
 0x3e8   : > { %v7216_v35 = vpop.f32.mrf.mxu0  ;;  %7562 = vst [vmem:[#allocation48_spill] sm:$0xff] %v7236_v18 }
 0x3ef   : > { %v7218_v60 = vpop.f32.mrf.mxu3  ;;  %v7247_v12 = vpop.f32.mrf.mxu2 }
 0x3f0   : > { %v7229_v45 = vpop.f32.mrf.mxu0  ;;  %7565 = vst [vmem:[#allocation51_spill] sm:$0xff] %v7247_v12 }
 0x3f1   : > { %7559 = vst [vmem:[#allocation45_spill] sm:$0xff] %v7229_v45 }
 0x3f3   : > { %3335 = vmatmul.bf16.gmra.mxu0 %v5272_v52  ;;  %v5471_v52 = vld [vmem:[#allocation3 + $0xa0] sm:$0xf] }
 0x3f4   : > { %5788 = vmatmul.msk.bf16.gmra.mxu3 %vm199_vm0, %v5668_v17  ;;  %v5676_v17 = vor.u32 %v6038_v15, %v5673_v29  ;;  %v5472_v33 = vor.u32 %v5955_v53, %v5471_v52  ;;  %v5684_v52 = vor.u32 %v6040_v13, %v5681_v24  ;;  %v2708_v53 = vpop.permute.xlu1 %2707 }
 0x3f5   : > { %2788 = vst.msk [vmem:[#allocation3 + $0xe0] sm:$0xf] %vm651_vm3, %v2708_v53  ;;  %v6042_v53 = vld [vmem:[#allocation3 + $0xc4] sm:$0xf] }
 0x3f7   : > { %v7232_v55 = vpop.f32.mrf.mxu3  ;;  %3782 = vmatmul.bf16.gmra.mxu2 %v5472_v33  ;;  %v7253_v29 = vpop.f32.mrf.mxu2  ;;  %v6001_v33 = vld [vmem:[#allocation3 + $0xc4] sm:$0xf0] }
 0x3f8   : > { %7560 = vst [vmem:[#allocation46_spill] sm:$0xff] %v7232_v55  ;;  %v7238_v27 = vpop.f32.mrf.mxu0 }
 0x3f9   : > { %7563 = vst [vmem:[#allocation49_spill] sm:$0xff] %v7238_v27 }
 0x3fa   : > { %7567 = vst [vmem:[#allocation53_spill] sm:$0xff] %v7253_v29 }
 0x3ff   : > { %v7240_v39 = vpop.f32.mrf.mxu3 }
 0x400   : > { %7564 = vst [vmem:[#allocation50_spill] sm:$0xff] %v7240_v39  ;;  %v7249_v43 = vpop.f32.mrf.mxu0 }
 0x401   : > { %7566 = vst [vmem:[#allocation52_spill] sm:$0xff] %v7249_v43  ;;  %v4238_v43 = vpop.f32.mrf.mxu1 }
 0x403   : > { %3340 = vmatmul.bf16.gmra.mxu0 %v5280_v2  ;;  %v2710_v2 = vpop.permute.xlu2 %2709 }
 0x404   : > { %5789 = vmatmul.msk.bf16.gmra.mxu3 %vm199_vm0, %v5676_v17  ;;  %v2463_v17 = vld [vmem:[#allocation2 + $0x158] sm:$0xff] }
 0x405   : > { %v2499_v1 = vpack.c.bf16 %v2463_v17, %v2463_v17  ;;  %v7264_v17 = vpop.f32.mrf.mxu2 }
 0x406   : > { %7570 = vst [vmem:[#allocation56_spill] sm:$0xff] %v7264_v17  ;;  %v5689_v17 = vld [vmem:[#allocation3 + $0xc8] sm:$0xf0] }
 0x407   : > { %v4322_v0 = vpop.f32.mrf.mxu3  ;;  %2536 = vst.msk [vmem:[#allocation3 + $0xe8] sm:$0xf] %vm398_vm2, %v2499_v1 }
 0x408   : > { %v7251_v15 = vadd.f32 %v4322_v0, %v4233_v59  ;;  %v7255_v41 = vpop.f32.mrf.mxu0  ;;  %v5680_v59 = vor.u32 %v6041_v57, %v5679_v5  ;;  %v5287_v0 = vld [vmem:[#allocation3 + $0xc0] sm:$0xf]  ;;  %2789 = vst.msk [vmem:[#allocation3 + $0xe8] sm:$0xf] %vm651_vm3, %v2710_v2  ;;  %v5479_v5 = vld [vmem:[#allocation3 + $0xb0] sm:$0xf] }
 0x409   : > { %7568 = vst [vmem:[#allocation54_spill] sm:$0xff] %v7255_v41  ;;  %v5957_v57 = vld [vmem:[#allocation3 + $0xb4] sm:$0xf0]  ;;  %v4240_v16 = vpop.f32.mrf.mxu1  ;;  %v6043_v2 = vld [vmem:[#allocation3 + $0xc4] sm:$0xf0] }
 0x40a   : > { %4277 = vmatmul.bf16.gmra.mxu1 %v5680_v59  ;;  %v5480_v1 = vor.u32 %v5957_v57, %v5479_v5  ;;  %v5692_v5 = vor.u32 %v6042_v53, %v5689_v17  ;;  %v2712_v57 = vpop.permute.xlu0 %2711  ;;  %v5959_v17 = vld [vmem:[#allocation3 + $0xc4] sm:$0xf0] }
 0x40c   : > { %3787 = vmatmul.bf16.gmra.mxu2 %v5480_v1  ;;  %v6003_v1 = vld [vmem:[#allocation3 + $0xd4] sm:$0xf0] }
 0x40d   : > { %v7270_v59 = vpop.f32.mrf.mxu2 }
 0x40e   : > { %7573 = vst [vmem:[#allocation59_spill] sm:$0xff] %v7270_v59 }
 0x40f   : > { %v4324_v36 = vpop.f32.mrf.mxu3 }
 0x410   : > { %v7257_v12 = vadd.f32 %v4324_v36, %v4235_v61  ;;  %v5288_v61 = vor.u32 %v6001_v33, %v5287_v0  ;;  %v7266_v13 = vpop.f32.mrf.mxu0  ;;  %v2465_v0 = vld [vmem:[#allocation2 + $0x170] sm:$0xff]  ;;  %v2464_v33 = vld [vmem:[#allocation2 + $0x168] sm:$0xff] }
 0x411   : > { %7571 = vst [vmem:[#allocation57_spill] sm:$0xff] %v7266_v13  ;;  %v2501_v41 = vpack.c.bf16 %v2465_v0, %v2465_v0  ;;  %v2500_v29 = vpack.c.bf16 %v2464_v33, %v2464_v33  ;;  %v4243_v39 = vpop.f32.mrf.mxu1 }
 0x412   : > { %7569 = vst [vmem:[#allocation55_spill] sm:$0xff] %v7257_v12 }
 0x413   : > { %3345 = vmatmul.bf16.gmra.mxu0 %v5288_v61  ;;  %v2714_v61 = vpop.permute.xlu1 %2713  ;;  %2538 = vst.msk [vmem:[#allocation3 + $0xf8] sm:$0xf] %vm398_vm2, %v2501_v41 }
 0x414   : > { %5790 = vmatmul.msk.bf16.gmra.mxu3 %vm199_vm0, %v5684_v52  ;;  %2791 = vst.msk [vmem:[#allocation3 + $0xf8] sm:$0xf] %vm651_vm3, %v2714_v61  ;;  %v6045_v61 = vld [vmem:[#allocation3 + $0xd4] sm:$0xf0] }
 0x415   : > { %2537 = vst.msk [vmem:[#allocation3 + $0xf0] sm:$0xf] %vm398_vm2, %v2500_v29  ;;  %v7281_v0 = vpop.f32.mrf.mxu2  ;;  %v5695_v29 = vld [vmem:[#allocation3 + $0xd0] sm:$0xf] }
 0x416   : > { %2790 = vst.msk [vmem:[#allocation3 + $0xf0] sm:$0xf] %vm651_vm3, %v2712_v57  ;;  %v6044_v57 = vld [vmem:[#allocation3 + $0xd4] sm:$0xf] }
 0x417   : > { %v4327_v24 = vpop.f32.mrf.mxu3  ;;  %7576 = vst [vmem:[#allocation62_spill] sm:$0xff] %v7281_v0  ;;  %v5697_v0 = vld [vmem:[#allocation3 + $0xd8] sm:$0xf0] }
 0x418   : > { %v7268_v36 = vadd.f32 %v4327_v24, %v4238_v43  ;;  %v7272_v52 = vpop.f32.mrf.mxu0  ;;  %v5688_v43 = vor.u32 %v6043_v2, %v5687_v4  ;;  %v5295_v24 = vld [vmem:[#allocation3 + $0xd0] sm:$0xf] }
 0x419   : > { %7574 = vst [vmem:[#allocation60_spill] sm:$0xff] %v7272_v52  ;;  %v4245_v2 = vpop.f32.mrf.mxu1 }
 0x41a   : > { %7572 = vst [vmem:[#allocation58_spill] sm:$0xff] %v7268_v36  ;;  %4282 = vmatmul.bf16.gmra.mxu1 %v5688_v43 }
 0x41d   : > { %v7287_v43 = vpop.f32.mrf.mxu2 }
 0x41e   : > { %7579 = vst [vmem:[#allocation65_spill] sm:$0xff] %v7287_v43 }
 0x41f   : > { %v4329_v13 = vpop.f32.mrf.mxu3 }
 0x420   : > { %v7274_v27 = vadd.f32 %v4329_v13, %v4240_v16  ;;  %v5296_v13 = vor.u32 %v6003_v1, %v5295_v24  ;;  %v5487_v16 = vld [vmem:[#allocation3 + $0xc0] sm:$0xf]  ;;  %v7283_v4 = vpop.f32.mrf.mxu0  ;;  %v2466_v24 = vld [vmem:[#allocation2 + $0x180] sm:$0xff]  ;;  %v2467_v1 = vld [vmem:[#allocation2 + $0x188] sm:$0xff] }
 0x421   : > { %7577 = vst [vmem:[#allocation63_spill] sm:$0xff] %v7283_v4  ;;  %v5488_v53 = vor.u32 %v5959_v17, %v5487_v16  ;;  %v2502_v52 = vpack.c.bf16 %v2466_v24, %v2466_v24  ;;  %v2503_v59 = vpack.c.bf16 %v2467_v1, %v2467_v1  ;;  %v5700_v16 = vor.u32 %v6044_v57, %v5697_v0  ;;  %v2718_v17 = vpop.permute.xlu0 %2717  ;;  %v5961_v0 = vld [vmem:[#allocation3 + $0xd4] sm:$0xf0] }
 0x422   : > { %7575 = vst [vmem:[#allocation61_spill] sm:$0xff] %v7274_v27  ;;  %v4248_v27 = vpop.f32.mrf.mxu1 }
 0x423   : > { %3350 = vmatmul.bf16.gmra.mxu0 %v5296_v13  ;;  %3792 = vmatmul.bf16.gmra.mxu2 %v5488_v53  ;;  %v2716_v13 = vpop.permute.xlu2 %2715  ;;  %2539 = vst.msk [vmem:[#allocation3 + $0x100] sm:$0xf] %vm398_vm2, %v2502_v52  ;;  %v6005_v53 = vld [vmem:[#allocation3 + $0xe4] sm:$0xf0] }
 0x424   : > { %5791 = vmatmul.msk.bf16.gmra.mxu3 %vm199_vm0, %v5692_v5  ;;  %2792 = vst.msk [vmem:[#allocation3 + $0x100] sm:$0xf] %vm651_vm3, %v2716_v13 }
 0x425   : > { %2540 = vst.msk [vmem:[#allocation3 + $0x108] sm:$0xf] %vm398_vm2, %v2503_v59  ;;  %v7298_v24 = vpop.f32.mrf.mxu2  ;;  %v5703_v59 = vld [vmem:[#allocation3 + $0xe0] sm:$0xf] }
 0x426   : > { %2793 = vst.msk [vmem:[#allocation3 + $0x108] sm:$0xf] %vm651_vm3, %v2718_v17  ;;  %v6046_v17 = vld [vmem:[#allocation3 + $0xe4] sm:$0xf] }
 0x427   : > { %v4332_v41 = vpop.f32.mrf.mxu3  ;;  %7582 = vst [vmem:[#allocation68_spill] sm:$0xff] %v7298_v24  ;;  %v5705_v24 = vld [vmem:[#allocation3 + $0xe8] sm:$0xf0] }
 0x428   : > { %v7285_v33 = vadd.f32 %v4332_v41, %v4243_v39  ;;  %v7289_v5 = vpop.f32.mrf.mxu0  ;;  %v5696_v39 = vor.u32 %v6045_v61, %v5695_v29  ;;  %v5303_v41 = vld [vmem:[#allocation3 + $0xe0] sm:$0xf] }
 0x429   : > { %7580 = vst [vmem:[#allocation66_spill] sm:$0xff] %v7289_v5  ;;  %v2796_v5 = vld [vmem:[#allocation2 + $0x2] sm:$0xff] }
 0x42a   : > { %7578 = vst [vmem:[#allocation64_spill] sm:$0xff] %v7285_v33  ;;  %4287 = vmatmul.bf16.gmra.mxu1 %v5696_v39  ;;  %v4250_v61 = vpop.f32.mrf.mxu1 }
 0x42d   : > { %v7304_v39 = vpop.f32.mrf.mxu2 }
 0x42e   : > { %7585 = vst [vmem:[#allocation71_spill] sm:$0xff] %v7304_v39  ;;  %v5311_v39 = vld [vmem:[#allocation3 + $0xf0] sm:$0xf] }
 0x42f   : > { %v4334_v4 = vpop.f32.mrf.mxu3 }
 0x430   : > { %v7291_v36 = vadd.f32 %v4334_v4, %v4245_v2  ;;  %v5304_v4 = vor.u32 %v6005_v53, %v5303_v41  ;;  %v5495_v2 = vld [vmem:[#allocation3 + $0xd0] sm:$0xf]  ;;  %v7300_v29 = vpop.f32.mrf.mxu0 }
 0x431   : > { %7583 = vst [vmem:[#allocation69_spill] sm:$0xff] %v7300_v29  ;;  %v5496_v57 = vor.u32 %v5961_v0, %v5495_v2  ;;  %v2798_v41 = vld [vmem:[#allocation2 + $0x1a] sm:$0xff]  ;;  %v2799_v53 = vld [vmem:[#allocation2 + $0x22] sm:$0xff]  ;;  %v2797_v2 = vld [vmem:[#allocation2 + $0xa] sm:$0xff] }
 0x432   : > { %7581 = vst [vmem:[#allocation67_spill] sm:$0xff] %v7291_v36  ;;  %v4253_v29 = vpop.f32.mrf.mxu1  ;;  %v2834_v36 = vpack.c.bf16 %v2798_v41, %v2798_v41  ;;  %v2835_v33 = vpack.c.bf16 %v2799_v53, %v2799_v53 }
 0x433   : > { %3355 = vmatmul.bf16.gmra.mxu0 %v5304_v4  ;;  %3797 = vmatmul.bf16.gmra.mxu2 %v5496_v57  ;;  %v2833_v57 = vpack.c.bf16 %v2797_v2, %v2797_v2 }
 0x434   : > { %5792 = vmatmul.msk.bf16.gmra.mxu3 %vm199_vm0, %v5700_v16  ;;  %v6047_v16 = vld [vmem:[#allocation3 + $0xe4] sm:$0xf0]  ;;  %2870 = vst.msk [vmem:[#allocation3 + $0x14] sm:$0xf] %vm398_vm2, %v2834_v36 }
 0x435   : > { %v5704_v4 = vor.u32 %v6047_v16, %v5703_v59  ;;  %2871 = vst.msk [vmem:[#allocation3 + $0x1c] sm:$0xf] %vm398_vm2, %v2835_v33  ;;  %v7314_v41 = vpop.f32.mrf.mxu2  ;;  %v2830_v36 = vld [vmem:[#allocation2 + $0x19a] sm:$0xff] }
 0x436   : > { %7588 = vst [vmem:[#allocation74_spill] sm:$0xff] %v7314_v41  ;;  %v2866_v33 = vpack.c.bf16 %v2830_v36, %v2830_v36  ;;  %v5319_v41 = vld [vmem:[#allocation3 + $0x100] sm:$0xf] }
 0x437   : > { %v4337_v52 = vpop.f32.mrf.mxu3  ;;  %2869 = vst.msk [vmem:[#allocation3 + $0xc] sm:$0xf] %vm398_vm2, %v2833_v57 }
 0x438   : > { %v7302_v1 = vadd.f32 %v4337_v52, %v4248_v27  ;;  %v7306_v13 = vpop.f32.mrf.mxu0  ;;  %v2832_v27 = vpack.c.bf16 %v2796_v5, %v2796_v5  ;;  %v5708_v52 = vor.u32 %v6046_v17, %v5705_v24  ;;  %v5503_v5 = vld [vmem:[#allocation3 + $0xe0] sm:$0xf]  ;;  %v2831_v17 = vld [vmem:[#allocation2 + $0x1a2] sm:$0xff]  ;;  %2902 = vst.msk [vmem:[#allocation3 + $0x114] sm:$0xf] %vm398_vm2, %v2866_v33 }
 0x439   : > { %7586 = vst [vmem:[#allocation72_spill] sm:$0xff] %v7306_v13  ;;  %v6009_v13 = vld [vmem:[#allocation3 + $0x104] sm:$0xf0] }
 0x43a   : > { %7584 = vst [vmem:[#allocation70_spill] sm:$0xff] %v7302_v1  ;;  %v6007_v1 = vld [vmem:[#allocation3 + $0xf4] sm:$0xf0]  ;;  %4292 = vmatmul.bf16.gmra.mxu1 %v5704_v4  ;;  %v4255_v59 = vpop.f32.mrf.mxu1  ;;  %v2469_v4 = vld [vmem:[#allocation2 + $0x1a0] sm:$0xff] }
 0x43b   : > { %2868 = vst.msk [vmem:[#allocation3 + $0x4] sm:$0xf] %vm398_vm2, %v2832_v27  ;;  %v5312_v53 = vor.u32 %v6007_v1, %v5311_v39  ;;  %v2867_v27 = vpack.c.bf16 %v2831_v17, %v2831_v17  ;;  %v5711_v39 = vld [vmem:[#allocation3 + $0xf0] sm:$0xf] }
 0x43c   : > { %v5201_v18 = vld [vmem:[#allocation3 + $0x18] sm:$0xf0] }
 0x43d   : > { %2903 = vst.msk [vmem:[#allocation3 + $0x11c] sm:$0xf] %vm398_vm2, %v2867_v27  ;;  %v7323_v1 = vpop.f32.mrf.mxu2  ;;  %v2722_v27 = vpop.permute.xlu2 %2721 }
 0x43e   : > { %7591 = vst [vmem:[#allocation77_spill] sm:$0xff] %v7323_v1  ;;  %v2720_v1 = vpop.permute.xlu1 %2719 }
 0x43f   : > { %v4339_v43 = vpop.f32.mrf.mxu3 }
 0x440   : > { %v7308_v0 = vadd.f32 %v4339_v43, %v4250_v61  ;;  %v5963_v43 = vld [vmem:[#allocation3 + $0xe4] sm:$0xf0]  ;;  %v7317_v24 = vpop.f32.mrf.mxu0 }
 0x441   : > { %7589 = vst [vmem:[#allocation75_spill] sm:$0xff] %v7317_v24  ;;  %v5504_v16 = vor.u32 %v5963_v43, %v5503_v5  ;;  %v6049_v5 = vld [vmem:[#allocation3 + $0xf4] sm:$0xf0]  ;;  %v6048_v43 = vld [vmem:[#allocation3 + $0xf4] sm:$0xf] }
 0x442   : > { %7587 = vst [vmem:[#allocation73_spill] sm:$0xff] %v7308_v0  ;;  %v5713_v24 = vld [vmem:[#allocation3 + $0xf8] sm:$0xf0]  ;;  %v4258_v36 = vpop.f32.mrf.mxu1  ;;  %v5712_v17 = vor.u32 %v6049_v5, %v5711_v39  ;;  %v5978_v0 = vld [vmem:[#allocation3 + $0x14] sm:$0xf] }
 0x443   : > { %3360 = vmatmul.bf16.gmra.mxu0 %v5312_v53  ;;  %3802 = vmatmul.bf16.gmra.mxu2 %v5504_v16  ;;  %v5716_v33 = vor.u32 %v6048_v43, %v5713_v24 }
 0x444   : > { %5793 = vmatmul.msk.bf16.gmra.mxu3 %vm199_vm0, %v5708_v52  ;;  %v2468_v52 = vld [vmem:[#allocation2 + $0x198] sm:$0xff] }
 0x447   : > { %v4342_v61 = vpop.f32.mrf.mxu3 }
 0x448   : > { %v7319_v2 = vadd.f32 %v4342_v61, %v4253_v29  ;;  %v7325_v57 = vpop.f32.mrf.mxu0  ;;  %v2505_v29 = vpack.c.bf16 %v2469_v4, %v2469_v4  ;;  %v2504_v61 = vpack.c.bf16 %v2468_v52, %v2468_v52  ;;  %v7334_v4 = vpop.f32.mrf.mxu2  ;;  %v5320_v52 = vor.u32 %v6009_v13, %v5319_v41 }
 0x449   : > { %7592 = vst [vmem:[#allocation78_spill] sm:$0xff] %v7325_v57  ;;  %v6051_v57 = vld [vmem:[#allocation3 + $0x104] sm:$0xf0] }
 0x44a   : > { %7590 = vst [vmem:[#allocation76_spill] sm:$0xff] %v7319_v2  ;;  %4297 = vmatmul.bf16.gmra.mxu1 %v5712_v17  ;;  %v4260_v5 = vpop.f32.mrf.mxu1 }
 0x44b   : > { %2542 = vst.msk [vmem:[#allocation3 + $0x118] sm:$0xf] %vm398_vm2, %v2505_v29  ;;  %v5965_v29 = vld [vmem:[#allocation3 + $0xf4] sm:$0xf0] }
 0x44c   : > { %2541 = vst.msk [vmem:[#allocation3 + $0x110] sm:$0xf] %vm398_vm2, %v2504_v61 }
 0x44d   : > { %2795 = vst.msk [vmem:[#allocation3 + $0x118] sm:$0xf] %vm651_vm3, %v2722_v27  ;;  %v5719_v27 = vld [vmem:[#allocation3 + $0x100] sm:$0xf] }
 0x44e   : > { %2794 = vst.msk [vmem:[#allocation3 + $0x110] sm:$0xf] %vm651_vm3, %v2720_v1  ;;  %v6050_v1 = vld [vmem:[#allocation3 + $0x104] sm:$0xf]  ;;  %v5720_v13 = vor.u32 %v6051_v57, %v5719_v27 }
 0x44f   : > { %v4344_v53 = vpop.f32.mrf.mxu3  ;;  %7594 = vst [vmem:[#allocation80_spill] sm:$0xff] %v7334_v4 }
 0x450   : > { %v7328_v16 = vadd.f32 %v4344_v53, %v4255_v59  ;;  %v5511_v59 = vld [vmem:[#allocation3 + $0xf0] sm:$0xf]  ;;  %v3326_v39 = vpop.f32.mrf.mxu0  ;;  %v3768_v61 = vpop.f32.mrf.mxu2 }
 0x451   : > { %v5512_v43 = vor.u32 %v5965_v29, %v5511_v59  ;;  %v5934_v59 = vld [vmem:[#allocation3 + $0x4] sm:$0xf]  ;;  %v5204_v29 = vor.u32 %v5978_v0, %v5201_v18 }
 0x452   : > { %7593 = vst [vmem:[#allocation79_spill] sm:$0xff] %v7328_v16  ;;  %v5721_v16 = vld [vmem:[#allocation3 + $0x108] sm:$0xf0]  ;;  %v4263_v2 = vpop.f32.mrf.mxu1 }
 0x453   : > { %3365 = vmatmul.bf16.gmra.mxu0 %v5320_v52  ;;  %3807 = vmatmul.bf16.gmra.mxu2 %v5512_v43  ;;  %v5724_v41 = vor.u32 %v6050_v1, %v5721_v16  ;;  %v6052_v1 = vld [vmem:[#allocation3 + $0x114] sm:$0xf] }
 0x454   : > { %5794 = vmatmul.msk.bf16.gmra.mxu3 %vm199_vm0, %v5716_v33  ;;  %v6053_v16 = vld [vmem:[#allocation3 + $0x114] sm:$0xf0] }
 0x455   : > { %v5727_v57 = vld [vmem:[#allocation3 + $0x110] sm:$0xf] }
 0x457   : > { %v4347_v24 = vpop.f32.mrf.mxu3 }
 0x458   : > { %v7336_v53 = vadd.f32 %v4347_v24, %v4258_v36  ;;  %v3328_v17 = vpop.f32.mrf.mxu0  ;;  %v5393_v36 = vld [vmem:[#allocation3 + $0x8] sm:$0xf0]  ;;  %v3770_v52 = vpop.f32.mrf.mxu2 }
 0x459   : > { %v5396_v43 = vor.u32 %v5934_v59, %v5393_v36  ;;  %v5980_v59 = vld [vmem:[#allocation3 + $0x24] sm:$0xf]  ;;  %v5209_v36 = vld [vmem:[#allocation3 + $0x28] sm:$0xf0] }
 0x45a   : > { %7595 = vst [vmem:[#allocation81_spill] sm:$0xff] %v7336_v53  ;;  %4302 = vmatmul.bf16.gmra.mxu1 %v5720_v13  ;;  %v4265_v63 = vpop.f32.mrf.mxu1  ;;  %v5728_v13 = vor.u32 %v6053_v16, %v5727_v57  ;;  %v5212_v45 = vor.u32 %v5980_v59, %v5209_v36 }
 0x45f   : > { %v4349_v33 = vpop.f32.mrf.mxu3 }
 0x460   : > { %v7338_v4 = vadd.f32 %v4349_v33, %v4260_v5  ;;  %v3331_v24 = vpop.f32.mrf.mxu0  ;;  %v3773_v5 = vpop.f32.mrf.mxu2  ;;  %v5729_v33 = vld [vmem:[#allocation3 + $0x118] sm:$0xf0] }
 0x461   : > { %v5732_v0 = vor.u32 %v6052_v1, %v5729_v33 }
 0x462   : > { %7596 = vst [vmem:[#allocation82_spill] sm:$0xff] %v7338_v4  ;;  %v4268_v4 = vpop.f32.mrf.mxu1 }
 0x463   : > { %5373 = vmatmul.msk.bf16.vlgmr.msrb.gmra.mxu0 %vm199_vm0, %v5204_v29  ;;  %5565 = vmatmul.msk.bf16.vlgmr.msrb.gmra.mxu2 %vm199_vm0, %v5396_v43  ;;  %v5401_v29 = vld [vmem:[#allocation3 + $0x18] sm:$0xf0] }
 0x464   : > { %5795 = vmatmul.msk.bf16.gmra.mxu3 %vm199_vm0, %v5724_v41 }
 0x467   : > { %v4352_v53 = vpop.f32.mrf.mxu3 }
 0x468   : > { %v7341_v55 = vadd.f32 %v4352_v53, %v4263_v2  ;;  %v3333_v27 = vpop.f32.mrf.mxu0  ;;  %v3416_v2 = vadd.f32 %v7090_v28, %v3326_v39  ;;  %v5936_v53 = vld [vmem:[#allocation3 + $0x14] sm:$0xf]  ;;  %v3418_v28 = vadd.f32 %v7101_v3, %v3328_v17 }
 0x469   : > { %v5404_v57 = vor.u32 %v5936_v53, %v5401_v29  ;;  %v5938_v53 = vld [vmem:[#allocation3 + $0x24] sm:$0xf]  ;;  %v5409_v29 = vld [vmem:[#allocation3 + $0x28] sm:$0xf0] }
 0x46a   : > { %7597 = vst [vmem:[#allocation83_spill] sm:$0xff] %v7341_v55  ;;  %4307 = vmatmul.bf16.gmra.mxu1 %v5728_v13  ;;  %v3769_v43 = vadd.f32 %v3768_v61, %v3416_v2  ;;  %v3775_v55 = vpop.f32.mrf.mxu2  ;;  %v4270_v30 = vpop.f32.mrf.mxu1  ;;  %v3771_v61 = vadd.f32 %v3770_v52, %v3418_v28  ;;  %v5982_v2 = vld [vmem:[#allocation3 + $0x34] sm:$0xf] }
 0x46c   : > { %v3860_v59 = vadd.f32 %v7107_v38, %v3771_v61 }
 0x46f   : > { %v4354_v41 = vpop.f32.mrf.mxu3 }
 0x470   : > { %v7345_v18 = vadd.f32 %v4354_v41, %v4265_v63  ;;  %v3336_v12 = vpop.f32.mrf.mxu0  ;;  %v3858_v63 = vadd.f32 %v7099_v62, %v3769_v43  ;;  %v5217_v62 = vld [vmem:[#allocation3 + $0x38] sm:$0xf0] }
 0x471   : > { %v5220_v52 = vor.u32 %v5982_v2, %v5217_v62  ;;  %v5940_v62 = vld [vmem:[#allocation3 + $0x34] sm:$0xf] }
 0x472   : > { %v3778_v33 = vpop.f32.mrf.mxu2 }
 0x473   : > { %5374 = vmatmul.msk.bf16.gmra.mxu0 %vm199_vm0, %v5212_v45  ;;  %5566 = vmatmul.msk.bf16.gmra.mxu2 %vm199_vm0, %v5404_v57  ;;  %v5412_v57 = vor.u32 %v5938_v53, %v5409_v29 }
 0x474   : > { %5796 = vmatmul.msk.bf16.gmra.mxu3 %vm199_vm0, %v5732_v0  ;;  %v4273_v0 = vpop.f32.mrf.mxu1 }
 0x477   : > { %v4357_v16 = vpop.f32.mrf.mxu3 }
 0x478   : > { %v4358_v1 = vadd.f32 %v4357_v16, %v4268_v4  ;;  %v3338_v13 = vpop.f32.mrf.mxu0  ;;  %v3421_v4 = vadd.f32 %v7109_v23, %v3331_v24  ;;  %v3423_v23 = vadd.f32 %v7119_v9, %v3333_v27 }
 0x47a   : > { %v4416_v39 = vadd.f32 %v4358_v1, %v3858_v63  ;;  %v3774_v3 = vadd.f32 %v3773_v5, %v3421_v4  ;;  %v3780_v17 = vpop.f32.mrf.mxu2  ;;  %v3776_v24 = vadd.f32 %v3775_v55, %v3423_v23  ;;  %v5417_v4 = vld [vmem:[#allocation3 + $0x38] sm:$0xf0] }
 0x47b   : > { %v5420_v53 = vor.u32 %v5940_v62, %v5417_v4 }
 0x47c   : > { %4448 = vst [vmem:[%s6167_s20 + $0x70] sm:$0xff] %v4416_v39  ;;  %v4275_v63 = vpop.f32.mrf.mxu1  ;;  %v3863_v1 = vadd.f32 %v7117_v31, %v3774_v3  ;;  %v5225_v31 = vld [vmem:[#allocation3 + $0x48] sm:$0xf0] }
 0x47f   : > { %v4359_v41 = vpop.f32.mrf.mxu3 }
 0x480   : > { %v4360_v36 = vadd.f32 %v4359_v41, %v4270_v30  ;;  %v3341_v43 = vpop.f32.mrf.mxu0  ;;  %v3865_v41 = vadd.f32 %v7124_v47, %v3776_v24 }
 0x481   : > { %v3431_v24 = vadd.f32 %v7142_v25, %v3341_v43 }
 0x482   : > { %v4417_v45 = vadd.f32 %v4360_v36, %v3860_v59  ;;  %v3783_v5 = vpop.f32.mrf.mxu2  ;;  %v5984_v36 = vld [vmem:[#allocation3 + $0x44] sm:$0xf] }
 0x483   : > { %5375 = vmatmul.msk.bf16.gmra.mxu0 %vm199_vm0, %v5220_v52  ;;  %5567 = vmatmul.msk.bf16.gmra.mxu2 %vm199_vm0, %v5412_v57  ;;  %v5228_v55 = vor.u32 %v5984_v36, %v5225_v31 }
 0x484   : > { %4449 = vst [vmem:[%s6167_s20 + $0x78] sm:$0xff] %v4417_v45 }
 0x487   : > { %v4362_v16 = vpop.f32.mrf.mxu3  ;;  %v4278_v61 = vpop.f32.mrf.mxu1 }
 0x488   : > { %v4363_v38 = vadd.f32 %v4362_v16, %v4273_v0  ;;  %v3343_v28 = vpop.f32.mrf.mxu0  ;;  %v3426_v0 = vadd.f32 %v7126_v58, %v3336_v12  ;;  %v3428_v58 = vadd.f32 %v7135_v19, %v3338_v13  ;;  %v3784_v19 = vadd.f32 %v3783_v5, %v3431_v24 }
 0x489   : > { %v3433_v25 = vadd.f32 %v7152_v46, %v3343_v28 }
 0x48a   : > { %v4418_v30 = vadd.f32 %v4363_v38, %v3863_v1  ;;  %v3779_v9 = vadd.f32 %v3778_v33, %v3426_v0  ;;  %v3785_v27 = vpop.f32.mrf.mxu2  ;;  %v3781_v57 = vadd.f32 %v3780_v17, %v3428_v58  ;;  %v5944_v58 = vld [vmem:[#allocation3 + $0x54] sm:$0xf] }
 0x48b   : > { %v3786_v62 = vadd.f32 %v3785_v27, %v3433_v25 }
 0x48c   : > { %4450 = vst [vmem:[%s6167_s20 + $0x80] sm:$0xff] %v4418_v30  ;;  %v3868_v52 = vadd.f32 %v7133_v40, %v3779_v9  ;;  %v3870_v38 = vadd.f32 %v7140_v21, %v3781_v57  ;;  %v5986_v30 = vld [vmem:[#allocation3 + $0x54] sm:$0xf]  ;;  %v5233_v40 = vld [vmem:[#allocation3 + $0x58] sm:$0xf0] }
 0x48d   : > { %v5236_v17 = vor.u32 %v5986_v30, %v5233_v40 }
 0x48f   : > { %v4364_v39 = vpop.f32.mrf.mxu3  ;;  %v4280_v3 = vpop.f32.mrf.mxu1 }
 0x490   : > { %v4365_v59 = vadd.f32 %v4364_v39, %v4275_v63  ;;  %v3346_v45 = vpop.f32.mrf.mxu0 }
 0x492   : > { %v4419_v2 = vadd.f32 %v4365_v59, %v3865_v41  ;;  %v3788_v33 = vpop.f32.mrf.mxu2  ;;  %v5425_v41 = vld [vmem:[#allocation3 + $0x48] sm:$0xf0] }
 0x493   : > { %5376 = vmatmul.msk.bf16.gmra.mxu0 %vm199_vm0, %v5228_v55  ;;  %5568 = vmatmul.msk.bf16.gmra.mxu2 %vm199_vm0, %v5420_v53  ;;  %v3875_v53 = vadd.f32 %v7156_v44, %v3786_v62 }
 0x494   : > { %4451 = vst [vmem:[%s6167_s20 + $0x88] sm:$0xff] %v4419_v2  ;;  %v3873_v2 = vadd.f32 %v7150_v42, %v3784_v19  ;;  %v5241_v42 = vld [vmem:[#allocation3 + $0x68] sm:$0xf0]  ;;  %v5990_v19 = vld [vmem:[#allocation3 + $0x74] sm:$0xf] }
 0x497   : > { %v4367_v29 = vpop.f32.mrf.mxu3  ;;  %v4283_v1 = vpop.f32.mrf.mxu1 }
 0x498   : > { %v4368_v47 = vadd.f32 %v4367_v29, %v4278_v61  ;;  %v3348_v16 = vpop.f32.mrf.mxu0  ;;  %v5942_v61 = vld [vmem:[#allocation3 + $0x44] sm:$0xf] }
 0x499   : > { %v5428_v36 = vor.u32 %v5942_v61, %v5425_v41 }
 0x49a   : > { %v4420_v12 = vadd.f32 %v4368_v47, %v3868_v52  ;;  %v3790_v13 = vpop.f32.mrf.mxu2  ;;  %v3436_v52 = vadd.f32 %v7158_v7, %v3346_v45  ;;  %v3438_v7 = vadd.f32 %v7168_v50, %v3348_v16 }
 0x49c   : > { %4452 = vst [vmem:[%s6167_s20 + $0x90] sm:$0xff] %v4420_v12  ;;  %v5433_v12 = vld [vmem:[#allocation3 + $0x58] sm:$0xf0]  ;;  %v3789_v46 = vadd.f32 %v3788_v33, %v3436_v52  ;;  %v3791_v30 = vadd.f32 %v3790_v13, %v3438_v7 }
 0x49e   : > { %v3880_v61 = vadd.f32 %v7171_v54, %v3791_v30 }
 0x49f   : > { %v4369_v63 = vpop.f32.mrf.mxu3  ;;  %v4285_v0 = vpop.f32.mrf.mxu1 }
 0x4a0   : > { %v4370_v23 = vadd.f32 %v4369_v63, %v4280_v3  ;;  %v3351_v59 = vpop.f32.mrf.mxu0  ;;  %v5988_v3 = vld [vmem:[#allocation3 + $0x64] sm:$0xf]  ;;  %v5436_v63 = vor.u32 %v5944_v58, %v5433_v12 }
 0x4a1   : > { %v5244_v27 = vor.u32 %v5988_v3, %v5241_v42 }
 0x4a2   : > { %v4421_v39 = vadd.f32 %v4370_v23, %v3870_v38  ;;  %v3878_v23 = vadd.f32 %v7166_v10, %v3789_v46  ;;  %v5249_v10 = vld [vmem:[#allocation3 + $0x78] sm:$0xf0] }
 0x4a3   : > { %5377 = vmatmul.msk.bf16.gmra.mxu0 %vm199_vm0, %v5236_v17  ;;  %5569 = vmatmul.msk.bf16.gmra.mxu2 %vm199_vm0, %v5428_v36  ;;  %v3441_v17 = vadd.f32 %v7173_v56, %v3351_v59  ;;  %v5252_v13 = vor.u32 %v5990_v19, %v5249_v10 }
 0x4a4   : > { %4453 = vst [vmem:[%s6167_s20 + $0x98] sm:$0xff] %v4421_v39 }
 0x4a6   : > { %v3793_v5 = vpop.f32.mrf.mxu2 }
 0x4a7   : > { %v4372_v31 = vpop.f32.mrf.mxu3  ;;  %v4288_v55 = vpop.f32.mrf.mxu1  ;;  %v3794_v50 = vadd.f32 %v3793_v5, %v3441_v17 }
 0x4a8   : > { %v4373_v21 = vadd.f32 %v4372_v31, %v4283_v1  ;;  %v3353_v4 = vpop.f32.mrf.mxu0  ;;  %v5946_v31 = vld [vmem:[#allocation3 + $0x64] sm:$0xf] }
 0x4a9   : > { %v3883_v62 = vadd.f32 %v7180_v20, %v3794_v50  ;;  %v3443_v56 = vadd.f32 %v7182_v37, %v3353_v4 }
 0x4aa   : > { %v4422_v43 = vadd.f32 %v4373_v21, %v3873_v2 }
 0x4ac   : > { %4454 = vst [vmem:[%s6167_s20 + $0xa0] sm:$0xff] %v4422_v43 }
 0x4ae   : > { %v3795_v28 = vpop.f32.mrf.mxu2 }
 0x4af   : > { %v4374_v9 = vpop.f32.mrf.mxu3  ;;  %v4290_v38 = vpop.f32.mrf.mxu1 }
 0x4b0   : > { %v4375_v29 = vadd.f32 %v4374_v9, %v4285_v0  ;;  %v3356_v57 = vpop.f32.mrf.mxu0  ;;  %v5441_v0 = vld [vmem:[#allocation3 + $0x68] sm:$0xf0]  ;;  %v3796_v9 = vadd.f32 %v3795_v28, %v3443_v56 }
 0x4b1   : > { %v5444_v21 = vor.u32 %v5946_v31, %v5441_v0  ;;  %v3446_v20 = vadd.f32 %v7186_v34, %v3356_v57 }
 0x4b2   : > { %v4423_v47 = vadd.f32 %v4375_v29, %v3875_v53  ;;  %v3885_v3 = vadd.f32 %v7184_v6, %v3796_v9 }
 0x4b3   : > { %5378 = vmatmul.msk.bf16.gmra.mxu0 %vm199_vm0, %v5244_v27  ;;  %5570 = vmatmul.msk.bf16.gmra.mxu2 %vm199_vm0, %v5436_v63 }
 0x4b4   : > { %4455 = vst [vmem:[%s6167_s20 + $0xa8] sm:$0xff] %v4423_v47 }
 0x4b6   : > { %v3798_v33 = vpop.f32.mrf.mxu2 }
 0x4b7   : > { %v4377_v1 = vpop.f32.mrf.mxu3  ;;  %v4293_v39 = vpop.f32.mrf.mxu1  ;;  %v3799_v47 = vadd.f32 %v3798_v33, %v3446_v20 }
 0x4b8   : > { %v4378_v44 = vadd.f32 %v4377_v1, %v4288_v55  ;;  %v3358_v40 = vpop.f32.mrf.mxu0 }
 0x4b9   : > { %v3888_v4 = vadd.f32 %v7194_v26, %v3799_v47  ;;  %v3448_v27 = vadd.f32 %v7196_v14, %v3358_v40 }
 0x4ba   : > { %v4424_v45 = vadd.f32 %v4378_v44, %v3878_v23 }
 0x4bc   : > { %4456 = vst [vmem:[%s6167_s20 + $0xb0] sm:$0xff] %v4424_v45 }
 0x4be   : > { %v3800_v16 = vpop.f32.mrf.mxu2 }
 0x4bf   : > { %v4379_v24 = vpop.f32.mrf.mxu3  ;;  %v4295_v43 = vpop.f32.mrf.mxu1  ;;  %v3801_v1 = vadd.f32 %v3800_v16, %v3448_v27  ;;  %v7606_v27 = vld [vmem:[#allocation50_spill] sm:$0xff] }
 0x4c0   : > { %v4380_v41 = vadd.f32 %v4379_v24, %v4290_v38  ;;  %v3361_v2 = vpop.f32.mrf.mxu0 }
 0x4c1   : > { %v3890_v34 = vadd.f32 %v7199_v22, %v3801_v1  ;;  %v3451_v7 = vadd.f32 %v7201_v32, %v3361_v2 }
 0x4c2   : > { %v4425_v36 = vadd.f32 %v4380_v41, %v3880_v61 }
 0x4c3   : > { %5379 = vmatmul.msk.bf16.gmra.mxu0 %vm199_vm0, %v5252_v13  ;;  %5571 = vmatmul.msk.bf16.gmra.mxu2 %vm199_vm0, %v5444_v21 }
 0x4c4   : > { %4457 = vst [vmem:[%s6167_s20 + $0xb8] sm:$0xff] %v4425_v36 }
 0x4c6   : > { %v3803_v5 = vpop.f32.mrf.mxu2 }
 0x4c7   : > { %v4382_v25 = vpop.f32.mrf.mxu3  ;;  %v4298_v29 = vpop.f32.mrf.mxu1  ;;  %v3804_v30 = vadd.f32 %v3803_v5, %v3451_v7  ;;  %v7608_v7 = vld [vmem:[#allocation61_spill] sm:$0xff] }
 0x4c8   : > { %v4383_v54 = vadd.f32 %v4382_v25, %v4293_v39  ;;  %v3363_v55 = vpop.f32.mrf.mxu0 }
 0x4c9   : > { %v3893_v24 = vadd.f32 %v7210_v8, %v3804_v30  ;;  %v3453_v61 = vadd.f32 %v7212_v48, %v3363_v55  ;;  %v7609_v30 = vld [vmem:[#allocation52_spill] sm:$0xff] }
 0x4ca   : > { %v4426_v59 = vadd.f32 %v4383_v54, %v3883_v62  ;;  %v7599_v62 = vld [vmem:[#allocation55_spill] sm:$0xff]  ;;  %v7600_v54 = vld [vmem:[#allocation45_spill] sm:$0xff] }
 0x4cc   : > { %4458 = vst [vmem:[%s6167_s20 + $0xc0] sm:$0xff] %v4426_v59  ;;  %v7601_v59 = vld [vmem:[#allocation46_spill] sm:$0xff] }
 0x4ce   : > { %v3805_v58 = vpop.f32.mrf.mxu2 }
 0x4cf   : > { %v4384_v53 = vpop.f32.mrf.mxu3  ;;  %v4300_v37 = vpop.f32.mrf.mxu1  ;;  %v3806_v10 = vadd.f32 %v3805_v58, %v3453_v61  ;;  %v7611_v61 = vld [vmem:[#allocation64_spill] sm:$0xff] }
 0x4d0   : > { %v4385_v42 = vadd.f32 %v4384_v53, %v4295_v43  ;;  %v3366_v12 = vpop.f32.mrf.mxu0 }
 0x4d1   : > { %v3895_v8 = vadd.f32 %v7218_v60, %v3806_v10  ;;  %v3456_v48 = vadd.f32 %v7220_v11, %v3366_v12  ;;  %v7602_v11 = vld [vmem:[#allocation47_spill] sm:$0xff]  ;;  %v7604_v12 = vld [vmem:[#allocation58_spill] sm:$0xff]  ;;  %v7613_v10 = vld [vmem:[#allocation56_spill] sm:$0xff] }
 0x4d2   : > { %v4427_v52 = vadd.f32 %v4385_v42, %v3885_v3 }
 0x4d4   : > { %4459 = vst [vmem:[%s6167_s20 + $0xc8] sm:$0xff] %v4427_v52 }
 0x4d6   : > { %v3808_v6 = vpop.f32.mrf.mxu2 }
 0x4d7   : > { %v4387_v46 = vpop.f32.mrf.mxu3  ;;  %v4303_v44 = vpop.f32.mrf.mxu1  ;;  %v3809_v21 = vadd.f32 %v3808_v6, %v3456_v48  ;;  %v7616_v48 = vld [vmem:[#allocation59_spill] sm:$0xff] }
 0x4d8   : > { %v4388_v28 = vadd.f32 %v4387_v46, %v4298_v29  ;;  %v3368_v38 = vpop.f32.mrf.mxu0  ;;  %v7603_v29 = vld [vmem:[#allocation48_spill] sm:$0xff] }
 0x4d9   : > { %v3898_v9 = vadd.f32 %v7601_v59, %v3809_v21  ;;  %v3458_v55 = vadd.f32 %v7602_v11, %v3368_v38  ;;  %v7607_v38 = vld [vmem:[#allocation51_spill] sm:$0xff]  ;;  %v7617_v21 = vld [vmem:[#allocation70_spill] sm:$0xff]  ;;  %v7620_v59 = vld [vmem:[#allocation73_spill] sm:$0xff] }
 0x4da   : > { %v4428_v63 = vadd.f32 %v4388_v28, %v3888_v4 }
 0x4dc   : > { %4460 = vst [vmem:[%s6167_s20 + $0xd0] sm:$0xff] %v4428_v63 }
 0x4de   : > { %v3810_v26 = vpop.f32.mrf.mxu2 }
 0x4df   : > { %v4389_v23 = vpop.f32.mrf.mxu3  ;;  %v4305_v41 = vpop.f32.mrf.mxu1  ;;  %v3811_v42 = vadd.f32 %v3810_v26, %v3458_v55  ;;  %v7622_v55 = vld [vmem:[#allocation65_spill] sm:$0xff] }
 0x4e0   : > { %v4390_v57 = vadd.f32 %v4389_v23, %v4300_v37  ;;  %v3380_v33 = vpop.f32.mrf.mxu0  ;;  %v7605_v37 = vld [vmem:[#allocation49_spill] sm:$0xff] }
 0x4e1   : > { %v3381_v14 = vadd.f32 %v3380_v33, %v7208_v51  ;;  %v3900_v63 = vadd.f32 %v7606_v27, %v3811_v42  ;;  %v7610_v33 = vld [vmem:[#allocation53_spill] sm:$0xff]  ;;  %v7626_v27 = vld [vmem:[#allocation79_spill] sm:$0xff] }
 0x4e2   : > { %v4429_v45 = vadd.f32 %v4390_v57, %v3890_v34 }
 0x4e3   : > { %v3734_v19 = vadd.f32 %v7214_v49, %v3381_v14  ;;  %v7598_v49 = vld [vmem:[#allocation44_spill] sm:$0xff] }
 0x4e4   : > { %4461 = vst [vmem:[%s6167_s20 + $0xd8] sm:$0xff] %v4429_v45 }
 0x4e6   : > { %v3822_v32 = vpop.f32.mrf.mxu2 }
 0x4e7   : > { %v4392_v40 = vpop.f32.mrf.mxu3  ;;  %v3823_v17 = vadd.f32 %v3822_v32, %v3734_v19  ;;  %v4308_v2 = vpop.f32.mrf.mxu1 }
 0x4e8   : > { %v4393_v39 = vadd.f32 %v4392_v40, %v4303_v44  ;;  %v3382_v36 = vpop.f32.mrf.mxu0 }
 0x4e9   : > { %v4402_v31 = vadd.f32 %v7251_v15, %v3823_v17  ;;  %v3383_v51 = vadd.f32 %v3382_v36, %v7216_v35 }
 0x4ea   : > { %v4430_v22 = vadd.f32 %v4393_v39, %v3893_v24 }
 0x4eb   : > { %4434 = vst [vmem:[%s6167_s20] sm:$0xff] %v4402_v31  ;;  %v3736_v13 = vadd.f32 %v7598_v49, %v3383_v51  ;;  %v7614_v51 = vld [vmem:[#allocation67_spill] sm:$0xff] }
 0x4ec   : > { %4462 = vst [vmem:[%s6167_s20 + $0xe0] sm:$0xff] %v4430_v22 }
 0x4ee   : > { %v3824_v25 = vpop.f32.mrf.mxu2 }
 0x4ef   : > { %v4394_v0 = vpop.f32.mrf.mxu3  ;;  %v3825_v43 = vadd.f32 %v3824_v25, %v3736_v13  ;;  %v4310_v58 = vpop.f32.mrf.mxu1 }
 0x4f0   : > { %v4395_v50 = vadd.f32 %v4394_v0, %v4305_v41  ;;  %v3385_v15 = vpop.f32.mrf.mxu0  ;;  %v7612_v41 = vld [vmem:[#allocation54_spill] sm:$0xff] }
 0x4f1   : > { %v4403_v35 = vadd.f32 %v7599_v62, %v3825_v43  ;;  %v3386_v56 = vadd.f32 %v3385_v15, %v7600_v54  ;;  %v7618_v43 = vld [vmem:[#allocation60_spill] sm:$0xff]  ;;  %v7619_v62 = vld [vmem:[#allocation62_spill] sm:$0xff] }
 0x4f2   : > { %v4431_v16 = vadd.f32 %v4395_v50, %v3895_v8  ;;  %v7615_v8 = vld [vmem:[#allocation57_spill] sm:$0xff] }
 0x4f3   : > { %4435 = vst [vmem:[%s6167_s20 + $0x8] sm:$0xff] %v4403_v35  ;;  %v3739_v3 = vadd.f32 %v7603_v29, %v3386_v56 }
 0x4f4   : > { %4463 = vst [vmem:[%s6167_s20 + $0xe8] sm:$0xff] %v4431_v16 }
 0x4f6   : > { %v3827_v20 = vpop.f32.mrf.mxu2 }
 0x4f7   : > { %v4397_v60 = vpop.f32.mrf.mxu3  ;;  %v3828_v52 = vadd.f32 %v3827_v20, %v3739_v3  ;;  %v7623_v20 = vld [vmem:[#allocation76_spill] sm:$0xff] }
 0x4f8   : > { %v4398_v5 = vadd.f32 %v4397_v60, %v4308_v2  ;;  %v3387_v47 = vpop.f32.mrf.mxu0 }
 0x4f9   : > { %v4404_v46 = vadd.f32 %v7604_v12, %v3828_v52  ;;  %v3388_v4 = vadd.f32 %v3387_v47, %v7605_v37  ;;  %v7624_v47 = vld [vmem:[#allocation66_spill] sm:$0xff]  ;;  %v7625_v12 = vld [vmem:[#allocation68_spill] sm:$0xff] }
 0x4fa   : > { %v4432_v53 = vadd.f32 %v4398_v5, %v3898_v9  ;;  %v7621_v5 = vld [vmem:[#allocation63_spill] sm:$0xff] }
 0x4fb   : > { %4436 = vst [vmem:[%s6167_s20 + $0x10] sm:$0xff] %v4404_v46  ;;  %v3741_v23 = vadd.f32 %v7607_v38, %v3388_v4  ;;  %v7628_v38 = vld [vmem:[#allocation71_spill] sm:$0xff] }
 0x4fc   : > { %4464 = vst [vmem:[%s6167_s20 + $0xf0] sm:$0xff] %v4432_v53 }
 0x4fe   : > { %v3829_v34 = vpop.f32.mrf.mxu2 }
 0x4ff   : > { %v4399_v28 = vpop.f32.mrf.mxu3  ;;  %v3830_v57 = vadd.f32 %v3829_v34, %v3741_v23 }
 0x500   : > { %v4400_v1 = vadd.f32 %v4399_v28, %v4310_v58  ;;  %v3390_v44 = vpop.f32.mrf.mxu0 }
 0x501   : > { %v4405_v45 = vadd.f32 %v7608_v7, %v3830_v57  ;;  %v3391_v26 = vadd.f32 %v3390_v44, %v7609_v30  ;;  %v7629_v7 = vld [vmem:[#allocation81_spill] sm:$0xff]  ;;  %v7630_v30 = vld [vmem:[#allocation72_spill] sm:$0xff] }
 0x502   : > { %v4433_v6 = vadd.f32 %v4400_v1, %v3900_v63  ;;  %v7627_v1 = vld [vmem:[#allocation69_spill] sm:$0xff] }
 0x503   : > { %4437 = vst [vmem:[%s6167_s20 + $0x18] sm:$0xff] %v4405_v45  ;;  %v3744_v14 = vadd.f32 %v7610_v33, %v3391_v26  ;;  %v7631_v33 = vld [vmem:[#allocation74_spill] sm:$0xff] }
 0x504   : > { %4465 = vst [vmem:[%s6167_s20 + $0xf8] sm:$0xff] %v4433_v6 }
 0x506   : > { %v3832_v40 = vpop.f32.mrf.mxu2 }
 0x507   : > { %v3833_v24 = vadd.f32 %v3832_v40, %v3744_v14 }
 0x508   : > { %v3392_v39 = vpop.f32.mrf.mxu0 }
 0x509   : > { %v4406_v22 = vadd.f32 %v7611_v61, %v3833_v24  ;;  %v3393_v19 = vadd.f32 %v3392_v39, %v7612_v41  ;;  %v7632_v61 = vld [vmem:[#allocation82_spill] sm:$0xff]  ;;  %v7633_v41 = vld [vmem:[#allocation75_spill] sm:$0xff] }
 0x50b   : > { %4438 = vst [vmem:[%s6167_s20 + $0x20] sm:$0xff] %v4406_v22  ;;  %v3746_v32 = vadd.f32 %v7613_v10, %v3393_v19  ;;  %v7634_v10 = vld [vmem:[#allocation77_spill] sm:$0xff] }
 0x50e   : > { %v3834_v17 = vpop.f32.mrf.mxu2 }
 0x50f   : > { %v3835_v36 = vadd.f32 %v3834_v17, %v3746_v32 }
 0x510   : > { %v3395_v31 = vpop.f32.mrf.mxu0 }
 0x511   : > { %v4407_v0 = vadd.f32 %v7614_v51, %v3835_v36  ;;  %v3396_v50 = vadd.f32 %v3395_v31, %v7615_v8  ;;  %v7635_v51 = vld [vmem:[#allocation83_spill] sm:$0xff]  ;;  %v7636_v8 = vld [vmem:[#allocation78_spill] sm:$0xff] }
 0x513   : > { %4439 = vst [vmem:[%s6167_s20 + $0x28] sm:$0xff] %v4407_v0  ;;  %v3749_v16 = vadd.f32 %v7616_v48, %v3396_v50  ;;  %v7637_v48 = vld [vmem:[#allocation80_spill] sm:$0xff] }
 0x516   : > { %v3837_v49 = vpop.f32.mrf.mxu2 }
 0x517   : > { %v3838_v13 = vadd.f32 %v3837_v49, %v3749_v16 }
 0x518   : > { %v3397_v2 = vpop.f32.mrf.mxu0 }
 0x519   : > { %v4408_v25 = vadd.f32 %v7617_v21, %v3838_v13  ;;  %v3398_v15 = vadd.f32 %v3397_v2, %v7618_v43 }
 0x51b   : > { %4440 = vst [vmem:[%s6167_s20 + $0x30] sm:$0xff] %v4408_v25  ;;  %v3751_v35 = vadd.f32 %v7619_v62, %v3398_v15 }
 0x51e   : > { %v3839_v54 = vpop.f32.mrf.mxu2 }
 0x51f   : > { %v3840_v56 = vadd.f32 %v3839_v54, %v3751_v35 }
 0x520   : > { %v3400_v60 = vpop.f32.mrf.mxu0 }
 0x521   : > { %v4409_v9 = vadd.f32 %v7620_v59, %v3840_v56  ;;  %v3401_v11 = vadd.f32 %v3400_v60, %v7621_v5 }
 0x523   : > { %4441 = vst [vmem:[%s6167_s20 + $0x38] sm:$0xff] %v4409_v9  ;;  %v3754_v53 = vadd.f32 %v7622_v55, %v3401_v11 }
 0x526   : > { %v3842_v29 = vpop.f32.mrf.mxu2 }
 0x527   : > { %v3843_v3 = vadd.f32 %v3842_v29, %v3754_v53 }
 0x528   : > { %v3402_v42 = vpop.f32.mrf.mxu0 }
 0x529   : > { %v4410_v52 = vadd.f32 %v7623_v20, %v3843_v3  ;;  %v3403_v58 = vadd.f32 %v3402_v42, %v7624_v47 }
 0x52b   : > { %4442 = vst [vmem:[%s6167_s20 + $0x40] sm:$0xff] %v4410_v52  ;;  %v3756_v46 = vadd.f32 %v7625_v12, %v3403_v58 }
 0x52e   : > { %v3844_v37 = vpop.f32.mrf.mxu2 }
 0x52f   : > { %v3845_v4 = vadd.f32 %v3844_v37, %v3756_v46 }
 0x530   : > { %v3405_v28 = vpop.f32.mrf.mxu0 }
 0x531   : > { %v4411_v63 = vadd.f32 %v7626_v27, %v3845_v4  ;;  %v3406_v6 = vadd.f32 %v3405_v28, %v7627_v1 }
 0x533   : > { %4443 = vst [vmem:[%s6167_s20 + $0x48] sm:$0xff] %v4411_v63  ;;  %v3759_v23 = vadd.f32 %v7628_v38, %v3406_v6 }
 0x536   : > { %v3847_v34 = vpop.f32.mrf.mxu2 }
 0x537   : > { %v3848_v57 = vadd.f32 %v3847_v34, %v3759_v23 }
 0x538   : > { %v3407_v44 = vpop.f32.mrf.mxu0 }
 0x539   : > { %v4412_v45 = vadd.f32 %v7629_v7, %v3848_v57  ;;  %v3408_v26 = vadd.f32 %v3407_v44, %v7630_v30 }
 0x53b   : > { %4444 = vst [vmem:[%s6167_s20 + $0x50] sm:$0xff] %v4412_v45  ;;  %v3761_v14 = vadd.f32 %v7631_v33, %v3408_v26 }
 0x53e   : > { %v3849_v40 = vpop.f32.mrf.mxu2 }
 0x53f   : > { %v3850_v24 = vadd.f32 %v3849_v40, %v3761_v14 }
 0x540   : > { %v3410_v39 = vpop.f32.mrf.mxu0 }
 0x541   : > { %v4413_v22 = vadd.f32 %v7632_v61, %v3850_v24  ;;  %v3411_v19 = vadd.f32 %v3410_v39, %v7633_v41 }
 0x543   : > { %4445 = vst [vmem:[%s6167_s20 + $0x58] sm:$0xff] %v4413_v22  ;;  %v3764_v32 = vadd.f32 %v7634_v10, %v3411_v19 }
 0x546   : > { %v3852_v17 = vpop.f32.mrf.mxu2 }
 0x547   : > { %v3853_v36 = vadd.f32 %v3852_v17, %v3764_v32 }
 0x548   : > { %v3412_v31 = vpop.f32.mrf.mxu0 }
 0x549   : > { %v4414_v0 = vadd.f32 %v7635_v51, %v3853_v36  ;;  %v3413_v50 = vadd.f32 %v3412_v31, %v7636_v8 }
 0x54b   : > { %4446 = vst [vmem:[%s6167_s20 + $0x60] sm:$0xff] %v4414_v0  ;;  %v3766_v16 = vadd.f32 %v7637_v48, %v3413_v50 }
 0x54e   : > { %v3854_v49 = vpop.f32.mrf.mxu2 }
 0x54f   : > { %v3855_v13 = vadd.f32 %v3854_v49, %v3766_v16 }
 0x551   : > { %v4415_v2 = vadd.f32 %v7345_v18, %v3855_v13 }
 0x553   : > { %4447 = vst [vmem:[%s6167_s20 + $0x68] sm:$0xff] %v4415_v2 }
 0x554 PF: > { %s14_s15 = sadd.s32 1, %s6112_s15  }
 0x555   : > { %p11_p5 = scmp.ge.s32.totalorder %s14_s15, 4  }
 0x557   :  { %13 = sbr.rel (!%p11_p5) target bundleno = 1 (0x1), region = 95 }

</bundles_post_ra>
